<compile_context>
chip_gen: v6e
topology: v6e:2x2x1
jax: 0.10.0
libtpu: 0.0.40
codegen_flags: <defaults>
</compile_context>

<pallas_src>
import jax
import jax.numpy as jnp
from jax.experimental import pallas as pl
from jax.experimental.pallas import tpu as pltpu


_VMEM_LIMIT = 32 * 1024 * 1024  # explicit; safe on v5e/v6e (128 MiB) and v7x (64 MiB)


# ------------------------------ tiling helper ---------------------------------

def _pick_tile(m, unit, cap=2048):
    """Largest tile that divides m and is a multiple of `unit`.
    Prefers lane widths that are multiples of 128 (unmasked vst), tiles <= cap
    (VMEM headroom), and >= 2 grid steps (v7x megacore / pipelining)."""
    cands = [t for t in range(unit, m + 1, unit) if m % t == 0 and t <= cap]
    if not cands:
        return m
    pool128 = [t for t in cands if t % 128 == 0]
    if pool128:
        multi = [t for t in pool128 if m // t >= 2]
        return max(multi) if multi else max(pool128)
    return max(cands)  # no lane-dense option at this size: one full block


# ------------------------------ Pallas kernels --------------------------------

def _stem_kernel(w_ref, x_ref, sh_ref, o_ref):
    """(Cout, K) @ (K, tm) -> + folded-BN shift -> ReLU -> bf16 store."""
    y = jnp.dot(w_ref[...], x_ref[...], preferred_element_type=jnp.float32)
    y = jnp.maximum(y + sh_ref[...], 0.0)
    o_ref[...] = y.astype(o_ref.dtype)


def _make_block_kernel(n_pre, H, W):
    """Fused BasicBlock (with an optional fused max-pool prologue).

    x_ref         : (n_pre, C, tm) bf16.  The block input (identity) is the max
                    over the leading axis (n_pre == 1 means a plain input).
    m_ref         : (9, 1, tm) f32 {0,1} border masks for the in-kernel 3x3 taps.
    w1_ref/w2_ref : (9, C, C) bf16 per-tap weights, BN scale folded in.
    s1_ref/s2_ref : (C, 1) f32 folded-BN shifts.
    """

    def conv3x3(inp, m_ref, w_ref, s_ref):
        # inp: (C, tm) f32.  Each 3x3/stride-1/pad-1 tap is a lane rotation of
        # the flattened (n, h, w) axis, zeroed at image borders by the mask
        # (tiles always cover whole images, so rotations never cross tiles).
        tm = inp.shape[-1]
        acc = None
        for t in range(9):
            dh, dw = t // 3 - 1, t % 3 - 1
            if dh == 0 and dw == 0:
                tap = inp
            else:
                sft = (-(dh * W + dw)) % tm
                tap = pltpu.roll(inp, sft, axis=1) * m_ref[t]
            d = jnp.dot(w_ref[t], tap.astype(jnp.bfloat16),
                        preferred_element_type=jnp.float32)
            acc = d if acc is None else acc + d
        return acc + s_ref[...]

    def kernel(x_ref, m_ref, w1_ref, s1_ref, w2_ref, s2_ref, o_ref):
        ident = x_ref[0]
        for t in range(1, n_pre):            # fused max-pool over the tap slabs
            ident = jnp.maximum(ident, x_ref[t])
        ident = ident.astype(jnp.float32)    # residual held in f32

        y = jnp.maximum(conv3x3(ident, m_ref, w1_ref, s1_ref), 0.0)
        y = conv3x3(y, m_ref, w2_ref, s2_ref) + ident
        o_ref[...] = jnp.maximum(y, 0.0).astype(o_ref.dtype)

    return kernel


# ------------------------------ stage wrappers ---------------------------------

def stem_conv_bn_relu(x_nchw, w, scale, shift):
    """conv1(7x7, stride 2, pad 3, no bias) + folded BN + ReLU.
    Returns the activation in lane-dense (Cout, N*Ho*Wo) bf16 layout."""
    N, Cin, H, W = map(int, x_nchw.shape)
    KH, KW, _, Cout = map(int, w.shape)
    stride, pad = 2, (KH - 1) // 2
    Ho = (H + 2 * pad - KH) // stride + 1
    Wo = (W + 2 * pad - KW) // stride + 1
    M = N * Ho * Wo
    K = KH * KW * Cin

    # Glue: im2col built directly in (K, M) layout -- one tiny input transpose,
    # no per-tap transposes.
    xc = jnp.transpose(x_nchw, (1, 0, 2, 3))                    # (Cin, N, H, W)
    xp = jnp.pad(xc, ((0, 0), (0, 0), (pad, pad), (pad, pad)))
    taps = []
    for kh in range(KH):                    # static Python ints -> static slices
        for kw in range(KW):
            t = xp[:, :, kh:kh + stride * (Ho - 1) + 1:stride,
                         kw:kw + stride * (Wo - 1) + 1:stride]
            taps.append(t.reshape(Cin, M))
    x_km = jnp.concatenate(taps, axis=0).astype(jnp.bfloat16)   # (K, M)

    # Fold BN scale into the weights; pad K to a multiple of 16 (bf16 sublanes).
    w_ck = (w * scale[None, None, None, :]).reshape(K, Cout).T.astype(jnp.bfloat16)
    Kp = -(-K // 16) * 16
    if Kp != K:
        x_km = jnp.pad(x_km, ((0, Kp - K), (0, 0)))
        w_ck = jnp.pad(w_ck, ((0, 0), (0, Kp - K)))
    sh = shift.reshape(Cout, 1).astype(jnp.float32)

    tm = _pick_tile(M, 128)
    out = pl.pallas_call(
        _stem_kernel,
        out_shape=jax.ShapeDtypeStruct((Cout, M), jnp.bfloat16),
        grid_spec=pltpu.PrefetchScalarGridSpec(
            num_scalar_prefetch=0,
            grid=(M // tm,),
            in_specs=[
                pl.BlockSpec((Cout, Kp), lambda i: (0, 0)),
                pl.BlockSpec((Kp, tm), lambda i: (0, i)),
                pl.BlockSpec((Cout, 1), lambda i: (0, 0)),
            ],
            out_specs=pl.BlockSpec((Cout, tm), lambda i: (0, i)),
        ),
        compiler_params=pltpu.CompilerParams(
            dimension_semantics=("parallel",),
            vmem_limit_bytes=_VMEM_LIMIT),
    )(w_ck, x_km, sh)
    return out, (N, Ho, Wo)


def maxpool_taps(x_cm, N, H, W):
    """3x3 / stride-2 / pad-1 max-pool tap slabs in (9, C, M2) layout (no
    transposes).  Zero padding is exact because the input is post-ReLU (>=0).
    The max itself is fused into the following BasicBlock kernel."""
    C = int(x_cm.shape[0])
    Ho = (H + 2 - 3) // 2 + 1
    Wo = (W + 2 - 3) // 2 + 1
    M2 = N * Ho * Wo
    xs = x_cm.reshape(C, N, H, W)
    xp = jnp.pad(xs, ((0, 0), (0, 0), (1, 1), (1, 1)))
    taps = []
    for kh in range(3):
        for kw in range(3):
            t = xp[:, :, kh:kh + 2 * (Ho - 1) + 1:2, kw:kw + 2 * (Wo - 1) + 1:2]
            taps.append(t.reshape(C, M2))
    return jnp.stack(taps, axis=0), (N, Ho, Wo)


def _conv3x3_masks(H, W, M):
    """{0,1} border masks for the 9 in-kernel conv taps, shape (9, 1, M)."""
    pos = jnp.arange(M, dtype=jnp.int32)
    wi = pos % W
    hi = (pos // W) % H
    masks = []
    for dh in (-1, 0, 1):
        for dw in (-1, 0, 1):
            m = (hi + dh >= 0) & (hi + dh < H) & (wi + dw >= 0) & (wi + dw < W)
            masks.append(m)
    return jnp.stack(masks, axis=0).astype(jnp.float32).reshape(9, 1, M)


def basic_block(x_slabs, p1, p2, H, W):
    """One fused BasicBlock pallas_call.  x_slabs: (P, C, M) bf16 (P > 1 means
    the max-pool prologue is fused in).  Returns (C, M) bf16."""
    P, C, M = map(int, x_slabs.shape)
    masks = _conv3x3_masks(H, W, M)

    def fold(p):
        w = p["w"] * p["scale"][None, None, None, :]             # (3, 3, C, C)
        w9 = jnp.transpose(w, (0, 1, 3, 2)).reshape(9, C, C).astype(jnp.bfloat16)
        sh = p["shift"].reshape(C, 1).astype(jnp.float32)
        return w9, sh

    w1, s1 = fold(p1)
    w2, s2 = fold(p2)

    # Tiles are whole images so in-kernel lane rotations stay tile-local.
    tm = _pick_tile(M, H * W)
    return pl.pallas_call(
        _make_block_kernel(P, H, W),
        out_shape=jax.ShapeDtypeStruct((C, M), jnp.bfloat16),
        grid_spec=pltpu.PrefetchScalarGridSpec(
            num_scalar_prefetch=0,
            grid=(M // tm,),
            in_specs=[
                pl.BlockSpec((P, C, tm), lambda i: (0, 0, i)),
                pl.BlockSpec((9, 1, tm), lambda i: (0, 0, i)),
                pl.BlockSpec((9, C, C), lambda i: (0, 0, 0)),
                pl.BlockSpec((C, 1), lambda i: (0, 0)),
                pl.BlockSpec((9, C, C), lambda i: (0, 0, 0)),
                pl.BlockSpec((C, 1), lambda i: (0, 0)),
            ],
            out_specs=pl.BlockSpec((C, tm), lambda i: (0, i)),
        ),
        compiler_params=pltpu.CompilerParams(
            dimension_semantics=("parallel",),
            vmem_limit_bytes=_VMEM_LIMIT),
    )(x_slabs, masks, w1, s1, w2, s2)


# --------------------------------- forward -------------------------------------

def resnet_exit1_part1l_forward(x_nchw, params):
    p = params["conv1"]
    x_cm, (N, H1, W1) = stem_conv_bn_relu(x_nchw, p["w"], p["scale"], p["shift"])
    slabs, (N, H2, W2) = maxpool_taps(x_cm, N, H1, W1)
    b1 = params["block1"]
    x_cm = basic_block(slabs, b1["conv1"], b1["conv2"], H2, W2)   # maxpool fused in
    b2 = params["block2"]
    x_cm = basic_block(x_cm[None], b2["conv1"], b2["conv2"], H2, W2)
    C = int(x_cm.shape[0])
    out = jnp.transpose(x_cm.reshape(C, N, H2, W2), (1, 0, 2, 3))  # -> NCHW
    return out.astype(jnp.float32)


# ------------------------- parameters (deterministic) ---------------------------

def _fold_bn(gamma, beta, mean, var, eps=1e-5):
    scale = gamma / jnp.sqrt(var + eps)
    shift = beta - mean * scale
    return scale, shift


def _init_conv_bn(key, kh, kw, cin, cout):
    k1, k2, k3, k4, k5 = jax.random.split(key, 5)
    w = jax.random.normal(k1, (kh, kw, cin, cout), jnp.float32) * jnp.sqrt(
        2.0 / (kh * kw * cin))
    gamma = 1.0 + 0.1 * jax.random.normal(k2, (cout,), jnp.float32)
    beta = 0.1 * jax.random.normal(k3, (cout,), jnp.float32)
    mean = 0.1 * jax.random.normal(k4, (cout,), jnp.float32)
    var = jax.random.uniform(k5, (cout,), jnp.float32, minval=0.5, maxval=1.5)
    scale, shift = _fold_bn(gamma, beta, mean, var)
    return {"w": w, "scale": scale, "shift": shift}


def _init_basic_block(key, c):
    # layer1 BasicBlocks: 64->64, stride 1, no downsample branch.
    k1, k2 = jax.random.split(key)
    return {"conv1": _init_conv_bn(k1, 3, 3, c, c),
            "conv2": _init_conv_bn(k2, 3, 3, c, c)}


def init_resnet_exit1_part1l_params(key):
    k0, k1, k2 = jax.random.split(key, 3)
    return {"conv1": _init_conv_bn(k0, 7, 7, 3, 64),   # resnet18 stem conv
            "block1": _init_basic_block(k1, 64),
            "block2": _init_basic_block(k2, 64)}


# ------------------------- pure-XLA reference (f32) -----------------------------

def _ref_conv_bn(x, w, scale, shift, *, stride, relu, residual=None):
    pad = (w.shape[0] - 1) // 2
    y = jax.lax.conv_general_dilated(
        x, w, window_strides=(stride, stride),
        padding=[(pad, pad), (pad, pad)],
        dimension_numbers=("NHWC", "HWIO", "NHWC"))
    y = y * scale + shift
    if residual is not None:
        y = y + residual
    if relu:
        y = jnp.maximum(y, 0.0)
    return y


def _ref_forward(x_nchw, params):
    x = jnp.transpose(x_nchw, (0, 2, 3, 1))
    p = params["conv1"]
    x = _ref_conv_bn(x, p["w"], p["scale"], p["shift"], stride=2, relu=True)
    x = jax.lax.reduce_window(
        x, -jnp.inf, jax.lax.max,
        window_dimensions=(1, 3, 3, 1), window_strides=(1, 2, 2, 1),
        padding=[(0, 0), (1, 1), (1, 1), (0, 0)])
    for name in ("block1", "block2"):
        b = params[name]
        identity = x
        y = _ref_conv_bn(x, b["conv1"]["w"], b["conv1"]["scale"],
                         b["conv1"]["shift"], stride=1, relu=True)
        x = _ref_conv_bn(y, b["conv2"]["w"], b["conv2"]["scale"],
                         b["conv2"]["shift"], stride=1, relu=True,
                         residual=identity)
    return jnp.transpose(x, (0, 3, 1, 2))


# ------------------------------------ main --------------------------------------

if __name__ == "__main__":
    key = jax.random.PRNGKey(0)
    pkey, xkey = jax.random.split(key)
    params = init_resnet_exit1_part1l_params(pkey)

    # NCHW input like PyTorch: resnet18's conv1 expects 3 channels.
    x = jax.random.normal(xkey, (2, 3, 32, 32), jnp.float32)

    fwd = jax.jit(resnet_exit1_part1l_forward)
    out = fwd(x, params)
    jax.block_until_ready(out)
    assert out.shape == (2, 64, 8, 8), out.shape
    assert bool(jnp.all(jnp.isfinite(out)))

    # Loose numerical check vs an f32 XLA reference (kernels use bf16 operands
    # and bf16 inter-stage activations).
    ref = jax.jit(_ref_forward)(x, params)
    err = float(jnp.max(jnp.abs(out - ref)) / (jnp.max(jnp.abs(ref)) + 1e-6))
    assert err < 0.1, err

    print("KERNEL_OK")
</pallas_src>

<mosaic_0001>
module attributes {stable_mosaic.version = 11 : i64} {
  func.func @_stem_kernel(%arg0: i32, %arg1: memref<64x160xbf16, #tpu.memory_space<vmem>>, %arg2: memref<160x256xbf16, #tpu.memory_space<vmem>>, %arg3: memref<64x1xf32, #tpu.memory_space<vmem>>, %arg4: memref<64x256xbf16, #tpu.memory_space<vmem>>) attributes {dimension_semantics = [#tpu.dimension_semantics<parallel>], iteration_bounds = array<i64: 2>, scalar_prefetch = 0 : i64, scratch_operands = 0 : i64, tpu.core_type = #tpu.core_type<tc>, window_params = [{pipeline_mode = #tpu.pipeline_mode<synchronous>, transform_indices = @transform_0, window_bounds = array<i64: 64, 160>}, {transform_indices = @transform_1, window_bounds = array<i64: 160, 256>}, {pipeline_mode = #tpu.pipeline_mode<synchronous>, transform_indices = @transform_2, window_bounds = array<i64: 64, 1>}, {transform_indices = @transform_3, window_bounds = array<i64: 64, 256>}]} {
    %c0 = arith.constant 0 : index
    %c0_0 = arith.constant 0 : index
    %0 = vector.load %arg1[%c0, %c0_0] : memref<64x160xbf16, #tpu.memory_space<vmem>>, vector<64x160xbf16>
    %c0_1 = arith.constant 0 : index
    %c0_2 = arith.constant 0 : index
    %1 = vector.load %arg2[%c0_1, %c0_2] : memref<160x256xbf16, #tpu.memory_space<vmem>>, vector<160x256xbf16>
    %cst = arith.constant dense<0.000000e+00> : vector<64x256xf32>
    %2 = tpu.matmul %0, %1, %cst {dimension_numbers = #tpu.dot_dimension_numbers<[1], [0], [0], [1], [0, 0, 1, 1], [], []>} : vector<64x160xbf16>, vector<160x256xbf16>, vector<64x256xf32> -> vector<64x256xf32>
    %c0_3 = arith.constant 0 : index
    %c0_4 = arith.constant 0 : index
    %3 = vector.load %arg3[%c0_3, %c0_4] : memref<64x1xf32, #tpu.memory_space<vmem>>, vector<64x1xf32>
    %4 = vector.broadcast %3 : vector<64x1xf32> to vector<64x256xf32>
    %5 = arith.addf %2, %4 : vector<64x256xf32>
    %cst_5 = arith.constant 0.000000e+00 : f32
    %6 = vector.broadcast %cst_5 : f32 to vector<64x256xf32>
    %7 = arith.maximumf %5, %6 : vector<64x256xf32>
    %8 = arith.truncf %7 : vector<64x256xf32> to vector<64x256xbf16>
    %c0_6 = arith.constant 0 : index
    %c0_7 = arith.constant 0 : index
    %9 = vector.load %arg4[%c0_6, %c0_7] : memref<64x256xbf16, #tpu.memory_space<vmem>>, vector<64x256xbf16>
    tpu.vector_store %arg4[%c0_6, %c0_7], %8 {strides = array<i32>} : memref<64x256xbf16, #tpu.memory_space<vmem>>, vector<64x256xbf16>,
    return
  }
  func.func @transform_0(%arg0: i32) -> (i32, i32) {
    %c0_i32 = arith.constant 0 : i32
    %c0_i32_0 = arith.constant 0 : i32
    %c0_i32_1 = arith.constant 0 : i32
    return %c0_i32, %c0_i32_0 : i32, i32
  }
  func.func @transform_1(%arg0: i32) -> (i32, i32) {
    %c0_i32 = arith.constant 0 : i32
    %c0_i32_0 = arith.constant 0 : i32
    return %c0_i32, %arg0 : i32, i32
  }
  func.func @transform_2(%arg0: i32) -> (i32, i32) {
    %c0_i32 = arith.constant 0 : i32
    %c0_i32_0 = arith.constant 0 : i32
    %c0_i32_1 = arith.constant 0 : i32
    return %c0_i32, %c0_i32_0 : i32, i32
  }
  func.func @transform_3(%arg0: i32) -> (i32, i32) {
    %c0_i32 = arith.constant 0 : i32
    %c0_i32_0 = arith.constant 0 : i32
    return %c0_i32, %arg0 : i32, i32
  }
}

module attributes {stable_mosaic.version = 11 : i64} {
  func.func @kernel(%arg0: i32, %arg1: memref<9x64x128xbf16, #tpu.memory_space<vmem>>, %arg2: memref<9x1x128xf32, #tpu.memory_space<vmem>>, %arg3: memref<9x64x64xbf16, #tpu.memory_space<vmem>>, %arg4: memref<64x1xf32, #tpu.memory_space<vmem>>, %arg5: memref<9x64x64xbf16, #tpu.memory_space<vmem>>, %arg6: memref<64x1xf32, #tpu.memory_space<vmem>>, %arg7: memref<64x128xbf16, #tpu.memory_space<vmem>>) attributes {dimension_semantics = [#tpu.dimension_semantics<parallel>], iteration_bounds = array<i64: 1>, scalar_prefetch = 0 : i64, scratch_operands = 0 : i64, tpu.core_type = #tpu.core_type<tc>, window_params = [{transform_indices = @transform_0, window_bounds = array<i64: 9, 64, 128>}, {transform_indices = @transform_1, window_bounds = array<i64: 9, 1, 128>}, {pipeline_mode = #tpu.pipeline_mode<synchronous>, transform_indices = @transform_2, window_bounds = array<i64: 9, 64, 64>}, {pipeline_mode = #tpu.pipeline_mode<synchronous>, transform_indices = @transform_3, window_bounds = array<i64: 64, 1>}, {pipeline_mode = #tpu.pipeline_mode<synchronous>, transform_indices = @transform_4, window_bounds = array<i64: 9, 64, 64>}, {pipeline_mode = #tpu.pipeline_mode<synchronous>, transform_indices = @transform_5, window_bounds = array<i64: 64, 1>}, {transform_indices = @transform_6, window_bounds = array<i64: 64, 128>}]} {
    %c0 = arith.constant 0 : index
    %c0_0 = arith.constant 0 : index
    %c0_1 = arith.constant 0 : index
    %0 = vector.load %arg1[%c0, %c0_0, %c0_1] : memref<9x64x128xbf16, #tpu.memory_space<vmem>>, vector<1x64x128xbf16>
    %1 = vector.shape_cast %0 : vector<1x64x128xbf16> to vector<64x128xbf16>
    %c1 = arith.constant 1 : index
    %c0_2 = arith.constant 0 : index
    %c0_3 = arith.constant 0 : index
    %2 = vector.load %arg1[%c1, %c0_2, %c0_3] : memref<9x64x128xbf16, #tpu.memory_space<vmem>>, vector<1x64x128xbf16>
    %3 = vector.shape_cast %2 : vector<1x64x128xbf16> to vector<64x128xbf16>
    %4 = arith.maximumf %1, %3 : vector<64x128xbf16>
    %c2 = arith.constant 2 : index
    %c0_4 = arith.constant 0 : index
    %c0_5 = arith.constant 0 : index
    %5 = vector.load %arg1[%c2, %c0_4, %c0_5] : memref<9x64x128xbf16, #tpu.memory_space<vmem>>, vector<1x64x128xbf16>
    %6 = vector.shape_cast %5 : vector<1x64x128xbf16> to vector<64x128xbf16>
    %7 = arith.maximumf %4, %6 : vector<64x128xbf16>
    %c3 = arith.constant 3 : index
    %c0_6 = arith.constant 0 : index
    %c0_7 = arith.constant 0 : index
    %8 = vector.load %arg1[%c3, %c0_6, %c0_7] : memref<9x64x128xbf16, #tpu.memory_space<vmem>>, vector<1x64x128xbf16>
    %9 = vector.shape_cast %8 : vector<1x64x128xbf16> to vector<64x128xbf16>
    %10 = arith.maximumf %7, %9 : vector<64x128xbf16>
    %c4 = arith.constant 4 : index
    %c0_8 = arith.constant 0 : index
    %c0_9 = arith.constant 0 : index
    %11 = vector.load %arg1[%c4, %c0_8, %c0_9] : memref<9x64x128xbf16, #tpu.memory_space<vmem>>, vector<1x64x128xbf16>
    %12 = vector.shape_cast %11 : vector<1x64x128xbf16> to vector<64x128xbf16>
    %13 = arith.maximumf %10, %12 : vector<64x128xbf16>
    %c5 = arith.constant 5 : index
    %c0_10 = arith.constant 0 : index
    %c0_11 = arith.constant 0 : index
    %14 = vector.load %arg1[%c5, %c0_10, %c0_11] : memref<9x64x128xbf16, #tpu.memory_space<vmem>>, vector<1x64x128xbf16>
    %15 = vector.shape_cast %14 : vector<1x64x128xbf16> to vector<64x128xbf16>
    %16 = arith.maximumf %13, %15 : vector<64x128xbf16>
    %c6 = arith.constant 6 : index
    %c0_12 = arith.constant 0 : index
    %c0_13 = arith.constant 0 : index
    %17 = vector.load %arg1[%c6, %c0_12, %c0_13] : memref<9x64x128xbf16, #tpu.memory_space<vmem>>, vector<1x64x128xbf16>
    %18 = vector.shape_cast %17 : vector<1x64x128xbf16> to vector<64x128xbf16>
    %19 = arith.maximumf %16, %18 : vector<64x128xbf16>
    %c7 = arith.constant 7 : index
    %c0_14 = arith.constant 0 : index
    %c0_15 = arith.constant 0 : index
    %20 = vector.load %arg1[%c7, %c0_14, %c0_15] : memref<9x64x128xbf16, #tpu.memory_space<vmem>>, vector<1x64x128xbf16>
    %21 = vector.shape_cast %20 : vector<1x64x128xbf16> to vector<64x128xbf16>
    %22 = arith.maximumf %19, %21 : vector<64x128xbf16>
    %c8 = arith.constant 8 : index
    %c0_16 = arith.constant 0 : index
    %c0_17 = arith.constant 0 : index
    %23 = vector.load %arg1[%c8, %c0_16, %c0_17] : memref<9x64x128xbf16, #tpu.memory_space<vmem>>, vector<1x64x128xbf16>
    %24 = vector.shape_cast %23 : vector<1x64x128xbf16> to vector<64x128xbf16>
    %25 = arith.maximumf %22, %24 : vector<64x128xbf16>
    %26 = arith.extf %25 : vector<64x128xbf16> to vector<64x128xf32>
    %c9_i32 = arith.constant 9 : i32
    %27 = tpu.dynamic_rotate %26 by %c9_i32 dim 1 : vector<64x128xf32>, i32 -> vector<64x128xf32>
    %c0_18 = arith.constant 0 : index
    %c0_19 = arith.constant 0 : index
    %c0_20 = arith.constant 0 : index
    %28 = vector.load %arg2[%c0_18, %c0_19, %c0_20] : memref<9x1x128xf32, #tpu.memory_space<vmem>>, vector<1x1x128xf32>
    %29 = vector.shape_cast %28 : vector<1x1x128xf32> to vector<1x128xf32>
    %30 = vector.broadcast %29 : vector<1x128xf32> to vector<64x128xf32>
    %31 = arith.mulf %27, %30 : vector<64x128xf32>
    %c0_21 = arith.constant 0 : index
    %c0_22 = arith.constant 0 : index
    %c0_23 = arith.constant 0 : index
    %32 = vector.load %arg3[%c0_21, %c0_22, %c0_23] : memref<9x64x64xbf16, #tpu.memory_space<vmem>>, vector<1x64x64xbf16>
    %33 = vector.shape_cast %32 : vector<1x64x64xbf16> to vector<64x64xbf16>
    %34 = arith.truncf %31 : vector<64x128xf32> to vector<64x128xbf16>
    %cst = arith.constant dense<0.000000e+00> : vector<64x128xf32>
    %35 = tpu.matmul %33, %34, %cst {dimension_numbers = #tpu.dot_dimension_numbers<[1], [0], [0], [1], [0, 0, 1, 1], [], []>} : vector<64x64xbf16>, vector<64x128xbf16>, vector<64x128xf32> -> vector<64x128xf32>
    %c8_i32 = arith.constant 8 : i32
    %36 = tpu.dynamic_rotate %26 by %c8_i32 dim 1 : vector<64x128xf32>, i32 -> vector<64x128xf32>
    %c1_24 = arith.constant 1 : index
    %c0_25 = arith.constant 0 : index
    %c0_26 = arith.constant 0 : index
    %37 = vector.load %arg2[%c1_24, %c0_25, %c0_26] : memref<9x1x128xf32, #tpu.memory_space<vmem>>, vector<1x1x128xf32>
    %38 = vector.shape_cast %37 : vector<1x1x128xf32> to vector<1x128xf32>
    %39 = vector.broadcast %38 : vector<1x128xf32> to vector<64x128xf32>
    %40 = arith.mulf %36, %39 : vector<64x128xf32>
    %c1_27 = arith.constant 1 : index
    %c0_28 = arith.constant 0 : index
    %c0_29 = arith.constant 0 : index
    %41 = vector.load %arg3[%c1_27, %c0_28, %c0_29] : memref<9x64x64xbf16, #tpu.memory_space<vmem>>, vector<1x64x64xbf16>
    %42 = vector.shape_cast %41 : vector<1x64x64xbf16> to vector<64x64xbf16>
    %43 = arith.truncf %40 : vector<64x128xf32> to vector<64x128xbf16>
    %cst_30 = arith.constant dense<0.000000e+00> : vector<64x128xf32>
    %44 = tpu.matmul %42, %43, %cst_30 {dimension_numbers = #tpu.dot_dimension_numbers<[1], [0], [0], [1], [0, 0, 1, 1], [], []>} : vector<64x64xbf16>, vector<64x128xbf16>, vector<64x128xf32> -> vector<64x128xf32>
    %45 = arith.addf %35, %44 : vector<64x128xf32>
    %c7_i32 = arith.constant 7 : i32
    %46 = tpu.dynamic_rotate %26 by %c7_i32 dim 1 : vector<64x128xf32>, i32 -> vector<64x128xf32>
    %c2_31 = arith.constant 2 : index
    %c0_32 = arith.constant 0 : index
    %c0_33 = arith.constant 0 : index
    %47 = vector.load %arg2[%c2_31, %c0_32, %c0_33] : memref<9x1x128xf32, #tpu.memory_space<vmem>>, vector<1x1x128xf32>
    %48 = vector.shape_cast %47 : vector<1x1x128xf32> to vector<1x128xf32>
    %49 = vector.broadcast %48 : vector<1x128xf32> to vector<64x128xf32>
    %50 = arith.mulf %46, %49 : vector<64x128xf32>
    %c2_34 = arith.constant 2 : index
    %c0_35 = arith.constant 0 : index
    %c0_36 = arith.constant 0 : index
    %51 = vector.load %arg3[%c2_34, %c0_35, %c0_36] : memref<9x64x64xbf16, #tpu.memory_space<vmem>>, vector<1x64x64xbf16>
    %52 = vector.shape_cast %51 : vector<1x64x64xbf16> to vector<64x64xbf16>
    %53 = arith.truncf %50 : vector<64x128xf32> to vector<64x128xbf16>
    %cst_37 = arith.constant dense<0.000000e+00> : vector<64x128xf32>
    %54 = tpu.matmul %52, %53, %cst_37 {dimension_numbers = #tpu.dot_dimension_numbers<[1], [0], [0], [1], [0, 0, 1, 1], [], []>} : vector<64x64xbf16>, vector<64x128xbf16>, vector<64x128xf32> -> vector<64x128xf32>
    %55 = arith.addf %45, %54 : vector<64x128xf32>
    %c1_i32 = arith.constant 1 : i32
    %56 = tpu.dynamic_rotate %26 by %c1_i32 dim 1 : vector<64x128xf32>, i32 -> vector<64x128xf32>
    %c3_38 = arith.constant 3 : index
    %c0_39 = arith.constant 0 : index
    %c0_40 = arith.constant 0 : index
    %57 = vector.load %arg2[%c3_38, %c0_39, %c0_40] : memref<9x1x128xf32, #tpu.memory_space<vmem>>, vector<1x1x128xf32>
    %58 = vector.shape_cast %57 : vector<1x1x128xf32> to vector<1x128xf32>
    %59 = vector.broadcast %58 : vector<1x128xf32> to vector<64x128xf32>
    %60 = arith.mulf %56, %59 : vector<64x128xf32>
    %c3_41 = arith.constant 3 : index
    %c0_42 = arith.constant 0 : index
    %c0_43 = arith.constant 0 : index
    %61 = vector.load %arg3[%c3_41, %c0_42, %c0_43] : memref<9x64x64xbf16, #tpu.memory_space<vmem>>, vector<1x64x64xbf16>
    %62 = vector.shape_cast %61 : vector<1x64x64xbf16> to vector<64x64xbf16>
    %63 = arith.truncf %60 : vector<64x128xf32> to vector<64x128xbf16>
    %cst_44 = arith.constant dense<0.000000e+00> : vector<64x128xf32>
    %64 = tpu.matmul %62, %63, %cst_44 {dimension_numbers = #tpu.dot_dimension_numbers<[1], [0], [0], [1], [0, 0, 1, 1], [], []>} : vector<64x64xbf16>, vector<64x128xbf16>, vector<64x128xf32> -> vector<64x128xf32>
    %65 = arith.addf %55, %64 : vector<64x128xf32>
    %c4_45 = arith.constant 4 : index
    %c0_46 = arith.constant 0 : index
    %c0_47 = arith.constant 0 : index
    %66 = vector.load %arg3[%c4_45, %c0_46, %c0_47] : memref<9x64x64xbf16, #tpu.memory_space<vmem>>, vector<1x64x64xbf16>
    %67 = vector.shape_cast %66 : vector<1x64x64xbf16> to vector<64x64xbf16>
    %68 = arith.truncf %26 : vector<64x128xf32> to vector<64x128xbf16>
    %cst_48 = arith.constant dense<0.000000e+00> : vector<64x128xf32>
    %69 = tpu.matmul %67, %68, %cst_48 {dimension_numbers = #tpu.dot_dimension_numbers<[1], [0], [0], [1], [0, 0, 1, 1], [], []>} : vector<64x64xbf16>, vector<64x128xbf16>, vector<64x128xf32> -> vector<64x128xf32>
    %70 = arith.addf %65, %69 : vector<64x128xf32>
    %c127_i32 = arith.constant 127 : i32
    %71 = tpu.dynamic_rotate %26 by %c127_i32 dim 1 : vector<64x128xf32>, i32 -> vector<64x128xf32>
    %c5_49 = arith.constant 5 : index
    %c0_50 = arith.constant 0 : index
    %c0_51 = arith.constant 0 : index
    %72 = vector.load %arg2[%c5_49, %c0_50, %c0_51] : memref<9x1x128xf32, #tpu.memory_space<vmem>>, vector<1x1x128xf32>
    %73 = vector.shape_cast %72 : vector<1x1x128xf32> to vector<1x128xf32>
    %74 = vector.broadcast %73 : vector<1x128xf32> to vector<64x128xf32>
    %75 = arith.mulf %71, %74 : vector<64x128xf32>
    %c5_52 = arith.constant 5 : index
    %c0_53 = arith.constant 0 : index
    %c0_54 = arith.constant 0 : index
    %76 = vector.load %arg3[%c5_52, %c0_53, %c0_54] : memref<9x64x64xbf16, #tpu.memory_space<vmem>>, vector<1x64x64xbf16>
    %77 = vector.shape_cast %76 : vector<1x64x64xbf16> to vector<64x64xbf16>
    %78 = arith.truncf %75 : vector<64x128xf32> to vector<64x128xbf16>
    %cst_55 = arith.constant dense<0.000000e+00> : vector<64x128xf32>
    %79 = tpu.matmul %77, %78, %cst_55 {dimension_numbers = #tpu.dot_dimension_numbers<[1], [0], [0], [1], [0, 0, 1, 1], [], []>} : vector<64x64xbf16>, vector<64x128xbf16>, vector<64x128xf32> -> vector<64x128xf32>
    %80 = arith.addf %70, %79 : vector<64x128xf32>
    %c121_i32 = arith.constant 121 : i32
    %81 = tpu.dynamic_rotate %26 by %c121_i32 dim 1 : vector<64x128xf32>, i32 -> vector<64x128xf32>
    %c6_56 = arith.constant 6 : index
    %c0_57 = arith.constant 0 : index
    %c0_58 = arith.constant 0 : index
    %82 = vector.load %arg2[%c6_56, %c0_57, %c0_58] : memref<9x1x128xf32, #tpu.memory_space<vmem>>, vector<1x1x128xf32>
    %83 = vector.shape_cast %82 : vector<1x1x128xf32> to vector<1x128xf32>
    %84 = vector.broadcast %83 : vector<1x128xf32> to vector<64x128xf32>
    %85 = arith.mulf %81, %84 : vector<64x128xf32>
    %c6_59 = arith.constant 6 : index
    %c0_60 = arith.constant 0 : index
    %c0_61 = arith.constant 0 : index
    %86 = vector.load %arg3[%c6_59, %c0_60, %c0_61] : memref<9x64x64xbf16, #tpu.memory_space<vmem>>, vector<1x64x64xbf16>
    %87 = vector.shape_cast %86 : vector<1x64x64xbf16> to vector<64x64xbf16>
    %88 = arith.truncf %85 : vector<64x128xf32> to vector<64x128xbf16>
    %cst_62 = arith.constant dense<0.000000e+00> : vector<64x128xf32>
    %89 = tpu.matmul %87, %88, %cst_62 {dimension_numbers = #tpu.dot_dimension_numbers<[1], [0], [0], [1], [0, 0, 1, 1], [], []>} : vector<64x64xbf16>, vector<64x128xbf16>, vector<64x128xf32> -> vector<64x128xf32>
    %90 = arith.addf %80, %89 : vector<64x128xf32>
    %c120_i32 = arith.constant 120 : i32
    %91 = tpu.dynamic_rotate %26 by %c120_i32 dim 1 : vector<64x128xf32>, i32 -> vector<64x128xf32>
    %c7_63 = arith.constant 7 : index
    %c0_64 = arith.constant 0 : index
    %c0_65 = arith.constant 0 : index
    %92 = vector.load %arg2[%c7_63, %c0_64, %c0_65] : memref<9x1x128xf32, #tpu.memory_space<vmem>>, vector<1x1x128xf32>
    %93 = vector.shape_cast %92 : vector<1x1x128xf32> to vector<1x128xf32>
    %94 = vector.broadcast %93 : vector<1x128xf32> to vector<64x128xf32>
    %95 = arith.mulf %91, %94 : vector<64x128xf32>
    %c7_66 = arith.constant 7 : index
    %c0_67 = arith.constant 0 : index
    %c0_68 = arith.constant 0 : index
    %96 = vector.load %arg3[%c7_66, %c0_67, %c0_68] : memref<9x64x64xbf16, #tpu.memory_space<vmem>>, vector<1x64x64xbf16>
    %97 = vector.shape_cast %96 : vector<1x64x64xbf16> to vector<64x64xbf16>
    %98 = arith.truncf %95 : vector<64x128xf32> to vector<64x128xbf16>
    %cst_69 = arith.constant dense<0.000000e+00> : vector<64x128xf32>
    %99 = tpu.matmul %97, %98, %cst_69 {dimension_numbers = #tpu.dot_dimension_numbers<[1], [0], [0], [1], [0, 0, 1, 1], [], []>} : vector<64x64xbf16>, vector<64x128xbf16>, vector<64x128xf32> -> vector<64x128xf32>
    %100 = arith.addf %90, %99 : vector<64x128xf32>
    %c119_i32 = arith.constant 119 : i32
    %101 = tpu.dynamic_rotate %26 by %c119_i32 dim 1 : vector<64x128xf32>, i32 -> vector<64x128xf32>
    %c8_70 = arith.constant 8 : index
    %c0_71 = arith.constant 0 : index
    %c0_72 = arith.constant 0 : index
    %102 = vector.load %arg2[%c8_70, %c0_71, %c0_72] : memref<9x1x128xf32, #tpu.memory_space<vmem>>, vector<1x1x128xf32>
    %103 = vector.shape_cast %102 : vector<1x1x128xf32> to vector<1x128xf32>
    %104 = vector.broadcast %103 : vector<1x128xf32> to vector<64x128xf32>
    %105 = arith.mulf %101, %104 : vector<64x128xf32>
    %c8_73 = arith.constant 8 : index
    %c0_74 = arith.constant 0 : index
    %c0_75 = arith.constant 0 : index
    %106 = vector.load %arg3[%c8_73, %c0_74, %c0_75] : memref<9x64x64xbf16, #tpu.memory_space<vmem>>, vector<1x64x64xbf16>
    %107 = vector.shape_cast %106 : vector<1x64x64xbf16> to vector<64x64xbf16>
    %108 = arith.truncf %105 : vector<64x128xf32> to vector<64x128xbf16>
    %cst_76 = arith.constant dense<0.000000e+00> : vector<64x128xf32>
    %109 = tpu.matmul %107, %108, %cst_76 {dimension_numbers = #tpu.dot_dimension_numbers<[1], [0], [0], [1], [0, 0, 1, 1], [], []>} : vector<64x64xbf16>, vector<64x128xbf16>, vector<64x128xf32> -> vector<64x128xf32>
    %110 = arith.addf %100, %109 : vector<64x128xf32>
    %c0_77 = arith.constant 0 : index
    %c0_78 = arith.constant 0 : index
    %111 = vector.load %arg4[%c0_77, %c0_78] : memref<64x1xf32, #tpu.memory_space<vmem>>, vector<64x1xf32>
    %112 = vector.broadcast %111 : vector<64x1xf32> to vector<64x128xf32>
    %113 = arith.addf %110, %112 : vector<64x128xf32>
    %cst_79 = arith.constant 0.000000e+00 : f32
    %114 = vector.broadcast %cst_79 : f32 to vector<64x128xf32>
    %115 = arith.maximumf %113, %114 : vector<64x128xf32>
    %c9_i32_80 = arith.constant 9 : i32
    %116 = tpu.dynamic_rotate %115 by %c9_i32_80 dim 1 : vector<64x128xf32>, i32 -> vector<64x128xf32>
    %c0_81 = arith.constant 0 : index
    %c0_82 = arith.constant 0 : index
    %c0_83 = arith.constant 0 : index
    %117 = vector.load %arg2[%c0_81, %c0_82, %c0_83] : memref<9x1x128xf32, #tpu.memory_space<vmem>>, vector<1x1x128xf32>
    %118 = vector.shape_cast %117 : vector<1x1x128xf32> to vector<1x128xf32>
    %119 = vector.broadcast %118 : vector<1x128xf32> to vector<64x128xf32>
    %120 = arith.mulf %116, %119 : vector<64x128xf32>
    %c0_84 = arith.constant 0 : index
    %c0_85 = arith.constant 0 : index
    %c0_86 = arith.constant 0 : index
    %121 = vector.load %arg5[%c0_84, %c0_85, %c0_86] : memref<9x64x64xbf16, #tpu.memory_space<vmem>>, vector<1x64x64xbf16>
    %122 = vector.shape_cast %121 : vector<1x64x64xbf16> to vector<64x64xbf16>
    %123 = arith.truncf %120 : vector<64x128xf32> to vector<64x128xbf16>
    %cst_87 = arith.constant dense<0.000000e+00> : vector<64x128xf32>
    %124 = tpu.matmul %122, %123, %cst_87 {dimension_numbers = #tpu.dot_dimension_numbers<[1], [0], [0], [1], [0, 0, 1, 1], [], []>} : vector<64x64xbf16>, vector<64x128xbf16>, vector<64x128xf32> -> vector<64x128xf32>
    %c8_i32_88 = arith.constant 8 : i32
    %125 = tpu.dynamic_rotate %115 by %c8_i32_88 dim 1 : vector<64x128xf32>, i32 -> vector<64x128xf32>
    %c1_89 = arith.constant 1 : index
    %c0_90 = arith.constant 0 : index
    %c0_91 = arith.constant 0 : index
    %126 = vector.load %arg2[%c1_89, %c0_90, %c0_91] : memref<9x1x128xf32, #tpu.memory_space<vmem>>, vector<1x1x128xf32>
    %127 = vector.shape_cast %126 : vector<1x1x128xf32> to vector<1x128xf32>
    %128 = vector.broadcast %127 : vector<1x128xf32> to vector<64x128xf32>
    %129 = arith.mulf %125, %128 : vector<64x128xf32>
    %c1_92 = arith.constant 1 : index
    %c0_93 = arith.constant 0 : index
    %c0_94 = arith.constant 0 : index
    %130 = vector.load %arg5[%c1_92, %c0_93, %c0_94] : memref<9x64x64xbf16, #tpu.memory_space<vmem>>, vector<1x64x64xbf16>
    %131 = vector.shape_cast %130 : vector<1x64x64xbf16> to vector<64x64xbf16>
    %132 = arith.truncf %129 : vector<64x128xf32> to vector<64x128xbf16>
    %cst_95 = arith.constant dense<0.000000e+00> : vector<64x128xf32>
    %133 = tpu.matmul %131, %132, %cst_95 {dimension_numbers = #tpu.dot_dimension_numbers<[1], [0], [0], [1], [0, 0, 1, 1], [], []>} : vector<64x64xbf16>, vector<64x128xbf16>, vector<64x128xf32> -> vector<64x128xf32>
    %134 = arith.addf %124, %133 : vector<64x128xf32>
    %c7_i32_96 = arith.constant 7 : i32
    %135 = tpu.dynamic_rotate %115 by %c7_i32_96 dim 1 : vector<64x128xf32>, i32 -> vector<64x128xf32>
    %c2_97 = arith.constant 2 : index
    %c0_98 = arith.constant 0 : index
    %c0_99 = arith.constant 0 : index
    %136 = vector.load %arg2[%c2_97, %c0_98, %c0_99] : memref<9x1x128xf32, #tpu.memory_space<vmem>>, vector<1x1x128xf32>
    %137 = vector.shape_cast %136 : vector<1x1x128xf32> to vector<1x128xf32>
    %138 = vector.broadcast %137 : vector<1x128xf32> to vector<64x128xf32>
    %139 = arith.mulf %135, %138 : vector<64x128xf32>
    %c2_100 = arith.constant 2 : index
    %c0_101 = arith.constant 0 : index
    %c0_102 = arith.constant 0 : index
    %140 = vector.load %arg5[%c2_100, %c0_101, %c0_102] : memref<9x64x64xbf16, #tpu.memory_space<vmem>>, vector<1x64x64xbf16>
    %141 = vector.shape_cast %140 : vector<1x64x64xbf16> to vector<64x64xbf16>
    %142 = arith.truncf %139 : vector<64x128xf32> to vector<64x128xbf16>
    %cst_103 = arith.constant dense<0.000000e+00> : vector<64x128xf32>
    %143 = tpu.matmul %141, %142, %cst_103 {dimension_numbers = #tpu.dot_dimension_numbers<[1], [0], [0], [1], [0, 0, 1, 1], [], []>} : vector<64x64xbf16>, vector<64x128xbf16>, vector<64x128xf32> -> vector<64x128xf32>
    %144 = arith.addf %134, %143 : vector<64x128xf32>
    %c1_i32_104 = arith.constant 1 : i32
    %145 = tpu.dynamic_rotate %115 by %c1_i32_104 dim 1 : vector<64x128xf32>, i32 -> vector<64x128xf32>
    %c3_105 = arith.constant 3 : index
    %c0_106 = arith.constant 0 : index
    %c0_107 = arith.constant 0 : index
    %146 = vector.load %arg2[%c3_105, %c0_106, %c0_107] : memref<9x1x128xf32, #tpu.memory_space<vmem>>, vector<1x1x128xf32>
    %147 = vector.shape_cast %146 : vector<1x1x128xf32> to vector<1x128xf32>
    %148 = vector.broadcast %147 : vector<1x128xf32> to vector<64x128xf32>
    %149 = arith.mulf %145, %148 : vector<64x128xf32>
    %c3_108 = arith.constant 3 : index
    %c0_109 = arith.constant 0 : index
    %c0_110 = arith.constant 0 : index
    %150 = vector.load %arg5[%c3_108, %c0_109, %c0_110] : memref<9x64x64xbf16, #tpu.memory_space<vmem>>, vector<1x64x64xbf16>
    %151 = vector.shape_cast %150 : vector<1x64x64xbf16> to vector<64x64xbf16>
    %152 = arith.truncf %149 : vector<64x128xf32> to vector<64x128xbf16>
    %cst_111 = arith.constant dense<0.000000e+00> : vector<64x128xf32>
    %153 = tpu.matmul %151, %152, %cst_111 {dimension_numbers = #tpu.dot_dimension_numbers<[1], [0], [0], [1], [0, 0, 1, 1], [], []>} : vector<64x64xbf16>, vector<64x128xbf16>, vector<64x128xf32> -> vector<64x128xf32>
    %154 = arith.addf %144, %153 : vector<64x128xf32>
    %c4_112 = arith.constant 4 : index
    %c0_113 = arith.constant 0 : index
    %c0_114 = arith.constant 0 : index
    %155 = vector.load %arg5[%c4_112, %c0_113, %c0_114] : memref<9x64x64xbf16, #tpu.memory_space<vmem>>, vector<1x64x64xbf16>
    %156 = vector.shape_cast %155 : vector<1x64x64xbf16> to vector<64x64xbf16>
    %157 = arith.truncf %115 : vector<64x128xf32> to vector<64x128xbf16>
    %cst_115 = arith.constant dense<0.000000e+00> : vector<64x128xf32>
    %158 = tpu.matmul %156, %157, %cst_115 {dimension_numbers = #tpu.dot_dimension_numbers<[1], [0], [0], [1], [0, 0, 1, 1], [], []>} : vector<64x64xbf16>, vector<64x128xbf16>, vector<64x128xf32> -> vector<64x128xf32>
    %159 = arith.addf %154, %158 : vector<64x128xf32>
    %c127_i32_116 = arith.constant 127 : i32
    %160 = tpu.dynamic_rotate %115 by %c127_i32_116 dim 1 : vector<64x128xf32>, i32 -> vector<64x128xf32>
    %c5_117 = arith.constant 5 : index
    %c0_118 = arith.constant 0 : index
    %c0_119 = arith.constant 0 : index
    %161 = vector.load %arg2[%c5_117, %c0_118, %c0_119] : memref<9x1x128xf32, #tpu.memory_space<vmem>>, vector<1x1x128xf32>
    %162 = vector.shape_cast %161 : vector<1x1x128xf32> to vector<1x128xf32>
    %163 = vector.broadcast %162 : vector<1x128xf32> to vector<64x128xf32>
    %164 = arith.mulf %160, %163 : vector<64x128xf32>
    %c5_120 = arith.constant 5 : index
    %c0_121 = arith.constant 0 : index
    %c0_122 = arith.constant 0 : index
    %165 = vector.load %arg5[%c5_120, %c0_121, %c0_122] : memref<9x64x64xbf16, #tpu.memory_space<vmem>>, vector<1x64x64xbf16>
    %166 = vector.shape_cast %165 : vector<1x64x64xbf16> to vector<64x64xbf16>
    %167 = arith.truncf %164 : vector<64x128xf32> to vector<64x128xbf16>
    %cst_123 = arith.constant dense<0.000000e+00> : vector<64x128xf32>
    %168 = tpu.matmul %166, %167, %cst_123 {dimension_numbers = #tpu.dot_dimension_numbers<[1], [0], [0], [1], [0, 0, 1, 1], [], []>} : vector<64x64xbf16>, vector<64x128xbf16>, vector<64x128xf32> -> vector<64x128xf32>
    %169 = arith.addf %159, %168 : vector<64x128xf32>
    %c121_i32_124 = arith.constant 121 : i32
    %170 = tpu.dynamic_rotate %115 by %c121_i32_124 dim 1 : vector<64x128xf32>, i32 -> vector<64x128xf32>
    %c6_125 = arith.constant 6 : index
    %c0_126 = arith.constant 0 : index
    %c0_127 = arith.constant 0 : index
    %171 = vector.load %arg2[%c6_125, %c0_126, %c0_127] : memref<9x1x128xf32, #tpu.memory_space<vmem>>, vector<1x1x128xf32>
    %172 = vector.shape_cast %171 : vector<1x1x128xf32> to vector<1x128xf32>
    %173 = vector.broadcast %172 : vector<1x128xf32> to vector<64x128xf32>
    %174 = arith.mulf %170, %173 : vector<64x128xf32>
    %c6_128 = arith.constant 6 : index
    %c0_129 = arith.constant 0 : index
    %c0_130 = arith.constant 0 : index
    %175 = vector.load %arg5[%c6_128, %c0_129, %c0_130] : memref<9x64x64xbf16, #tpu.memory_space<vmem>>, vector<1x64x64xbf16>
    %176 = vector.shape_cast %175 : vector<1x64x64xbf16> to vector<64x64xbf16>
    %177 = arith.truncf %174 : vector<64x128xf32> to vector<64x128xbf16>
    %cst_131 = arith.constant dense<0.000000e+00> : vector<64x128xf32>
    %178 = tpu.matmul %176, %177, %cst_131 {dimension_numbers = #tpu.dot_dimension_numbers<[1], [0], [0], [1], [0, 0, 1, 1], [], []>} : vector<64x64xbf16>, vector<64x128xbf16>, vector<64x128xf32> -> vector<64x128xf32>
    %179 = arith.addf %169, %178 : vector<64x128xf32>
    %c120_i32_132 = arith.constant 120 : i32
    %180 = tpu.dynamic_rotate %115 by %c120_i32_132 dim 1 : vector<64x128xf32>, i32 -> vector<64x128xf32>
    %c7_133 = arith.constant 7 : index
    %c0_134 = arith.constant 0 : index
    %c0_135 = arith.constant 0 : index
    %181 = vector.load %arg2[%c7_133, %c0_134, %c0_135] : memref<9x1x128xf32, #tpu.memory_space<vmem>>, vector<1x1x128xf32>
    %182 = vector.shape_cast %181 : vector<1x1x128xf32> to vector<1x128xf32>
    %183 = vector.broadcast %182 : vector<1x128xf32> to vector<64x128xf32>
    %184 = arith.mulf %180, %183 : vector<64x128xf32>
    %c7_136 = arith.constant 7 : index
    %c0_137 = arith.constant 0 : index
    %c0_138 = arith.constant 0 : index
    %185 = vector.load %arg5[%c7_136, %c0_137, %c0_138] : memref<9x64x64xbf16, #tpu.memory_space<vmem>>, vector<1x64x64xbf16>
    %186 = vector.shape_cast %185 : vector<1x64x64xbf16> to vector<64x64xbf16>
    %187 = arith.truncf %184 : vector<64x128xf32> to vector<64x128xbf16>
    %cst_139 = arith.constant dense<0.000000e+00> : vector<64x128xf32>
    %188 = tpu.matmul %186, %187, %cst_139 {dimension_numbers = #tpu.dot_dimension_numbers<[1], [0], [0], [1], [0, 0, 1, 1], [], []>} : vector<64x64xbf16>, vector<64x128xbf16>, vector<64x128xf32> -> vector<64x128xf32>
    %189 = arith.addf %179, %188 : vector<64x128xf32>
    %c119_i32_140 = arith.constant 119 : i32
    %190 = tpu.dynamic_rotate %115 by %c119_i32_140 dim 1 : vector<64x128xf32>, i32 -> vector<64x128xf32>
    %c8_141 = arith.constant 8 : index
    %c0_142 = arith.constant 0 : index
    %c0_143 = arith.constant 0 : index
    %191 = vector.load %arg2[%c8_141, %c0_142, %c0_143] : memref<9x1x128xf32, #tpu.memory_space<vmem>>, vector<1x1x128xf32>
    %192 = vector.shape_cast %191 : vector<1x1x128xf32> to vector<1x128xf32>
    %193 = vector.broadcast %192 : vector<1x128xf32> to vector<64x128xf32>
    %194 = arith.mulf %190, %193 : vector<64x128xf32>
    %c8_144 = arith.constant 8 : index
    %c0_145 = arith.constant 0 : index
    %c0_146 = arith.constant 0 : index
    %195 = vector.load %arg5[%c8_144, %c0_145, %c0_146] : memref<9x64x64xbf16, #tpu.memory_space<vmem>>, vector<1x64x64xbf16>
    %196 = vector.shape_cast %195 : vector<1x64x64xbf16> to vector<64x64xbf16>
    %197 = arith.truncf %194 : vector<64x128xf32> to vector<64x128xbf16>
    %cst_147 = arith.constant dense<0.000000e+00> : vector<64x128xf32>
    %198 = tpu.matmul %196, %197, %cst_147 {dimension_numbers = #tpu.dot_dimension_numbers<[1], [0], [0], [1], [0, 0, 1, 1], [], []>} : vector<64x64xbf16>, vector<64x128xbf16>, vector<64x128xf32> -> vector<64x128xf32>
    %199 = arith.addf %189, %198 : vector<64x128xf32>
    %c0_148 = arith.constant 0 : index
    %c0_149 = arith.constant 0 : index
    %200 = vector.load %arg6[%c0_148, %c0_149] : memref<64x1xf32, #tpu.memory_space<vmem>>, vector<64x1xf32>
    %201 = vector.broadcast %200 : vector<64x1xf32> to vector<64x128xf32>
    %202 = arith.addf %199, %201 : vector<64x128xf32>
    %203 = arith.addf %202, %26 : vector<64x128xf32>
    %cst_150 = arith.constant 0.000000e+00 : f32
    %204 = vector.broadcast %cst_150 : f32 to vector<64x128xf32>
    %205 = arith.maximumf %203, %204 : vector<64x128xf32>
    %206 = arith.truncf %205 : vector<64x128xf32> to vector<64x128xbf16>
    %c0_151 = arith.constant 0 : index
    %c0_152 = arith.constant 0 : index
    %207 = vector.load %arg7[%c0_151, %c0_152] : memref<64x128xbf16, #tpu.memory_space<vmem>>, vector<64x128xbf16>
    tpu.vector_store %arg7[%c0_151, %c0_152], %206 {strides = array<i32>} : memref<64x128xbf16, #tpu.memory_space<vmem>>, vector<64x128xbf16>,
    return
  }
  func.func @transform_0(%arg0: i32) -> (i32, i32, i32) {
    %c0_i32 = arith.constant 0 : i32
    %c0_i32_0 = arith.constant 0 : i32
    %c0_i32_1 = arith.constant 0 : i32
    return %c0_i32, %c0_i32_0, %arg0 : i32, i32, i32
  }
  func.func @transform_1(%arg0: i32) -> (i32, i32, i32) {
    %c0_i32 = arith.constant 0 : i32
    %c0_i32_0 = arith.constant 0 : i32
    %c0_i32_1 = arith.constant 0 : i32
    return %c0_i32, %c0_i32_0, %arg0 : i32, i32, i32
  }
  func.func @transform_2(%arg0: i32) -> (i32, i32, i32) {
    %c0_i32 = arith.constant 0 : i32
    %c0_i32_0 = arith.constant 0 : i32
    %c0_i32_1 = arith.constant 0 : i32
    %c0_i32_2 = arith.constant 0 : i32
    return %c0_i32, %c0_i32_0, %c0_i32_1 : i32, i32, i32
  }
  func.func @transform_3(%arg0: i32) -> (i32, i32) {
    %c0_i32 = arith.constant 0 : i32
    %c0_i32_0 = arith.constant 0 : i32
    %c0_i32_1 = arith.constant 0 : i32
    return %c0_i32, %c0_i32_0 : i32, i32
  }
  func.func @transform_4(%arg0: i32) -> (i32, i32, i32) {
    %c0_i32 = arith.constant 0 : i32
    %c0_i32_0 = arith.constant 0 : i32
    %c0_i32_1 = arith.constant 0 : i32
    %c0_i32_2 = arith.constant 0 : i32
    return %c0_i32, %c0_i32_0, %c0_i32_1 : i32, i32, i32
  }
  func.func @transform_5(%arg0: i32) -> (i32, i32) {
    %c0_i32 = arith.constant 0 : i32
    %c0_i32_0 = arith.constant 0 : i32
    %c0_i32_1 = arith.constant 0 : i32
    return %c0_i32, %c0_i32_0 : i32, i32
  }
  func.func @transform_6(%arg0: i32) -> (i32, i32) {
    %c0_i32 = arith.constant 0 : i32
    %c0_i32_0 = arith.constant 0 : i32
    return %c0_i32, %arg0 : i32, i32
  }
}

module attributes {stable_mosaic.version = 11 : i64} {
  func.func @kernel(%arg0: i32, %arg1: memref<1x64x128xbf16, #tpu.memory_space<vmem>>, %arg2: memref<9x1x128xf32, #tpu.memory_space<vmem>>, %arg3: memref<9x64x64xbf16, #tpu.memory_space<vmem>>, %arg4: memref<64x1xf32, #tpu.memory_space<vmem>>, %arg5: memref<9x64x64xbf16, #tpu.memory_space<vmem>>, %arg6: memref<64x1xf32, #tpu.memory_space<vmem>>, %arg7: memref<64x128xbf16, #tpu.memory_space<vmem>>) attributes {dimension_semantics = [#tpu.dimension_semantics<parallel>], iteration_bounds = array<i64: 1>, scalar_prefetch = 0 : i64, scratch_operands = 0 : i64, tpu.core_type = #tpu.core_type<tc>, window_params = [{transform_indices = @transform_0, window_bounds = array<i64: 1, 64, 128>}, {transform_indices = @transform_1, window_bounds = array<i64: 9, 1, 128>}, {pipeline_mode = #tpu.pipeline_mode<synchronous>, transform_indices = @transform_2, window_bounds = array<i64: 9, 64, 64>}, {pipeline_mode = #tpu.pipeline_mode<synchronous>, transform_indices = @transform_3, window_bounds = array<i64: 64, 1>}, {pipeline_mode = #tpu.pipeline_mode<synchronous>, transform_indices = @transform_4, window_bounds = array<i64: 9, 64, 64>}, {pipeline_mode = #tpu.pipeline_mode<synchronous>, transform_indices = @transform_5, window_bounds = array<i64: 64, 1>}, {transform_indices = @transform_6, window_bounds = array<i64: 64, 128>}]} {
    %c0 = arith.constant 0 : index
    %c0_0 = arith.constant 0 : index
    %c0_1 = arith.constant 0 : index
    %0 = vector.load %arg1[%c0, %c0_0, %c0_1] : memref<1x64x128xbf16, #tpu.memory_space<vmem>>, vector<1x64x128xbf16>
    %1 = vector.shape_cast %0 : vector<1x64x128xbf16> to vector<64x128xbf16>
    %2 = arith.extf %1 : vector<64x128xbf16> to vector<64x128xf32>
    %c9_i32 = arith.constant 9 : i32
    %3 = tpu.dynamic_rotate %2 by %c9_i32 dim 1 : vector<64x128xf32>, i32 -> vector<64x128xf32>
    %c0_2 = arith.constant 0 : index
    %c0_3 = arith.constant 0 : index
    %c0_4 = arith.constant 0 : index
    %4 = vector.load %arg2[%c0_2, %c0_3, %c0_4] : memref<9x1x128xf32, #tpu.memory_space<vmem>>, vector<1x1x128xf32>
    %5 = vector.shape_cast %4 : vector<1x1x128xf32> to vector<1x128xf32>
    %6 = vector.broadcast %5 : vector<1x128xf32> to vector<64x128xf32>
    %7 = arith.mulf %3, %6 : vector<64x128xf32>
    %c0_5 = arith.constant 0 : index
    %c0_6 = arith.constant 0 : index
    %c0_7 = arith.constant 0 : index
    %8 = vector.load %arg3[%c0_5, %c0_6, %c0_7] : memref<9x64x64xbf16, #tpu.memory_space<vmem>>, vector<1x64x64xbf16>
    %9 = vector.shape_cast %8 : vector<1x64x64xbf16> to vector<64x64xbf16>
    %10 = arith.truncf %7 : vector<64x128xf32> to vector<64x128xbf16>
    %cst = arith.constant dense<0.000000e+00> : vector<64x128xf32>
    %11 = tpu.matmul %9, %10, %cst {dimension_numbers = #tpu.dot_dimension_numbers<[1], [0], [0], [1], [0, 0, 1, 1], [], []>} : vector<64x64xbf16>, vector<64x128xbf16>, vector<64x128xf32> -> vector<64x128xf32>
    %c8_i32 = arith.constant 8 : i32
    %12 = tpu.dynamic_rotate %2 by %c8_i32 dim 1 : vector<64x128xf32>, i32 -> vector<64x128xf32>
    %c1 = arith.constant 1 : index
    %c0_8 = arith.constant 0 : index
    %c0_9 = arith.constant 0 : index
    %13 = vector.load %arg2[%c1, %c0_8, %c0_9] : memref<9x1x128xf32, #tpu.memory_space<vmem>>, vector<1x1x128xf32>
    %14 = vector.shape_cast %13 : vector<1x1x128xf32> to vector<1x128xf32>
    %15 = vector.broadcast %14 : vector<1x128xf32> to vector<64x128xf32>
    %16 = arith.mulf %12, %15 : vector<64x128xf32>
    %c1_10 = arith.constant 1 : index
    %c0_11 = arith.constant 0 : index
    %c0_12 = arith.constant 0 : index
    %17 = vector.load %arg3[%c1_10, %c0_11, %c0_12] : memref<9x64x64xbf16, #tpu.memory_space<vmem>>, vector<1x64x64xbf16>
    %18 = vector.shape_cast %17 : vector<1x64x64xbf16> to vector<64x64xbf16>
    %19 = arith.truncf %16 : vector<64x128xf32> to vector<64x128xbf16>
    %cst_13 = arith.constant dense<0.000000e+00> : vector<64x128xf32>
    %20 = tpu.matmul %18, %19, %cst_13 {dimension_numbers = #tpu.dot_dimension_numbers<[1], [0], [0], [1], [0, 0, 1, 1], [], []>} : vector<64x64xbf16>, vector<64x128xbf16>, vector<64x128xf32> -> vector<64x128xf32>
    %21 = arith.addf %11, %20 : vector<64x128xf32>
    %c7_i32 = arith.constant 7 : i32
    %22 = tpu.dynamic_rotate %2 by %c7_i32 dim 1 : vector<64x128xf32>, i32 -> vector<64x128xf32>
    %c2 = arith.constant 2 : index
    %c0_14 = arith.constant 0 : index
    %c0_15 = arith.constant 0 : index
    %23 = vector.load %arg2[%c2, %c0_14, %c0_15] : memref<9x1x128xf32, #tpu.memory_space<vmem>>, vector<1x1x128xf32>
    %24 = vector.shape_cast %23 : vector<1x1x128xf32> to vector<1x128xf32>
    %25 = vector.broadcast %24 : vector<1x128xf32> to vector<64x128xf32>
    %26 = arith.mulf %22, %25 : vector<64x128xf32>
    %c2_16 = arith.constant 2 : index
    %c0_17 = arith.constant 0 : index
    %c0_18 = arith.constant 0 : index
    %27 = vector.load %arg3[%c2_16, %c0_17, %c0_18] : memref<9x64x64xbf16, #tpu.memory_space<vmem>>, vector<1x64x64xbf16>
    %28 = vector.shape_cast %27 : vector<1x64x64xbf16> to vector<64x64xbf16>
    %29 = arith.truncf %26 : vector<64x128xf32> to vector<64x128xbf16>
    %cst_19 = arith.constant dense<0.000000e+00> : vector<64x128xf32>
    %30 = tpu.matmul %28, %29, %cst_19 {dimension_numbers = #tpu.dot_dimension_numbers<[1], [0], [0], [1], [0, 0, 1, 1], [], []>} : vector<64x64xbf16>, vector<64x128xbf16>, vector<64x128xf32> -> vector<64x128xf32>
    %31 = arith.addf %21, %30 : vector<64x128xf32>
    %c1_i32 = arith.constant 1 : i32
    %32 = tpu.dynamic_rotate %2 by %c1_i32 dim 1 : vector<64x128xf32>, i32 -> vector<64x128xf32>
    %c3 = arith.constant 3 : index
    %c0_20 = arith.constant 0 : index
    %c0_21 = arith.constant 0 : index
    %33 = vector.load %arg2[%c3, %c0_20, %c0_21] : memref<9x1x128xf32, #tpu.memory_space<vmem>>, vector<1x1x128xf32>
    %34 = vector.shape_cast %33 : vector<1x1x128xf32> to vector<1x128xf32>
    %35 = vector.broadcast %34 : vector<1x128xf32> to vector<64x128xf32>
    %36 = arith.mulf %32, %35 : vector<64x128xf32>
    %c3_22 = arith.constant 3 : index
    %c0_23 = arith.constant 0 : index
    %c0_24 = arith.constant 0 : index
    %37 = vector.load %arg3[%c3_22, %c0_23, %c0_24] : memref<9x64x64xbf16, #tpu.memory_space<vmem>>, vector<1x64x64xbf16>
    %38 = vector.shape_cast %37 : vector<1x64x64xbf16> to vector<64x64xbf16>
    %39 = arith.truncf %36 : vector<64x128xf32> to vector<64x128xbf16>
    %cst_25 = arith.constant dense<0.000000e+00> : vector<64x128xf32>
    %40 = tpu.matmul %38, %39, %cst_25 {dimension_numbers = #tpu.dot_dimension_numbers<[1], [0], [0], [1], [0, 0, 1, 1], [], []>} : vector<64x64xbf16>, vector<64x128xbf16>, vector<64x128xf32> -> vector<64x128xf32>
    %41 = arith.addf %31, %40 : vector<64x128xf32>
    %c4 = arith.constant 4 : index
    %c0_26 = arith.constant 0 : index
    %c0_27 = arith.constant 0 : index
    %42 = vector.load %arg3[%c4, %c0_26, %c0_27] : memref<9x64x64xbf16, #tpu.memory_space<vmem>>, vector<1x64x64xbf16>
    %43 = vector.shape_cast %42 : vector<1x64x64xbf16> to vector<64x64xbf16>
    %44 = arith.truncf %2 : vector<64x128xf32> to vector<64x128xbf16>
    %cst_28 = arith.constant dense<0.000000e+00> : vector<64x128xf32>
    %45 = tpu.matmul %43, %44, %cst_28 {dimension_numbers = #tpu.dot_dimension_numbers<[1], [0], [0], [1], [0, 0, 1, 1], [], []>} : vector<64x64xbf16>, vector<64x128xbf16>, vector<64x128xf32> -> vector<64x128xf32>
    %46 = arith.addf %41, %45 : vector<64x128xf32>
    %c127_i32 = arith.constant 127 : i32
    %47 = tpu.dynamic_rotate %2 by %c127_i32 dim 1 : vector<64x128xf32>, i32 -> vector<64x128xf32>
    %c5 = arith.constant 5 : index
    %c0_29 = arith.constant 0 : index
    %c0_30 = arith.constant 0 : index
    %48 = vector.load %arg2[%c5, %c0_29, %c0_30] : memref<9x1x128xf32, #tpu.memory_space<vmem>>, vector<1x1x128xf32>
    %49 = vector.shape_cast %48 : vector<1x1x128xf32> to vector<1x128xf32>
    %50 = vector.broadcast %49 : vector<1x128xf32> to vector<64x128xf32>
    %51 = arith.mulf %47, %50 : vector<64x128xf32>
    %c5_31 = arith.constant 5 : index
    %c0_32 = arith.constant 0 : index
    %c0_33 = arith.constant 0 : index
    %52 = vector.load %arg3[%c5_31, %c0_32, %c0_33] : memref<9x64x64xbf16, #tpu.memory_space<vmem>>, vector<1x64x64xbf16>
    %53 = vector.shape_cast %52 : vector<1x64x64xbf16> to vector<64x64xbf16>
    %54 = arith.truncf %51 : vector<64x128xf32> to vector<64x128xbf16>
    %cst_34 = arith.constant dense<0.000000e+00> : vector<64x128xf32>
    %55 = tpu.matmul %53, %54, %cst_34 {dimension_numbers = #tpu.dot_dimension_numbers<[1], [0], [0], [1], [0, 0, 1, 1], [], []>} : vector<64x64xbf16>, vector<64x128xbf16>, vector<64x128xf32> -> vector<64x128xf32>
    %56 = arith.addf %46, %55 : vector<64x128xf32>
    %c121_i32 = arith.constant 121 : i32
    %57 = tpu.dynamic_rotate %2 by %c121_i32 dim 1 : vector<64x128xf32>, i32 -> vector<64x128xf32>
    %c6 = arith.constant 6 : index
    %c0_35 = arith.constant 0 : index
    %c0_36 = arith.constant 0 : index
    %58 = vector.load %arg2[%c6, %c0_35, %c0_36] : memref<9x1x128xf32, #tpu.memory_space<vmem>>, vector<1x1x128xf32>
    %59 = vector.shape_cast %58 : vector<1x1x128xf32> to vector<1x128xf32>
    %60 = vector.broadcast %59 : vector<1x128xf32> to vector<64x128xf32>
    %61 = arith.mulf %57, %60 : vector<64x128xf32>
    %c6_37 = arith.constant 6 : index
    %c0_38 = arith.constant 0 : index
    %c0_39 = arith.constant 0 : index
    %62 = vector.load %arg3[%c6_37, %c0_38, %c0_39] : memref<9x64x64xbf16, #tpu.memory_space<vmem>>, vector<1x64x64xbf16>
    %63 = vector.shape_cast %62 : vector<1x64x64xbf16> to vector<64x64xbf16>
    %64 = arith.truncf %61 : vector<64x128xf32> to vector<64x128xbf16>
    %cst_40 = arith.constant dense<0.000000e+00> : vector<64x128xf32>
    %65 = tpu.matmul %63, %64, %cst_40 {dimension_numbers = #tpu.dot_dimension_numbers<[1], [0], [0], [1], [0, 0, 1, 1], [], []>} : vector<64x64xbf16>, vector<64x128xbf16>, vector<64x128xf32> -> vector<64x128xf32>
    %66 = arith.addf %56, %65 : vector<64x128xf32>
    %c120_i32 = arith.constant 120 : i32
    %67 = tpu.dynamic_rotate %2 by %c120_i32 dim 1 : vector<64x128xf32>, i32 -> vector<64x128xf32>
    %c7 = arith.constant 7 : index
    %c0_41 = arith.constant 0 : index
    %c0_42 = arith.constant 0 : index
    %68 = vector.load %arg2[%c7, %c0_41, %c0_42] : memref<9x1x128xf32, #tpu.memory_space<vmem>>, vector<1x1x128xf32>
    %69 = vector.shape_cast %68 : vector<1x1x128xf32> to vector<1x128xf32>
    %70 = vector.broadcast %69 : vector<1x128xf32> to vector<64x128xf32>
    %71 = arith.mulf %67, %70 : vector<64x128xf32>
    %c7_43 = arith.constant 7 : index
    %c0_44 = arith.constant 0 : index
    %c0_45 = arith.constant 0 : index
    %72 = vector.load %arg3[%c7_43, %c0_44, %c0_45] : memref<9x64x64xbf16, #tpu.memory_space<vmem>>, vector<1x64x64xbf16>
    %73 = vector.shape_cast %72 : vector<1x64x64xbf16> to vector<64x64xbf16>
    %74 = arith.truncf %71 : vector<64x128xf32> to vector<64x128xbf16>
    %cst_46 = arith.constant dense<0.000000e+00> : vector<64x128xf32>
    %75 = tpu.matmul %73, %74, %cst_46 {dimension_numbers = #tpu.dot_dimension_numbers<[1], [0], [0], [1], [0, 0, 1, 1], [], []>} : vector<64x64xbf16>, vector<64x128xbf16>, vector<64x128xf32> -> vector<64x128xf32>
    %76 = arith.addf %66, %75 : vector<64x128xf32>
    %c119_i32 = arith.constant 119 : i32
    %77 = tpu.dynamic_rotate %2 by %c119_i32 dim 1 : vector<64x128xf32>, i32 -> vector<64x128xf32>
    %c8 = arith.constant 8 : index
    %c0_47 = arith.constant 0 : index
    %c0_48 = arith.constant 0 : index
    %78 = vector.load %arg2[%c8, %c0_47, %c0_48] : memref<9x1x128xf32, #tpu.memory_space<vmem>>, vector<1x1x128xf32>
    %79 = vector.shape_cast %78 : vector<1x1x128xf32> to vector<1x128xf32>
    %80 = vector.broadcast %79 : vector<1x128xf32> to vector<64x128xf32>
    %81 = arith.mulf %77, %80 : vector<64x128xf32>
    %c8_49 = arith.constant 8 : index
    %c0_50 = arith.constant 0 : index
    %c0_51 = arith.constant 0 : index
    %82 = vector.load %arg3[%c8_49, %c0_50, %c0_51] : memref<9x64x64xbf16, #tpu.memory_space<vmem>>, vector<1x64x64xbf16>
    %83 = vector.shape_cast %82 : vector<1x64x64xbf16> to vector<64x64xbf16>
    %84 = arith.truncf %81 : vector<64x128xf32> to vector<64x128xbf16>
    %cst_52 = arith.constant dense<0.000000e+00> : vector<64x128xf32>
    %85 = tpu.matmul %83, %84, %cst_52 {dimension_numbers = #tpu.dot_dimension_numbers<[1], [0], [0], [1], [0, 0, 1, 1], [], []>} : vector<64x64xbf16>, vector<64x128xbf16>, vector<64x128xf32> -> vector<64x128xf32>
    %86 = arith.addf %76, %85 : vector<64x128xf32>
    %c0_53 = arith.constant 0 : index
    %c0_54 = arith.constant 0 : index
    %87 = vector.load %arg4[%c0_53, %c0_54] : memref<64x1xf32, #tpu.memory_space<vmem>>, vector<64x1xf32>
    %88 = vector.broadcast %87 : vector<64x1xf32> to vector<64x128xf32>
    %89 = arith.addf %86, %88 : vector<64x128xf32>
    %cst_55 = arith.constant 0.000000e+00 : f32
    %90 = vector.broadcast %cst_55 : f32 to vector<64x128xf32>
    %91 = arith.maximumf %89, %90 : vector<64x128xf32>
    %c9_i32_56 = arith.constant 9 : i32
    %92 = tpu.dynamic_rotate %91 by %c9_i32_56 dim 1 : vector<64x128xf32>, i32 -> vector<64x128xf32>
    %c0_57 = arith.constant 0 : index
    %c0_58 = arith.constant 0 : index
    %c0_59 = arith.constant 0 : index
    %93 = vector.load %arg2[%c0_57, %c0_58, %c0_59] : memref<9x1x128xf32, #tpu.memory_space<vmem>>, vector<1x1x128xf32>
    %94 = vector.shape_cast %93 : vector<1x1x128xf32> to vector<1x128xf32>
    %95 = vector.broadcast %94 : vector<1x128xf32> to vector<64x128xf32>
    %96 = arith.mulf %92, %95 : vector<64x128xf32>
    %c0_60 = arith.constant 0 : index
    %c0_61 = arith.constant 0 : index
    %c0_62 = arith.constant 0 : index
    %97 = vector.load %arg5[%c0_60, %c0_61, %c0_62] : memref<9x64x64xbf16, #tpu.memory_space<vmem>>, vector<1x64x64xbf16>
    %98 = vector.shape_cast %97 : vector<1x64x64xbf16> to vector<64x64xbf16>
    %99 = arith.truncf %96 : vector<64x128xf32> to vector<64x128xbf16>
    %cst_63 = arith.constant dense<0.000000e+00> : vector<64x128xf32>
    %100 = tpu.matmul %98, %99, %cst_63 {dimension_numbers = #tpu.dot_dimension_numbers<[1], [0], [0], [1], [0, 0, 1, 1], [], []>} : vector<64x64xbf16>, vector<64x128xbf16>, vector<64x128xf32> -> vector<64x128xf32>
    %c8_i32_64 = arith.constant 8 : i32
    %101 = tpu.dynamic_rotate %91 by %c8_i32_64 dim 1 : vector<64x128xf32>, i32 -> vector<64x128xf32>
    %c1_65 = arith.constant 1 : index
    %c0_66 = arith.constant 0 : index
    %c0_67 = arith.constant 0 : index
    %102 = vector.load %arg2[%c1_65, %c0_66, %c0_67] : memref<9x1x128xf32, #tpu.memory_space<vmem>>, vector<1x1x128xf32>
    %103 = vector.shape_cast %102 : vector<1x1x128xf32> to vector<1x128xf32>
    %104 = vector.broadcast %103 : vector<1x128xf32> to vector<64x128xf32>
    %105 = arith.mulf %101, %104 : vector<64x128xf32>
    %c1_68 = arith.constant 1 : index
    %c0_69 = arith.constant 0 : index
    %c0_70 = arith.constant 0 : index
    %106 = vector.load %arg5[%c1_68, %c0_69, %c0_70] : memref<9x64x64xbf16, #tpu.memory_space<vmem>>, vector<1x64x64xbf16>
    %107 = vector.shape_cast %106 : vector<1x64x64xbf16> to vector<64x64xbf16>
    %108 = arith.truncf %105 : vector<64x128xf32> to vector<64x128xbf16>
    %cst_71 = arith.constant dense<0.000000e+00> : vector<64x128xf32>
    %109 = tpu.matmul %107, %108, %cst_71 {dimension_numbers = #tpu.dot_dimension_numbers<[1], [0], [0], [1], [0, 0, 1, 1], [], []>} : vector<64x64xbf16>, vector<64x128xbf16>, vector<64x128xf32> -> vector<64x128xf32>
    %110 = arith.addf %100, %109 : vector<64x128xf32>
    %c7_i32_72 = arith.constant 7 : i32
    %111 = tpu.dynamic_rotate %91 by %c7_i32_72 dim 1 : vector<64x128xf32>, i32 -> vector<64x128xf32>
    %c2_73 = arith.constant 2 : index
    %c0_74 = arith.constant 0 : index
    %c0_75 = arith.constant 0 : index
    %112 = vector.load %arg2[%c2_73, %c0_74, %c0_75] : memref<9x1x128xf32, #tpu.memory_space<vmem>>, vector<1x1x128xf32>
    %113 = vector.shape_cast %112 : vector<1x1x128xf32> to vector<1x128xf32>
    %114 = vector.broadcast %113 : vector<1x128xf32> to vector<64x128xf32>
    %115 = arith.mulf %111, %114 : vector<64x128xf32>
    %c2_76 = arith.constant 2 : index
    %c0_77 = arith.constant 0 : index
    %c0_78 = arith.constant 0 : index
    %116 = vector.load %arg5[%c2_76, %c0_77, %c0_78] : memref<9x64x64xbf16, #tpu.memory_space<vmem>>, vector<1x64x64xbf16>
    %117 = vector.shape_cast %116 : vector<1x64x64xbf16> to vector<64x64xbf16>
    %118 = arith.truncf %115 : vector<64x128xf32> to vector<64x128xbf16>
    %cst_79 = arith.constant dense<0.000000e+00> : vector<64x128xf32>
    %119 = tpu.matmul %117, %118, %cst_79 {dimension_numbers = #tpu.dot_dimension_numbers<[1], [0], [0], [1], [0, 0, 1, 1], [], []>} : vector<64x64xbf16>, vector<64x128xbf16>, vector<64x128xf32> -> vector<64x128xf32>
    %120 = arith.addf %110, %119 : vector<64x128xf32>
    %c1_i32_80 = arith.constant 1 : i32
    %121 = tpu.dynamic_rotate %91 by %c1_i32_80 dim 1 : vector<64x128xf32>, i32 -> vector<64x128xf32>
    %c3_81 = arith.constant 3 : index
    %c0_82 = arith.constant 0 : index
    %c0_83 = arith.constant 0 : index
    %122 = vector.load %arg2[%c3_81, %c0_82, %c0_83] : memref<9x1x128xf32, #tpu.memory_space<vmem>>, vector<1x1x128xf32>
    %123 = vector.shape_cast %122 : vector<1x1x128xf32> to vector<1x128xf32>
    %124 = vector.broadcast %123 : vector<1x128xf32> to vector<64x128xf32>
    %125 = arith.mulf %121, %124 : vector<64x128xf32>
    %c3_84 = arith.constant 3 : index
    %c0_85 = arith.constant 0 : index
    %c0_86 = arith.constant 0 : index
    %126 = vector.load %arg5[%c3_84, %c0_85, %c0_86] : memref<9x64x64xbf16, #tpu.memory_space<vmem>>, vector<1x64x64xbf16>
    %127 = vector.shape_cast %126 : vector<1x64x64xbf16> to vector<64x64xbf16>
    %128 = arith.truncf %125 : vector<64x128xf32> to vector<64x128xbf16>
    %cst_87 = arith.constant dense<0.000000e+00> : vector<64x128xf32>
    %129 = tpu.matmul %127, %128, %cst_87 {dimension_numbers = #tpu.dot_dimension_numbers<[1], [0], [0], [1], [0, 0, 1, 1], [], []>} : vector<64x64xbf16>, vector<64x128xbf16>, vector<64x128xf32> -> vector<64x128xf32>
    %130 = arith.addf %120, %129 : vector<64x128xf32>
    %c4_88 = arith.constant 4 : index
    %c0_89 = arith.constant 0 : index
    %c0_90 = arith.constant 0 : index
    %131 = vector.load %arg5[%c4_88, %c0_89, %c0_90] : memref<9x64x64xbf16, #tpu.memory_space<vmem>>, vector<1x64x64xbf16>
    %132 = vector.shape_cast %131 : vector<1x64x64xbf16> to vector<64x64xbf16>
    %133 = arith.truncf %91 : vector<64x128xf32> to vector<64x128xbf16>
    %cst_91 = arith.constant dense<0.000000e+00> : vector<64x128xf32>
    %134 = tpu.matmul %132, %133, %cst_91 {dimension_numbers = #tpu.dot_dimension_numbers<[1], [0], [0], [1], [0, 0, 1, 1], [], []>} : vector<64x64xbf16>, vector<64x128xbf16>, vector<64x128xf32> -> vector<64x128xf32>
    %135 = arith.addf %130, %134 : vector<64x128xf32>
    %c127_i32_92 = arith.constant 127 : i32
    %136 = tpu.dynamic_rotate %91 by %c127_i32_92 dim 1 : vector<64x128xf32>, i32 -> vector<64x128xf32>
    %c5_93 = arith.constant 5 : index
    %c0_94 = arith.constant 0 : index
    %c0_95 = arith.constant 0 : index
    %137 = vector.load %arg2[%c5_93, %c0_94, %c0_95] : memref<9x1x128xf32, #tpu.memory_space<vmem>>, vector<1x1x128xf32>
    %138 = vector.shape_cast %137 : vector<1x1x128xf32> to vector<1x128xf32>
    %139 = vector.broadcast %138 : vector<1x128xf32> to vector<64x128xf32>
    %140 = arith.mulf %136, %139 : vector<64x128xf32>
    %c5_96 = arith.constant 5 : index
    %c0_97 = arith.constant 0 : index
    %c0_98 = arith.constant 0 : index
    %141 = vector.load %arg5[%c5_96, %c0_97, %c0_98] : memref<9x64x64xbf16, #tpu.memory_space<vmem>>, vector<1x64x64xbf16>
    %142 = vector.shape_cast %141 : vector<1x64x64xbf16> to vector<64x64xbf16>
    %143 = arith.truncf %140 : vector<64x128xf32> to vector<64x128xbf16>
    %cst_99 = arith.constant dense<0.000000e+00> : vector<64x128xf32>
    %144 = tpu.matmul %142, %143, %cst_99 {dimension_numbers = #tpu.dot_dimension_numbers<[1], [0], [0], [1], [0, 0, 1, 1], [], []>} : vector<64x64xbf16>, vector<64x128xbf16>, vector<64x128xf32> -> vector<64x128xf32>
    %145 = arith.addf %135, %144 : vector<64x128xf32>
    %c121_i32_100 = arith.constant 121 : i32
    %146 = tpu.dynamic_rotate %91 by %c121_i32_100 dim 1 : vector<64x128xf32>, i32 -> vector<64x128xf32>
    %c6_101 = arith.constant 6 : index
    %c0_102 = arith.constant 0 : index
    %c0_103 = arith.constant 0 : index
    %147 = vector.load %arg2[%c6_101, %c0_102, %c0_103] : memref<9x1x128xf32, #tpu.memory_space<vmem>>, vector<1x1x128xf32>
    %148 = vector.shape_cast %147 : vector<1x1x128xf32> to vector<1x128xf32>
    %149 = vector.broadcast %148 : vector<1x128xf32> to vector<64x128xf32>
    %150 = arith.mulf %146, %149 : vector<64x128xf32>
    %c6_104 = arith.constant 6 : index
    %c0_105 = arith.constant 0 : index
    %c0_106 = arith.constant 0 : index
    %151 = vector.load %arg5[%c6_104, %c0_105, %c0_106] : memref<9x64x64xbf16, #tpu.memory_space<vmem>>, vector<1x64x64xbf16>
    %152 = vector.shape_cast %151 : vector<1x64x64xbf16> to vector<64x64xbf16>
    %153 = arith.truncf %150 : vector<64x128xf32> to vector<64x128xbf16>
    %cst_107 = arith.constant dense<0.000000e+00> : vector<64x128xf32>
    %154 = tpu.matmul %152, %153, %cst_107 {dimension_numbers = #tpu.dot_dimension_numbers<[1], [0], [0], [1], [0, 0, 1, 1], [], []>} : vector<64x64xbf16>, vector<64x128xbf16>, vector<64x128xf32> -> vector<64x128xf32>
    %155 = arith.addf %145, %154 : vector<64x128xf32>
    %c120_i32_108 = arith.constant 120 : i32
    %156 = tpu.dynamic_rotate %91 by %c120_i32_108 dim 1 : vector<64x128xf32>, i32 -> vector<64x128xf32>
    %c7_109 = arith.constant 7 : index
    %c0_110 = arith.constant 0 : index
    %c0_111 = arith.constant 0 : index
    %157 = vector.load %arg2[%c7_109, %c0_110, %c0_111] : memref<9x1x128xf32, #tpu.memory_space<vmem>>, vector<1x1x128xf32>
    %158 = vector.shape_cast %157 : vector<1x1x128xf32> to vector<1x128xf32>
    %159 = vector.broadcast %158 : vector<1x128xf32> to vector<64x128xf32>
    %160 = arith.mulf %156, %159 : vector<64x128xf32>
    %c7_112 = arith.constant 7 : index
    %c0_113 = arith.constant 0 : index
    %c0_114 = arith.constant 0 : index
    %161 = vector.load %arg5[%c7_112, %c0_113, %c0_114] : memref<9x64x64xbf16, #tpu.memory_space<vmem>>, vector<1x64x64xbf16>
    %162 = vector.shape_cast %161 : vector<1x64x64xbf16> to vector<64x64xbf16>
    %163 = arith.truncf %160 : vector<64x128xf32> to vector<64x128xbf16>
    %cst_115 = arith.constant dense<0.000000e+00> : vector<64x128xf32>
    %164 = tpu.matmul %162, %163, %cst_115 {dimension_numbers = #tpu.dot_dimension_numbers<[1], [0], [0], [1], [0, 0, 1, 1], [], []>} : vector<64x64xbf16>, vector<64x128xbf16>, vector<64x128xf32> -> vector<64x128xf32>
    %165 = arith.addf %155, %164 : vector<64x128xf32>
    %c119_i32_116 = arith.constant 119 : i32
    %166 = tpu.dynamic_rotate %91 by %c119_i32_116 dim 1 : vector<64x128xf32>, i32 -> vector<64x128xf32>
    %c8_117 = arith.constant 8 : index
    %c0_118 = arith.constant 0 : index
    %c0_119 = arith.constant 0 : index
    %167 = vector.load %arg2[%c8_117, %c0_118, %c0_119] : memref<9x1x128xf32, #tpu.memory_space<vmem>>, vector<1x1x128xf32>
    %168 = vector.shape_cast %167 : vector<1x1x128xf32> to vector<1x128xf32>
    %169 = vector.broadcast %168 : vector<1x128xf32> to vector<64x128xf32>
    %170 = arith.mulf %166, %169 : vector<64x128xf32>
    %c8_120 = arith.constant 8 : index
    %c0_121 = arith.constant 0 : index
    %c0_122 = arith.constant 0 : index
    %171 = vector.load %arg5[%c8_120, %c0_121, %c0_122] : memref<9x64x64xbf16, #tpu.memory_space<vmem>>, vector<1x64x64xbf16>
    %172 = vector.shape_cast %171 : vector<1x64x64xbf16> to vector<64x64xbf16>
    %173 = arith.truncf %170 : vector<64x128xf32> to vector<64x128xbf16>
    %cst_123 = arith.constant dense<0.000000e+00> : vector<64x128xf32>
    %174 = tpu.matmul %172, %173, %cst_123 {dimension_numbers = #tpu.dot_dimension_numbers<[1], [0], [0], [1], [0, 0, 1, 1], [], []>} : vector<64x64xbf16>, vector<64x128xbf16>, vector<64x128xf32> -> vector<64x128xf32>
    %175 = arith.addf %165, %174 : vector<64x128xf32>
    %c0_124 = arith.constant 0 : index
    %c0_125 = arith.constant 0 : index
    %176 = vector.load %arg6[%c0_124, %c0_125] : memref<64x1xf32, #tpu.memory_space<vmem>>, vector<64x1xf32>
    %177 = vector.broadcast %176 : vector<64x1xf32> to vector<64x128xf32>
    %178 = arith.addf %175, %177 : vector<64x128xf32>
    %179 = arith.addf %178, %2 : vector<64x128xf32>
    %cst_126 = arith.constant 0.000000e+00 : f32
    %180 = vector.broadcast %cst_126 : f32 to vector<64x128xf32>
    %181 = arith.maximumf %179, %180 : vector<64x128xf32>
    %182 = arith.truncf %181 : vector<64x128xf32> to vector<64x128xbf16>
    %c0_127 = arith.constant 0 : index
    %c0_128 = arith.constant 0 : index
    %183 = vector.load %arg7[%c0_127, %c0_128] : memref<64x128xbf16, #tpu.memory_space<vmem>>, vector<64x128xbf16>
    tpu.vector_store %arg7[%c0_127, %c0_128], %182 {strides = array<i32>} : memref<64x128xbf16, #tpu.memory_space<vmem>>, vector<64x128xbf16>,
    return
  }
  func.func @transform_0(%arg0: i32) -> (i32, i32, i32) {
    %c0_i32 = arith.constant 0 : i32
    %c0_i32_0 = arith.constant 0 : i32
    %c0_i32_1 = arith.constant 0 : i32
    return %c0_i32, %c0_i32_0, %arg0 : i32, i32, i32
  }
  func.func @transform_1(%arg0: i32) -> (i32, i32, i32) {
    %c0_i32 = arith.constant 0 : i32
    %c0_i32_0 = arith.constant 0 : i32
    %c0_i32_1 = arith.constant 0 : i32
    return %c0_i32, %c0_i32_0, %arg0 : i32, i32, i32
  }
  func.func @transform_2(%arg0: i32) -> (i32, i32, i32) {
    %c0_i32 = arith.constant 0 : i32
    %c0_i32_0 = arith.constant 0 : i32
    %c0_i32_1 = arith.constant 0 : i32
    %c0_i32_2 = arith.constant 0 : i32
    return %c0_i32, %c0_i32_0, %c0_i32_1 : i32, i32, i32
  }
  func.func @transform_3(%arg0: i32) -> (i32, i32) {
    %c0_i32 = arith.constant 0 : i32
    %c0_i32_0 = arith.constant 0 : i32
    %c0_i32_1 = arith.constant 0 : i32
    return %c0_i32, %c0_i32_0 : i32, i32
  }
  func.func @transform_4(%arg0: i32) -> (i32, i32, i32) {
    %c0_i32 = arith.constant 0 : i32
    %c0_i32_0 = arith.constant 0 : i32
    %c0_i32_1 = arith.constant 0 : i32
    %c0_i32_2 = arith.constant 0 : i32
    return %c0_i32, %c0_i32_0, %c0_i32_1 : i32, i32, i32
  }
  func.func @transform_5(%arg0: i32) -> (i32, i32) {
    %c0_i32 = arith.constant 0 : i32
    %c0_i32_0 = arith.constant 0 : i32
    %c0_i32_1 = arith.constant 0 : i32
    return %c0_i32, %c0_i32_0 : i32, i32
  }
  func.func @transform_6(%arg0: i32) -> (i32, i32) {
    %c0_i32 = arith.constant 0 : i32
    %c0_i32_0 = arith.constant 0 : i32
    return %c0_i32, %arg0 : i32, i32
  }
}

</mosaic_0001>

<bundles_post_ra>
// kernel: resnet_exit1_part1l_forward.3
= control target key start
LH: loop header
LB: loop body
LE: loop exit
PB: predicated region body
PF: predicated region fallthrough
CT: control target
= control target key end

     0   :  { %s976_s12 = smov 0   ;;  %s978_s13 = smov 0   ;;  %s1176_s0 = inlined_call_operand.vmem [shape: bf16[64,160], index: 0, kind: input, shape index: {}]   ;;  %s1177_s1 = inlined_call_operand.vmem [shape: bf16[160,512], index: 1, kind: input, shape index: {}]   ;;  %s1178_s2 = inlined_call_operand.vmem [shape: f32[64,1], index: 2, kind: input, shape index: {}]   ;;  %s1179_s3 = inlined_call_operand.vmem [shape: bf16[64,512], index: 3, kind: output, shape index: {}]  }
   0x1   :  { %s980_s14 = smov 0  }
   0x2 LB: > { %s777_s15 = sadd.s32 4294967295, %s953_s14   ;;  %s993_s16 = sadd.s32 1, %s953_s14   ;;  %s953_s14 = sphi %s980_s14, %s1183_s14   ;;  %s949_s13 = sphi %s978_s13, %s1182_s13   ;;  %s945_s12 = sphi %s976_s12, %s1181_s12  }
   0x3   : > { %s38_s17 = ssub.s32 %s953_s14, %s993_s16  ;;  %s41_s18 = sadd.s32 1, %s949_s13 }
   0x4   : > { %p39_p0 = scmp.eq.s32.totalorder %s38_s17, 0  ;;  %p48_p1 = scmp.ne.s32.totalorder %s949_s13, %s945_s12 }
   0x5   : > { %p49_p2 = scmp.eq.s32.totalorder %s953_s14, 0  ;;  %p99_p3 = scmp.eq.s32.totalorder %s777_s15, 1 }
   0x6   : > { %s1004_s19 = scalar_select %p39_p0, %s949_s13, %s41_s18  }
   0x7   : > { %p50_p4 = por %p49_p2, %p48_p1  ;;  %p1006_p5 = por %p99_p3, %p48_p1 }
   0x8   : > { %p780_p6 = scmp.ge.s32.totalorder %s953_s14, 2 }
   0xa   : > { %127 = sbr.rel (%p780_p6) target bundleno = 29 (0x1d), region = 24 }
   0xf   : > { %130 = sbr.rel (!%p50_p4) target bundleno = 29 (0x1d), region = 28  ;;  %s132_s21 = sand.u32 (%p50_p4), 1, %s949_s13  }
  0x10   : > { %s830_s22 = sshll.u32 (%p50_p4), %s953_s14, 3  ;;  %s860_s23 = smul.u32 (%p50_p4), 160, %s132_s21 }
  0x11   : > { %s1016_s26 = scalar_lea.vmem (%p50_p4), %s1177_s1, %s830_s22 }
  0x12   : > { %v204_v0 = vld [vmem:[%s1016_s26] sm:$0xff] (%p50_p4)  ;;  %v206_v1 = vld [vmem:[%s1016_s26 + $0x10] sm:$0xff] (%p50_p4)  ;;  %s1024_s27 = scalar_lea.vmem (%p50_p4), [#allocation2], %s860_s23 }
  0x13   : > { %v208_v2 = vld [vmem:[%s1016_s26 + $0x20] sm:$0xff] (%p50_p4)  ;;  %v210_v3 = vld [vmem:[%s1016_s26 + $0x30] sm:$0xff] (%p50_p4)  ;;  %205 = vst [vmem:[%s1024_s27] sm:$0xff] (%p50_p4), %v204_v0  ;;  %207 = vst [vmem:[%s1024_s27 + $0x8] sm:$0xff] (%p50_p4), %v206_v1 }
  0x14   : > { %v212_v4 = vld [vmem:[%s1016_s26 + $0x40] sm:$0xff]  ;;  %v214_v5 = vld [vmem:[%s1016_s26 + $0x50] sm:$0xff]  ;;  %209 = vst [vmem:[%s1024_s27 + $0x10] sm:$0xff] %v208_v2  ;;  %211 = vst [vmem:[%s1024_s27 + $0x18] sm:$0xff] %v210_v3 }
  0x15   : > { %213 = vst [vmem:[%s1024_s27 + $0x20] sm:$0xff] %v212_v4  ;;  %215 = vst [vmem:[%s1024_s27 + $0x28] sm:$0xff] %v214_v5  ;;  %v216_v6 = vld [vmem:[%s1016_s26 + $0x60] sm:$0xff]  ;;  %v218_v7 = vld [vmem:[%s1016_s26 + $0x70] sm:$0xff] }
  0x16   : > { %v220_v8 = vld [vmem:[%s1016_s26 + $0x80] sm:$0xff]  ;;  %217 = vst [vmem:[%s1024_s27 + $0x30] sm:$0xff] %v216_v6  ;;  %219 = vst [vmem:[%s1024_s27 + $0x38] sm:$0xff] %v218_v7  ;;  %v222_v9 = vld [vmem:[%s1016_s26 + $0x90] sm:$0xff] }
  0x17   : > { %221 = vst [vmem:[%s1024_s27 + $0x40] sm:$0xff] %v220_v8  ;;  %v224_v10 = vld [vmem:[%s1016_s26 + $0xa0] sm:$0xff]  ;;  %v226_v11 = vld [vmem:[%s1016_s26 + $0xb0] sm:$0xff]  ;;  %223 = vst [vmem:[%s1024_s27 + $0x48] sm:$0xff] %v222_v9 }
  0x18   : > { %225 = vst [vmem:[%s1024_s27 + $0x50] sm:$0xff] %v224_v10  ;;  %227 = vst [vmem:[%s1024_s27 + $0x58] sm:$0xff] %v226_v11  ;;  %v228_v12 = vld [vmem:[%s1016_s26 + $0xc0] sm:$0xff]  ;;  %v230_v13 = vld [vmem:[%s1016_s26 + $0xd0] sm:$0xff] }
  0x19   : > { %v232_v14 = vld [vmem:[%s1016_s26 + $0xe0] sm:$0xff]  ;;  %229 = vst [vmem:[%s1024_s27 + $0x60] sm:$0xff] %v228_v12  ;;  %231 = vst [vmem:[%s1024_s27 + $0x68] sm:$0xff] %v230_v13  ;;  %v234_v15 = vld [vmem:[%s1016_s26 + $0xf0] sm:$0xff] }
  0x1a   : > { %233 = vst [vmem:[%s1024_s27 + $0x70] sm:$0xff] %v232_v14  ;;  %v236_v16 = vld [vmem:[%s1016_s26 + $0x100] sm:$0xff]  ;;  %v238_v17 = vld [vmem:[%s1016_s26 + $0x110] sm:$0xff]  ;;  %235 = vst [vmem:[%s1024_s27 + $0x78] sm:$0xff] %v234_v15 }
  0x1b   : > { %237 = vst [vmem:[%s1024_s27 + $0x80] sm:$0xff] %v236_v16  ;;  %239 = vst [vmem:[%s1024_s27 + $0x88] sm:$0xff] %v238_v17  ;;  %v240_v18 = vld [vmem:[%s1016_s26 + $0x120] sm:$0xff]  ;;  %v242_v19 = vld [vmem:[%s1016_s26 + $0x130] sm:$0xff] }
  0x1c   : > { %241 = vst [vmem:[%s1024_s27 + $0x90] sm:$0xff] %v240_v18  ;;  %243 = vst [vmem:[%s1024_s27 + $0x98] sm:$0xff] %v242_v19 }
  0x1d PF: > { %p783_p7 = scmp.ge.s32.totalorder %s953_s14, 1  ;;  %p248_p8 = scmp.lt.s32.totalorder %s953_s14, 3 }
  0x1f   : > { %p249_p9 = pnand %p783_p7, %p248_p8 }
  0x20   : > { %s255_s28 = sand.u32 (!%p249_p9), 1, %s945_s12  }
  0x21   : > { %252 = sbr.rel (%p249_p9) target bundleno = 304 (0x130), region = 66  ;;  %s784_s24 = sshll.u32 (!%p249_p9), %s255_s28, 6 }
  0x22   : > { %s861_s29 = smul.u32 (!%p249_p9), 160, %s255_s28  ;;  %s1141_s12 = scalar_lea.vmem (!%p249_p9), [#allocation3], %s784_s24 }
  0x24   : > { %s1072_s7 = scalar_lea.vmem (!%p249_p9), [#allocation2], %s861_s29 }
  0x26   : > { %vm492_vm0 = vcmask 261120   ;;  %v921_v20 = vld [vmem:[%s1176_s0 + $0x4] ss:$8 sps:$4 sm:$0xff]   ;;  %v955_v22 = vmov 0   ;;  %v889_v23 = vld [vmem:[%s1072_s7 + $0x74] ss:$8 sps:$4 sm:$0xff]  }
  0x27   : > { %v924_v21 = vld [vmem:[%s1176_s0 + $0x24] ss:$8 sps:$4 sm:$0xff]   ;;  %888 = vset.pattern.permute.xlu1 %v955_v22  ;;  %887 = vset.pattern.permute.xlu0 %v955_v22  ;;  %v891_v24 = vld [vmem:[%s1072_s7 + $0x70] ss:$8 sps:$4 sm:$0xff]   ;;  %v894_v26 = vld [vmem:[%s1072_s7 + $0x60] ss:$8 sps:$4 sm:$0xff]  }
  0x28   : > { %813 = vmatprep.mubr.msk.bf16.mxu0 %vm492_vm0, %v921_v20  ;;  %815 = vmatprep.mubr.msk.bf16.mxu1 %vm492_vm0, %v924_v21  ;;  %v892_v25 = vld [vmem:[%s1072_s7 + $0x64] ss:$8 sps:$4 sm:$0xff]   ;;  %v895_v27 = vld [vmem:[%s1072_s7 + $0x54] ss:$8 sps:$4 sm:$0xff]   ;;  %v897_v28 = vld [vmem:[%s1072_s7 + $0x50] ss:$8 sps:$4 sm:$0xff]  }
  0x29   : > { %505 = vmatprep.subr.bf16.mxu0 %v889_v23  ;;  %840 = vmatprep.subr.bf16.mxu1 %v889_v23  ;;  %v898_v29 = vld [vmem:[%s1072_s7 + $0x44] ss:$8 sps:$4 sm:$0xff]   ;;  %v900_v30 = vld [vmem:[%s1072_s7 + $0x40] ss:$8 sps:$4 sm:$0xff]   ;;  %v901_v31 = vld [vmem:[%s1072_s7 + $0x34] ss:$8 sps:$4 sm:$0xff]  }
  0x2a   : > { %506 = vmatpush1.bf16.msra.mxu0 %v891_v24  ;;  %850 = vmatpush1.bf16.msra.mxu1 %v891_v24  ;;  %v310_v32 = vld [vmem:[%s1178_s2 + $0x10] sm:$0xff]  ;;  %v308_v34 = vld [vmem:[%s1178_s2] sm:$0xff]  ;;  %v311_v36 = vld [vmem:[%s1178_s2 + $0x18] sm:$0xff]  ;;  %s839_s28 = sshll.u32 (%p1006_p5), %s777_s15, 3 }
  0x2b   : > { %507 = vmatprep.subr.bf16.mxu0 %v892_v25  ;;  %841 = vmatprep.subr.bf16.mxu1 %v892_v25  ;;  %v903_v33 = vld [vmem:[%s1072_s7 + $0x30] ss:$8 sps:$4 sm:$0xff]   ;;  %v904_v35 = vld [vmem:[%s1072_s7 + $0x24] ss:$8 sps:$4 sm:$0xff]   ;;  %v906_v38 = vld [vmem:[%s1072_s7 + $0x20] ss:$8 sps:$4 sm:$0xff]   ;;  %s659_s27 = scalar_lea.vmem (%p1006_p5), %s1179_s3, %s839_s28 }
  0x2c   : > { %328 = vperm.xlu1 %888, %v310_v32   ;;  %318 = vperm.xlu0 %887, %v308_v34   ;;  %v309_v37 = vld [vmem:[%s1178_s2 + $0x8] sm:$0xff]  ;;  %v907_v39 = vld [vmem:[%s1072_s7 + $0x14] ss:$8 sps:$4 sm:$0xff]   ;;  %v312_v41 = vld [vmem:[%s1178_s2 + $0x20] sm:$0xff] }
  0x2d   : > { %v313_v40 = vld [vmem:[%s1178_s2 + $0x28] sm:$0xff]  ;;  %v909_v42 = vld [vmem:[%s1072_s7 + $0x10] ss:$8 sps:$4 sm:$0xff]   ;;  %v913_v47 = vld [vmem:[%s1072_s7 + $0x94] ss:$8 sps:$4 sm:$0xff]  }
  0x2e   : > { %508 = vmatpush1.bf16.msra.mxu0 %v894_v26  ;;  %851 = vmatpush1.bf16.msra.mxu1 %v894_v26  ;;  %v910_v43 = vld [vmem:[%s1072_s7 + $0x4] ss:$8 sps:$4 sm:$0xff]   ;;  %v315_v44 = vld [vmem:[%s1178_s2 + $0x38] sm:$0xff]  ;;  %v314_v45 = vld [vmem:[%s1178_s2 + $0x30] sm:$0xff] }
  0x2f   : > { %509 = vmatprep.subr.bf16.mxu0 %v895_v27  ;;  %842 = vmatprep.subr.bf16.mxu1 %v895_v27  ;;  %v912_v46 = vld [vmem:[%s1072_s7] ss:$8 sps:$4 sm:$0xff]   ;;  %v915_v48 = vld [vmem:[%s1072_s7 + $0x90] ss:$8 sps:$4 sm:$0xff]   ;;  %v916_v49 = vld [vmem:[%s1072_s7 + $0x84] ss:$8 sps:$4 sm:$0xff]  }
  0x30   : > { %333 = vperm.xlu1 %888, %v311_v36   ;;  %323 = vperm.xlu0 %887, %v309_v37   ;;  %v918_v50 = vld [vmem:[%s1072_s7 + $0x80] ss:$8 sps:$4 sm:$0xff]   ;;  %v925_v53 = vld [vmem:[%s1176_s0 + $0x14] ss:$8 sps:$4 sm:$0xff]   ;;  %v929_v55 = vld [vmem:[%s1176_s0 + $0x10] ss:$8 sps:$4 sm:$0xff]  }
  0x31   : > { %v919_v51 = vld [vmem:[%s1176_s0] ss:$8 sps:$4 sm:$0xff]   ;;  %v927_v54 = vld [vmem:[%s1176_s0 + $0x34] ss:$8 sps:$4 sm:$0xff]   ;;  %v930_v56 = vld [vmem:[%s1176_s0 + $0x30] ss:$8 sps:$4 sm:$0xff]  }
  0x32   : > { %510 = vmatpush1.bf16.msra.mxu0 %v897_v28  ;;  %852 = vmatpush1.bf16.msra.mxu1 %v897_v28  ;;  %v922_v52 = vld [vmem:[%s1176_s0 + $0x20] ss:$8 sps:$4 sm:$0xff]  }
  0x33   : > { %511 = vmatprep.subr.bf16.mxu0 %v898_v29  ;;  %843 = vmatprep.subr.bf16.mxu1 %v898_v29 }
  0x34   : > { %343 = vperm.xlu1 %888, %v313_v40   ;;  %338 = vperm.xlu0 %887, %v312_v41  }
  0x36   : > { %512 = vmatpush1.bf16.msra.mxu0 %v900_v30  ;;  %853 = vmatpush1.bf16.msra.mxu1 %v900_v30 }
  0x37   : > { %513 = vmatprep.subr.bf16.mxu0 %v901_v31  ;;  %844 = vmatprep.subr.bf16.mxu1 %v901_v31 }
  0x38   : > { %353 = vperm.xlu1 %888, %v315_v44   ;;  %348 = vperm.xlu0 %887, %v314_v45  }
  0x3a   : > { %514 = vmatpush1.bf16.msra.mxu0 %v903_v33  ;;  %854 = vmatpush1.bf16.msra.mxu1 %v903_v33 }
  0x3b   : > { %515 = vmatprep.subr.bf16.mxu0 %v904_v35  ;;  %845 = vmatprep.subr.bf16.mxu1 %v904_v35 }
  0x3e   : > { %516 = vmatpush1.bf16.msra.mxu0 %v906_v38  ;;  %855 = vmatpush1.bf16.msra.mxu1 %v906_v38 }
  0x3f   : > { %517 = vmatprep.subr.bf16.mxu0 %v907_v39  ;;  %846 = vmatprep.subr.bf16.mxu1 %v907_v39 }
  0x42   : > { %518 = vmatpush1.bf16.msra.mxu0 %v909_v42  ;;  %856 = vmatpush1.bf16.msra.mxu1 %v909_v42 }
  0x43   : > { %519 = vmatprep.subr.bf16.mxu0 %v910_v43  ;;  %847 = vmatprep.subr.bf16.mxu1 %v910_v43 }
  0x46   : > { %520 = vmatpush1.bf16.msra.mxu0 %v912_v46  ;;  %857 = vmatpush1.bf16.msra.mxu1 %v912_v46 }
  0x47   : > { %533 = vmatprep.subr.bf16.mxu0 %v913_v47  ;;  %848 = vmatprep.subr.bf16.mxu1 %v913_v47 }
  0x4a   : > { %534 = vmatpush2.bf16.msra.mxu0 %v915_v48  ;;  %858 = vmatpush2.bf16.msra.mxu1 %v915_v48 }
  0x4b   : > { %535 = vmatprep.subr.bf16.mxu0 %v916_v49  ;;  %849 = vmatprep.subr.bf16.mxu1 %v916_v49 }
  0x4e   : > { %536 = vmatpush2.bf16.msra.mxu0 %v918_v50  ;;  %859 = vmatpush2.bf16.msra.mxu1 %v918_v50 }
  0x51   : > { %538 = vmatmul.mubr.bf16.vlgmr.msra.gmra.mxu0 %v919_v51  ;;  %558 = vmatmul.mubr.bf16.vlgmr.msra.gmra.mxu1 %v922_v52 }
  0x52   : > { %814 = vmatprep.mubr.msk.bf16.mxu0 %vm492_vm0, %v925_v53  ;;  %816 = vmatprep.mubr.msk.bf16.mxu1 %vm492_vm0, %v927_v54 }
  0x59   : > { %548 = vmatmul.mubr.bf16.gmra.mxu0 %v929_v55  ;;  %568 = vmatmul.mubr.bf16.gmra.mxu1 %v930_v56 }
  0xa7   : > { %v319_v57 = vpop.permute.xlu0 %318  ;;  %v329_v58 = vpop.permute.xlu1 %328 }
  0xab   : > { %v324_v59 = vpop.permute.xlu0 %323  ;;  %v334_v60 = vpop.permute.xlu1 %333 }
  0xaf   : > { %v339_v61 = vpop.permute.xlu0 %338  ;;  %v344_v8 = vpop.permute.xlu1 %343 }
  0xb3   : > { %v349_v17 = vpop.permute.xlu0 %348  ;;  %v354_v38 = vpop.permute.xlu1 %353 }
 0x111   : > { %v539_v62 = vpop.f32.mrf.mxu0  ;;  %v559_v63 = vpop.f32.mrf.mxu1 }
 0x112   : > { %v540_v0 = vadd.f32 %v539_v62, %v319_v57  ;;  %v560_v1 = vadd.f32 %v559_v63, %v339_v61 }
 0x113   : > { %v541_v2 = vpop.f32.mrf.mxu0  ;;  %v561_v3 = vpop.f32.mrf.mxu1 }
 0x114   : > { %v542_v4 = vadd.f32 %v541_v2, %v319_v57  ;;  %v562_v5 = vadd.f32 %v561_v3, %v339_v61  ;;  %v578_v9 = vmax.f32 %v540_v0, 0.0  ;;  %v586_v10 = vmax.f32 %v560_v1, 0.0 }
 0x115   : > { %v543_v6 = vpop.f32.mrf.mxu0  ;;  %v563_v7 = vpop.f32.mrf.mxu1 }
 0x116   : > { %v579_v11 = vmax.f32 %v542_v4, 0.0  ;;  %v587_v12 = vmax.f32 %v562_v5, 0.0  ;;  %v544_v13 = vadd.f32 %v543_v6, %v324_v59  ;;  %v564_v14 = vadd.f32 %v563_v7, %v344_v8 }
 0x117   : > { %v545_v15 = vpop.f32.mrf.mxu0  ;;  %v565_v16 = vpop.f32.mrf.mxu1 }
 0x118   : > { %v831_v18 = vpack.c.bf16 %v579_v11, %v578_v9  ;;  %v835_v19 = vpack.c.bf16 %v587_v12, %v586_v10  ;;  %v546_v20 = vadd.f32 %v545_v15, %v324_v59  ;;  %v566_v21 = vadd.f32 %v565_v16, %v344_v8 }
 0x119   : > { %v549_v22 = vpop.f32.mrf.mxu0  ;;  %v569_v23 = vpop.f32.mrf.mxu1  ;;  %v580_v26 = vmax.f32 %v544_v13, 0.0  ;;  %v588_v27 = vmax.f32 %v564_v14, 0.0 }
 0x11a   : > { %642 = vst [vmem:[%s1141_s12] sm:$0xff] %v831_v18  ;;  %646 = vst [vmem:[%s1141_s12 + $0x20] sm:$0xff] %v835_v19  ;;  %v550_v24 = vadd.f32 %v549_v22, %v329_v58  ;;  %v570_v25 = vadd.f32 %v569_v23, %v349_v17  ;;  %v581_v28 = vmax.f32 %v546_v20, 0.0  ;;  %v589_v29 = vmax.f32 %v566_v21, 0.0 }
 0x11b   : > { %v551_v30 = vpop.f32.mrf.mxu0  ;;  %v571_v31 = vpop.f32.mrf.mxu1 }
 0x11c   : > { %v552_v32 = vadd.f32 %v551_v30, %v329_v58  ;;  %v572_v33 = vadd.f32 %v571_v31, %v349_v17  ;;  %v832_v34 = vpack.c.bf16 %v581_v28, %v580_v26  ;;  %v836_v35 = vpack.c.bf16 %v589_v29, %v588_v27 }
 0x11d   : > { %v553_v36 = vpop.f32.mrf.mxu0  ;;  %v573_v37 = vpop.f32.mrf.mxu1  ;;  %v582_v39 = vmax.f32 %v550_v24, 0.0  ;;  %v590_v40 = vmax.f32 %v570_v25, 0.0 }
 0x11e   : > { %v583_v41 = vmax.f32 %v552_v32, 0.0  ;;  %v591_v42 = vmax.f32 %v572_v33, 0.0  ;;  %643 = vst [vmem:[%s1141_s12 + $0x8] sm:$0xff] %v832_v34  ;;  %647 = vst [vmem:[%s1141_s12 + $0x28] sm:$0xff] %v836_v35  ;;  %v554_v43 = vadd.f32 %v553_v36, %v334_v60  ;;  %v574_v44 = vadd.f32 %v573_v37, %v354_v38 }
 0x11f   : > { %v555_v45 = vpop.f32.mrf.mxu0  ;;  %v575_v46 = vpop.f32.mrf.mxu1 }
 0x120   : > { %v833_v47 = vpack.c.bf16 %v583_v41, %v582_v39  ;;  %v837_v48 = vpack.c.bf16 %v591_v42, %v590_v40  ;;  %v556_v49 = vadd.f32 %v555_v45, %v334_v60  ;;  %v576_v50 = vadd.f32 %v575_v46, %v354_v38 }
 0x121   : > { %v584_v51 = vmax.f32 %v554_v43, 0.0  ;;  %v592_v52 = vmax.f32 %v574_v44, 0.0  ;;  %v702_v57 = vld [vmem:[%s1141_s12] sm:$0xff] (%p1006_p5) }
 0x122   : > { %644 = vst [vmem:[%s1141_s12 + $0x10] sm:$0xff] %v833_v47  ;;  %648 = vst [vmem:[%s1141_s12 + $0x30] sm:$0xff] %v837_v48  ;;  %v585_v53 = vmax.f32 %v556_v49, 0.0  ;;  %v593_v54 = vmax.f32 %v576_v50, 0.0  ;;  %656 = sbr.rel (!%p1006_p5) target bundleno = 304 (0x130), region = 74  ;;  %v710_v61 = vld [vmem:[%s1141_s12 + $0x20] sm:$0xff] (%p1006_p5) }
 0x123   : > { %703 = vst [vmem:[%s659_s27] sm:$0xff] (%p1006_p5), %v702_v57  ;;  %711 = vst [vmem:[%s659_s27 + $0x40] sm:$0xff] (%p1006_p5), %v710_v61 }
 0x124   : > { %v834_v55 = vpack.c.bf16 %v585_v53, %v584_v51  ;;  %v838_v56 = vpack.c.bf16 %v593_v54, %v592_v52 }
 0x125   : > { %v704_v58 = vld [vmem:[%s1141_s12 + $0x8] sm:$0xff] (%p1006_p5) }
 0x126   : > { %645 = vst [vmem:[%s1141_s12 + $0x18] sm:$0xff] %v834_v55  ;;  %649 = vst [vmem:[%s1141_s12 + $0x38] sm:$0xff] %v838_v56  ;;  %v712_v62 = vld [vmem:[%s1141_s12 + $0x28] sm:$0xff] (%p1006_p5) }
 0x127   : > { %705 = vst [vmem:[%s659_s27 + $0x10] sm:$0xff] %v704_v58  ;;  %713 = vst [vmem:[%s659_s27 + $0x50] sm:$0xff] %v712_v62 }
 0x129   : > { %v706_v59 = vld [vmem:[%s1141_s12 + $0x10] sm:$0xff] }
 0x12a   : > { %707 = vst [vmem:[%s659_s27 + $0x20] sm:$0xff] %v706_v59  ;;  %v714_v63 = vld [vmem:[%s1141_s12 + $0x30] sm:$0xff] }
 0x12b   : > { %715 = vst [vmem:[%s659_s27 + $0x60] sm:$0xff] %v714_v63 }
 0x12d   : > { %v708_v60 = vld [vmem:[%s1141_s12 + $0x18] sm:$0xff] }
 0x12e   : > { %709 = vst [vmem:[%s659_s27 + $0x30] sm:$0xff] %v708_v60  ;;  %v716_v0 = vld [vmem:[%s1141_s12 + $0x38] sm:$0xff] }
 0x12f   : > { %717 = vst [vmem:[%s659_s27 + $0x70] sm:$0xff] %v716_v0 }
 0x130 PF: > { %p10_p10 = scmp.ge.s32.totalorder %s993_s16, 4   ;;  %s1181_s12 = smov %s949_s13 }
 0x131   : > { %s1182_s13 = smov %s1004_s19  ;;  %s1183_s14 = smov %s993_s16 }
 0x132   :  { %12 = sbr.rel (!%p10_p10) target bundleno = 2 (0x2), region = 143 }

// kernel: resnet_exit1_part1l_forward.5
= control target key start
LH: loop header
LB: loop body
LE: loop exit
PB: predicated region body
PF: predicated region fallthrough
CT: control target
= control target key end

     0   :  { %vm148_vm0 = vcmask 523264   ;;  %s3800_s7 = smov 9   ;;  %s3801_s8 = smov 7   ;;  %v3807_v18 = vmov 0   ;;  %s4779_s0 = inlined_call_operand.vmem [shape: bf16[1,64,128], index: 0, kind: input, shape index: {}]   ;;  %s4780_s2 = inlined_call_operand.vmem [shape: bf16[9,64,64], index: 2, kind: input, shape index: {}]   ;;  %s4781_s3 = inlined_call_operand.vmem [shape: f32[64,1], index: 3, kind: input, shape index: {}]   ;;  %s4782_s1 = inlined_call_operand.vmem [shape: f32[9,1,128], index: 1, kind: input, shape index: {}]   ;;  %s4783_s4 = inlined_call_operand.vmem [shape: bf16[9,64,64], index: 4, kind: input, shape index: {}]   ;;  %s4784_s5 = inlined_call_operand.vmem [shape: f32[64,1], index: 5, kind: input, shape index: {}]   ;;  %s4785_s6 = inlined_call_operand.vmem [shape: bf16[64,128], index: 6, kind: output, shape index: {}]  }
   0x1   :  { %v3846_v0 = vld [vmem:[%s4779_s0 + $0x18] sm:$0xff]   ;;  %v3851_v1 = vld [vmem:[%s4779_s0 + $0x10] sm:$0xff]   ;;  %v3856_v2 = vld [vmem:[%s4779_s0 + $0x8] sm:$0xff]   ;;  %s3802_s11 = smov 1   ;;  %s3803_s12 = smov 127   ;;  %3710 = vset.pattern.permute.xlu1 %v3807_v18  ;;  %3709 = vset.pattern.permute.xlu0 %v3807_v18 }
   0x2   :  { %4802 = vst [vmem:[#allocation2_spill] sm:$0xff] %v3846_v0  ;;  %4803 = vst [vmem:[#allocation3_spill] sm:$0xff] %v3851_v1  ;;  %v4789_v3 = vunpack.c.l.bf16 %v3846_v0  ;;  %v4787_v4 = vunpack.c.h.bf16 %v3846_v0  ;;  %v4788_v5 = vunpack.c.l.bf16 %v3851_v1  ;;  %v4786_v6 = vunpack.c.h.bf16 %v3851_v1  ;;  %v3865_v7 = vld [vmem:[%s4779_s0] sm:$0xff]   ;;  %s3799_s0 = smov 8   ;;  %s3804_s13 = smov 121   ;;  %v1367_v19 = vld [vmem:[%s4781_s3 + $0x30] sm:$0xff] }
   0x3   :  { %4804 = vst [vmem:[#allocation4_spill] sm:$0xff] %v3856_v2  ;;  %4805 = vst [vmem:[#allocation5_spill] sm:$0xff] %v3865_v7  ;;  %v4793_v8 = vunpack.c.l.bf16 %v3856_v2  ;;  %v4792_v9 = vunpack.c.h.bf16 %v3856_v2  ;;  %v4791_v10 = vunpack.c.l.bf16 %v3865_v7  ;;  %v4790_v11 = vunpack.c.h.bf16 %v3865_v7  ;;  %v3711_v16 = vld [vmem:[%s4780_s2 + $0x20] sm:$0xff]   ;;  %s3805_s14 = smov 120   ;;  %s3806_s15 = smov 119   ;;  %v1368_v20 = vld [vmem:[%s4781_s3 + $0x38] sm:$0xff] }
   0x4   :  { %v3549_v12 = vpack.i.bf16 %v4787_v4, %v4789_v3  ;;  %v3554_v14 = vpack.i.bf16 %v4786_v6, %v4788_v5  ;;  %3260 = vmatprep.mubr.msk.bf16.mxu0 %vm148_vm0, %v3711_v16  ;;  %v3714_v17 = vld [vmem:[%s4780_s2] sm:$0xff]   ;;  %v1366_v21 = vld [vmem:[%s4781_s3 + $0x28] sm:$0xff]  ;;  %v1364_v23 = vld [vmem:[%s4781_s3 + $0x18] sm:$0xff] }
   0x5   :  { %v3559_v13 = vpack.i.bf16 %v4792_v9, %v4793_v8  ;;  %v3564_v15 = vpack.i.bf16 %v4790_v11, %v4791_v10  ;;  %3276 = vmatprep.mubr.msk.bf16.mxu1 %vm148_vm0, %v3714_v17  ;;  %v1365_v22 = vld [vmem:[%s4781_s3 + $0x20] sm:$0xff]  ;;  %v1363_v24 = vld [vmem:[%s4781_s3 + $0x10] sm:$0xff]  ;;  %v1362_v25 = vld [vmem:[%s4781_s3 + $0x8] sm:$0xff] }
   0x6   :  { %3550 = vrot.lane.b32.xlu0 %v3549_v12, %s3799_s0  ;;  %v1361_v26 = vld [vmem:[%s4781_s3] sm:$0xff] }
   0x7   :  { %3560 = vrot.lane.b32.xlu1 %v3559_v13, %s3799_s0  ;;  %v2780_v28 = vld [vmem:[%s4782_s1 + $0x1] ss:$0 sm:$0xff]  ;;  %v2778_v49 = vld [vmem:[%s4782_s1] ss:$0 sm:$0xff]  ;;  %v3960_v55 = vld [vmem:[%s4782_s1 + $0x2] ss:$0 sm:$0xff] }
   0xa   :  { %3555 = vrot.lane.b32.xlu0 %v3554_v14, %s3799_s0 }
   0xb   :  { %3565 = vrot.lane.b32.xlu1 %v3564_v15, %s3799_s0 }
   0xe   :  { %3570 = vrot.lane.b32.xlu0 %v3549_v12, %s3800_s7 }
   0xf   :  { %3575 = vrot.lane.b32.xlu1 %v3549_v12, %s3801_s8 }
  0x12   :  { %3580 = vrot.lane.b32.xlu0 %v3554_v14, %s3800_s7 }
  0x13   :  { %3585 = vrot.lane.b32.xlu1 %v3554_v14, %s3801_s8 }
  0x16   :  { %3590 = vrot.lane.b32.xlu0 %v3559_v13, %s3800_s7 }
  0x17   :  { %3595 = vrot.lane.b32.xlu1 %v3559_v13, %s3801_s8 }
  0x1a   :  { %3600 = vrot.lane.b32.xlu0 %v3564_v15, %s3800_s7 }
  0x1b   :  { %3605 = vrot.lane.b32.xlu1 %v3564_v15, %s3801_s8 }
  0x1e   :  { %3610 = vrot.lane.b32.xlu0 %v3549_v12, %s3802_s11 }
  0x1f   :  { %3615 = vrot.lane.b32.xlu1 %v3554_v14, %s3802_s11 }
  0x22   :  { %3620 = vrot.lane.b32.xlu0 %v3559_v13, %s3802_s11 }
  0x23   :  { %3625 = vrot.lane.b32.xlu1 %v3564_v15, %s3802_s11 }
  0x26   :  { %3630 = vrot.lane.b32.xlu0 %v3549_v12, %s3803_s12 }
  0x27   :  { %3635 = vrot.lane.b32.xlu1 %v3549_v12, %s3804_s13 }
  0x2a   :  { %3640 = vrot.lane.b32.xlu0 %v3554_v14, %s3803_s12 }
  0x2b   :  { %3645 = vrot.lane.b32.xlu1 %v3554_v14, %s3804_s13 }
  0x2e   :  { %3650 = vrot.lane.b32.xlu0 %v3559_v13, %s3803_s12 }
  0x2f   :  { %3655 = vrot.lane.b32.xlu1 %v3559_v13, %s3804_s13 }
  0x32   :  { %3660 = vrot.lane.b32.xlu0 %v3564_v15, %s3803_s12 }
  0x33   :  { %3665 = vrot.lane.b32.xlu1 %v3564_v15, %s3804_s13 }
  0x36   :  { %3670 = vrot.lane.b32.xlu0 %v3549_v12, %s3805_s14 }
  0x37   :  { %3675 = vrot.lane.b32.xlu1 %v3549_v12, %s3806_s15 }
  0x3a   :  { %3680 = vrot.lane.b32.xlu0 %v3554_v14, %s3805_s14 }
  0x3b   :  { %3685 = vrot.lane.b32.xlu1 %v3554_v14, %s3806_s15 }
  0x3e   :  { %3690 = vrot.lane.b32.xlu0 %v3559_v13, %s3805_s14 }
  0x3f   :  { %3695 = vrot.lane.b32.xlu1 %v3559_v13, %s3806_s15 }
  0x42   :  { %3700 = vrot.lane.b32.xlu0 %v3564_v15, %s3805_s14 }
  0x43   :  { %3705 = vrot.lane.b32.xlu1 %v3564_v15, %s3806_s15 }
  0x46   :  { %1401 = vperm.xlu0 %3709, %v1367_v19  }
  0x47   :  { %1406 = vperm.xlu1 %3710, %v1368_v20  }
  0x4a   :  { %1396 = vperm.xlu0 %3709, %v1366_v21  }
  0x4b   :  { %1391 = vperm.xlu1 %3710, %v1365_v22  }
  0x4e   :  { %1386 = vperm.xlu0 %3709, %v1364_v23  }
  0x4f   :  { %1381 = vperm.xlu1 %3710, %v1363_v24  }
  0x52   :  { %1376 = vperm.xlu0 %3709, %v1362_v25  }
  0x53   :  { %1371 = vperm.xlu1 %3710, %v1361_v26  }
  0x78   :  { %v3551_v27 = vpop.permute.xlu0 %3550 }
  0x79   :  { %v3553_v29 = vunpack.i.h.bf16 %v3551_v27  ;;  %v3552_v30 = vunpack.i.l.bf16 %v3551_v27  ;;  %v3561_v31 = vpop.permute.xlu1 %3560 }
  0x7a   :  { %v3563_v32 = vunpack.i.h.bf16 %v3561_v31  ;;  %v3562_v33 = vunpack.i.l.bf16 %v3561_v31 }
  0x7b   :  { %v113_v34 = vmul.f32 %v3552_v30, %v2780_v28  ;;  %v114_v35 = vmul.f32 %v3553_v29, %v2780_v28 }
  0x7c   :  { %v3556_v36 = vpop.permute.xlu0 %3555  ;;  %v110_v37 = vmul.f32 %v3563_v32, %v2780_v28  ;;  %v109_v38 = vmul.f32 %v3562_v33, %v2780_v28  ;;  %v3712_v33 = vld [vmem:[%s4780_s2 + $0x28] sm:$0xff]  }
  0x7d   :  { %v3558_v39 = vunpack.i.h.bf16 %v3556_v36  ;;  %v3557_v40 = vunpack.i.l.bf16 %v3556_v36  ;;  %v127_v41 = vpack.c.bf16 %v114_v35, %v113_v34  ;;  %v3566_v42 = vpop.permute.xlu1 %3565 }
  0x7e   :  { %v3568_v43 = vunpack.i.h.bf16 %v3566_v42  ;;  %v3567_v44 = vunpack.i.l.bf16 %v3566_v42  ;;  %v125_v50 = vpack.c.bf16 %v110_v37, %v109_v38  ;;  %v3713_v42 = vld [vmem:[%s4780_s2 + $0x30] sm:$0xff]  }
  0x7f   :  { %v112_v45 = vmul.f32 %v3558_v39, %v2780_v28  ;;  %v111_v46 = vmul.f32 %v3557_v40, %v2780_v28  ;;  %3252 = vmatprep.subr.bf16.mxu0 %v127_v41 }
  0x80   :  { %3253 = vmatpush3.bf16.msra.mxu0 %v127_v41  ;;  %v3571_v47 = vpop.permute.xlu0 %3570  ;;  %v108_v48 = vmul.f32 %v3568_v43, %v2780_v28  ;;  %v107_v53 = vmul.f32 %v3567_v44, %v2780_v28 }
  0x81   :  { %v3573_v51 = vunpack.i.h.bf16 %v3571_v47  ;;  %v3572_v52 = vunpack.i.l.bf16 %v3571_v47  ;;  %v126_v54 = vpack.c.bf16 %v112_v45, %v111_v46  ;;  %v3576_v56 = vpop.permute.xlu1 %3575  ;;  %v2824_v47 = vld [vmem:[%s4782_s1 + $0x3] ss:$0 sm:$0xff] }
  0x82   :  { %v3578_v57 = vunpack.i.h.bf16 %v3576_v56  ;;  %v3577_v58 = vunpack.i.l.bf16 %v3576_v56  ;;  %v124_v16 = vpack.c.bf16 %v108_v48, %v107_v53 }
  0x83   :  { %3254 = vmatprep.subr.bf16.mxu0 %v126_v54  ;;  %v69_v59 = vmul.f32 %v3572_v52, %v2778_v49  ;;  %v70_v60 = vmul.f32 %v3573_v51, %v2778_v49 }
  0x84   :  { %v3581_v61 = vpop.permute.xlu0 %3580  ;;  %3255 = vmatpush3.bf16.msra.mxu0 %v126_v54  ;;  %v354_v62 = vmul.f32 %v3578_v57, %v3960_v55  ;;  %v353_v63 = vmul.f32 %v3577_v58, %v3960_v55 }
  0x85   :  { %v3583_v12 = vunpack.i.h.bf16 %v3581_v61  ;;  %v3582_v13 = vunpack.i.l.bf16 %v3581_v61  ;;  %3256 = vmatprep.subr.bf16.mxu0 %v125_v50  ;;  %v82_v14 = vpack.c.bf16 %v70_v60, %v69_v59  ;;  %v3586_v15 = vpop.permute.xlu1 %3585  ;;  %v3715_v61 = vld [vmem:[%s4780_s2 + $0x38] sm:$0xff]  }
  0x86   :  { %v3588_v17 = vunpack.i.h.bf16 %v3586_v15  ;;  %v3587_v18 = vunpack.i.l.bf16 %v3586_v15  ;;  %v367_v23 = vpack.c.bf16 %v354_v62, %v353_v63  ;;  %v3716_v62 = vld [vmem:[%s4780_s2 + $0x8] sm:$0xff]  }
  0x87   :  { %v68_v19 = vmul.f32 %v3583_v12, %v2778_v49  ;;  %v67_v20 = vmul.f32 %v3582_v13, %v2778_v49  ;;  %3268 = vmatprep.subr.bf16.mxu1 %v82_v14 }
  0x88   :  { %3269 = vmatpush3.bf16.msra.mxu1 %v82_v14  ;;  %v3591_v21 = vpop.permute.xlu0 %3590  ;;  %3257 = vmatpush3.bf16.msra.mxu0 %v125_v50  ;;  %v352_v22 = vmul.f32 %v3588_v17, %v3960_v55  ;;  %v351_v26 = vmul.f32 %v3587_v18, %v3960_v55 }
  0x89   :  { %v3593_v24 = vunpack.i.h.bf16 %v3591_v21  ;;  %v3592_v25 = vunpack.i.l.bf16 %v3591_v21  ;;  %3258 = vmatprep.subr.bf16.mxu0 %v124_v16  ;;  %v81_v27 = vpack.c.bf16 %v68_v19, %v67_v20  ;;  %v3596_v28 = vpop.permute.xlu1 %3595  ;;  %v3717_v21 = vld [vmem:[%s4780_s2 + $0x10] sm:$0xff]  }
  0x8a   :  { %v3598_v29 = vunpack.i.h.bf16 %v3596_v28  ;;  %v3597_v30 = vunpack.i.l.bf16 %v3596_v28  ;;  %v366_v41 = vpack.c.bf16 %v352_v22, %v351_v26 }
  0x8b   :  { %v66_v31 = vmul.f32 %v3593_v24, %v2778_v49  ;;  %v65_v32 = vmul.f32 %v3592_v25, %v2778_v49  ;;  %3270 = vmatprep.subr.bf16.mxu1 %v81_v27  ;;  %v3718_v24 = vld [vmem:[%s4780_s2 + $0x40] sm:$0xff]  }
  0x8c   :  { %3271 = vmatpush3.bf16.msra.mxu1 %v81_v27  ;;  %v3601_v34 = vpop.permute.xlu0 %3600  ;;  %v350_v35 = vmul.f32 %v3598_v29, %v3960_v55  ;;  %v349_v36 = vmul.f32 %v3597_v30, %v3960_v55  ;;  %3259 = vmatpush3.bf16.msra.mxu0 %v124_v16 }
  0x8d   :  { %v3603_v37 = vunpack.i.h.bf16 %v3601_v34  ;;  %v3602_v38 = vunpack.i.l.bf16 %v3601_v34  ;;  %v80_v39 = vpack.c.bf16 %v66_v31, %v65_v32  ;;  %3284 = vmatprep.subr.bf16.mxu0 %v367_v23  ;;  %v3606_v40 = vpop.permute.xlu1 %3605  ;;  %v3719_v32 = vld [vmem:[%s4780_s2 + $0x18] sm:$0xff]   ;;  %v4006_v34 = vld [vmem:[%s4782_s1 + $0x5] ss:$0 sm:$0xff] }
  0x8e   :  { %v3608_v43 = vunpack.i.h.bf16 %v3606_v40  ;;  %v3607_v44 = vunpack.i.l.bf16 %v3606_v40  ;;  %v365_v51 = vpack.c.bf16 %v350_v35, %v349_v36  ;;  %v3723_v36 = vld [vmem:[%s4780_s2 + $0x50] sm:$0xff]  }
  0x8f   :  { %v64_v45 = vmul.f32 %v3603_v37, %v2778_v49  ;;  %v63_v46 = vmul.f32 %v3602_v38, %v2778_v49  ;;  %3261 = vmatmul.mubr.msk.bf16.vlgmr.msra.gmra.mxu0 %vm148_vm0, %v3712_v33  ;;  %3272 = vmatprep.subr.bf16.mxu1 %v80_v39  ;;  %v3720_v33 = vld [vmem:[%s4780_s2 + $0x48] sm:$0xff]  }
  0x90   :  { %3273 = vmatpush3.bf16.msra.mxu1 %v80_v39  ;;  %v3611_v48 = vpop.permute.xlu0 %3610  ;;  %v348_v50 = vmul.f32 %v3608_v43, %v3960_v55  ;;  %3285 = vmatpush3.bf16.msra.mxu0 %v367_v23  ;;  %v347_v54 = vmul.f32 %v3607_v44, %v3960_v55  ;;  %v3724_v43 = vld [vmem:[%s4780_s2 + $0x60] sm:$0xff]  }
  0x91   :  { %v3613_v52 = vunpack.i.h.bf16 %v3611_v48  ;;  %v3612_v53 = vunpack.i.l.bf16 %v3611_v48  ;;  %v79_v56 = vpack.c.bf16 %v64_v45, %v63_v46  ;;  %3286 = vmatprep.subr.bf16.mxu0 %v366_v41  ;;  %v3616_v49 = vpop.permute.xlu1 %3615  ;;  %3264 = vmatprep.mubr.msk.bf16.mxu0 %vm148_vm0, %v3713_v42 }
  0x92   :  { %v3618_v57 = vunpack.i.h.bf16 %v3616_v49  ;;  %v3617_v58 = vunpack.i.l.bf16 %v3616_v49  ;;  %v364_v16 = vpack.c.bf16 %v348_v50, %v347_v54  ;;  %v4025_v50 = vld [vmem:[%s4782_s1 + $0x6] ss:$0 sm:$0xff]  ;;  %v3726_v49 = vld [vmem:[%s4780_s2 + $0x68] sm:$0xff]  }
  0x93   :  { %v504_v59 = vmul.f32 %v3613_v52, %v2824_v47  ;;  %v503_v60 = vmul.f32 %v3612_v53, %v2824_v47  ;;  %3274 = vmatprep.subr.bf16.mxu1 %v79_v56 }
  0x94   :  { %3275 = vmatpush3.bf16.msra.mxu1 %v79_v56  ;;  %v502_v55 = vmul.f32 %v3618_v57, %v2824_v47  ;;  %v501_v63 = vmul.f32 %v3617_v58, %v2824_v47  ;;  %3287 = vmatpush3.bf16.msra.mxu0 %v366_v41  ;;  %v3621_v12 = vpop.permute.xlu0 %3620  ;;  %v3725_v56 = vld [vmem:[%s4780_s2 + $0x58] sm:$0xff]  }
  0x95   :  { %3288 = vmatprep.subr.bf16.mxu0 %v365_v51  ;;  %v517_v13 = vpack.c.bf16 %v504_v59, %v503_v60  ;;  %v3623_v14 = vunpack.i.h.bf16 %v3621_v12  ;;  %v3622_v15 = vunpack.i.l.bf16 %v3621_v12  ;;  %v3626_v17 = vpop.permute.xlu1 %3625 }
  0x96   :  { %v516_v18 = vpack.c.bf16 %v502_v55, %v501_v63  ;;  %v3628_v19 = vunpack.i.h.bf16 %v3626_v17  ;;  %v3627_v20 = vunpack.i.l.bf16 %v3626_v17 }
  0x97   :  { %3265 = vmatmul.mubr.msk.bf16.gmra.mxu0 %vm148_vm0, %v3715_v61  ;;  %3277 = vmatmul.mubr.msk.bf16.vlgmr.msra.gmra.mxu1 %vm148_vm0, %v3716_v62  ;;  %v500_v22 = vmul.f32 %v3623_v14, %v2824_v47  ;;  %v499_v23 = vmul.f32 %v3622_v15, %v2824_v47  ;;  %v3729_v15 = vld [vmem:[%s4780_s2 + $0x70] sm:$0xff]  }
  0x98   :  { %3300 = vmatprep.subr.bf16.mxu1 %v517_v13  ;;  %3289 = vmatpush3.bf16.msra.mxu0 %v365_v51  ;;  %v3631_v25 = vpop.permute.xlu0 %3630  ;;  %v498_v26 = vmul.f32 %v3628_v19, %v2824_v47  ;;  %v497_v27 = vmul.f32 %v3627_v20, %v2824_v47 }
  0x99   :  { %3301 = vmatpush3.bf16.msra.mxu1 %v517_v13  ;;  %3290 = vmatprep.subr.bf16.mxu0 %v364_v16  ;;  %v3636_v28 = vpop.permute.xlu1 %3635  ;;  %v515_v29 = vpack.c.bf16 %v500_v22, %v499_v23  ;;  %v3633_v30 = vunpack.i.h.bf16 %v3631_v25  ;;  %v3632_v31 = vunpack.i.l.bf16 %v3631_v25 }
  0x9a   :  { %3302 = vmatprep.subr.bf16.mxu1 %v516_v18  ;;  %3280 = vmatprep.mubr.msk.bf16.mxu1 %vm148_vm0, %v3717_v21  ;;  %v514_v37 = vpack.c.bf16 %v498_v26, %v497_v27  ;;  %v3638_v45 = vunpack.i.h.bf16 %v3636_v28  ;;  %v3637_v46 = vunpack.i.l.bf16 %v3636_v28 }
  0x9b   :  { %3292 = vmatprep.mubr.msk.bf16.mxu0 %vm148_vm0, %v3718_v24  ;;  %v792_v39 = vmul.f32 %v3633_v30, %v4006_v34  ;;  %v791_v40 = vmul.f32 %v3632_v31, %v4006_v34  ;;  %v4064_v30 = vld [vmem:[%s4782_s1 + $0x7] ss:$0 sm:$0xff]  ;;  %v3731_v31 = vld [vmem:[%s4780_s2 + $0x78] sm:$0xff]  }
  0x9c   :  { %3291 = vmatpush3.bf16.msra.mxu0 %v364_v16  ;;  %v3641_v35 = vpop.permute.xlu0 %3640  ;;  %v942_v57 = vmul.f32 %v3638_v45, %v4025_v50  ;;  %v941_v58 = vmul.f32 %v3637_v46, %v4025_v50  ;;  %v3730_v16 = vld [vmem:[%s4780_s2 + $0x80] sm:$0xff]  }
  0x9d   :  { %3303 = vmatpush3.bf16.msra.mxu1 %v516_v18  ;;  %3316 = vmatprep.subr.bf16.mxu0 %v3846_v0  ;;  %v3646_v38 = vpop.permute.xlu1 %3645  ;;  %v3643_v41 = vunpack.i.h.bf16 %v3641_v35  ;;  %v3642_v42 = vunpack.i.l.bf16 %v3641_v35  ;;  %v805_v54 = vpack.c.bf16 %v792_v39, %v791_v40  ;;  %v3734_v45 = vld [vmem:[%s4780_s2 + $0xa0] sm:$0xff]  }
  0x9e   :  { %3304 = vmatprep.subr.bf16.mxu1 %v515_v29  ;;  %v3648_v62 = vunpack.i.h.bf16 %v3646_v38  ;;  %v3647_v55 = vunpack.i.l.bf16 %v3646_v38  ;;  %v955_v17 = vpack.c.bf16 %v942_v57, %v941_v58 }
  0x9f   :  { %3281 = vmatmul.mubr.msk.bf16.gmra.mxu1 %vm148_vm0, %v3719_v32  ;;  %3293 = vmatmul.mubr.msk.bf16.vlgmr.msra.gmra.mxu0 %vm148_vm0, %v3720_v33  ;;  %v790_v52 = vmul.f32 %v3643_v41, %v4006_v34  ;;  %v789_v53 = vmul.f32 %v3642_v42, %v4006_v34 }
  0xa0   :  { %3317 = vmatpush3.bf16.msra.mxu0 %v3846_v0  ;;  %3296 = vmatprep.mubr.msk.bf16.mxu0 %vm148_vm0, %v3723_v36  ;;  %v3651_v44 = vpop.permute.xlu0 %3650  ;;  %v940_v21 = vmul.f32 %v3648_v62, %v4025_v50  ;;  %v939_v22 = vmul.f32 %v3647_v55, %v4025_v50 }
  0xa1   :  { %3305 = vmatpush3.bf16.msra.mxu1 %v515_v29  ;;  %3318 = vmatprep.subr.bf16.mxu0 %v3851_v1  ;;  %v3653_v47 = vunpack.i.h.bf16 %v3651_v44  ;;  %v3652_v48 = vunpack.i.l.bf16 %v3651_v44  ;;  %v3656_v51 = vpop.permute.xlu1 %3655  ;;  %v804_v12 = vpack.c.bf16 %v790_v52, %v789_v53  ;;  %v3732_v29 = vld [vmem:[%s4780_s2 + $0x88] sm:$0xff]  }
  0xa2   :  { %3306 = vmatprep.subr.bf16.mxu1 %v514_v37  ;;  %3308 = vmatprep.mubr.msk.bf16.mxu1 %vm148_vm0, %v3724_v43  ;;  %v3658_v19 = vunpack.i.h.bf16 %v3656_v51  ;;  %v3657_v20 = vunpack.i.l.bf16 %v3656_v51  ;;  %v3733_v43 = vld [vmem:[%s4780_s2 + $0x90] sm:$0xff]  }
  0xa3   :  { %v788_v60 = vmul.f32 %v3653_v47, %v4006_v34  ;;  %v787_v61 = vmul.f32 %v3652_v48, %v4006_v34 }
  0xa4   :  { %3319 = vmatpush3.bf16.msra.mxu0 %v3851_v1  ;;  %v3661_v59 = vpop.permute.xlu0 %3660  ;;  %v938_v32 = vmul.f32 %v3658_v19, %v4025_v50  ;;  %v937_v33 = vmul.f32 %v3657_v20, %v4025_v50  ;;  %v3737_v20 = vld [vmem:[%s4780_s2 + $0xb0] sm:$0xff]  }
  0xa5   :  { %3307 = vmatpush3.bf16.msra.mxu1 %v514_v37  ;;  %3320 = vmatprep.subr.bf16.mxu0 %v3856_v2  ;;  %v3666_v63 = vpop.permute.xlu1 %3665  ;;  %v3663_v13 = vunpack.i.h.bf16 %v3661_v59  ;;  %v3662_v14 = vunpack.i.l.bf16 %v3661_v59  ;;  %v803_v23 = vpack.c.bf16 %v788_v60, %v787_v61  ;;  %v954_v37 = vpack.c.bf16 %v940_v21, %v939_v22  ;;  %v3735_v59 = vld [vmem:[%s4780_s2 + $0x98] sm:$0xff]   ;;  %v3736_v60 = vld [vmem:[%s4780_s2 + $0xa8] sm:$0xff]   ;;  %v3738_v21 = vld [vmem:[%s4780_s2 + $0xc0] sm:$0xff]  }
  0xa6   :  { %3332 = vmatprep.subr.bf16.mxu1 %v805_v54  ;;  %v3668_v35 = vunpack.i.h.bf16 %v3666_v63  ;;  %v3667_v36 = vunpack.i.l.bf16 %v3666_v63  ;;  %v953_v48 = vpack.c.bf16 %v938_v32, %v937_v33  ;;  %v3740_v32 = vld [vmem:[%s4780_s2 + $0xc8] sm:$0xff]   ;;  %v3739_v33 = vld [vmem:[%s4780_s2 + $0xb8] sm:$0xff]  }
  0xa7   :  { %3297 = vmatmul.mubr.msk.bf16.gmra.mxu0 %vm148_vm0, %v3725_v56  ;;  %v786_v25 = vmul.f32 %v3663_v13, %v4006_v34  ;;  %v785_v26 = vmul.f32 %v3662_v14, %v4006_v34 }
  0xa8   :  { %3309 = vmatmul.mubr.msk.bf16.vlgmr.msra.gmra.mxu1 %vm148_vm0, %v3726_v49  ;;  %3321 = vmatpush3.bf16.msra.mxu0 %v3856_v2  ;;  %v3671_v18 = vpop.permute.xlu0 %3670  ;;  %v936_v46 = vmul.f32 %v3668_v35, %v4025_v50  ;;  %v935_v47 = vmul.f32 %v3667_v36, %v4025_v50  ;;  %v2916_v50 = vld [vmem:[%s4782_s1 + $0x8] ss:$0 sm:$0xff] }
  0xa9   :  { %3333 = vmatpush3.bf16.msra.mxu1 %v805_v54  ;;  %3322 = vmatprep.subr.bf16.mxu0 %v3865_v7  ;;  %v3676_v24 = vpop.permute.xlu1 %3675  ;;  %v3673_v27 = vunpack.i.h.bf16 %v3671_v18  ;;  %v3672_v28 = vunpack.i.l.bf16 %v3671_v18  ;;  %v802_v42 = vpack.c.bf16 %v786_v25, %v785_v26 }
  0xaa   :  { %3334 = vmatprep.subr.bf16.mxu1 %v804_v12  ;;  %3312 = vmatprep.mubr.msk.bf16.mxu1 %vm148_vm0, %v3729_v15  ;;  %v3678_v54 = vunpack.i.h.bf16 %v3676_v24  ;;  %v3677_v56 = vunpack.i.l.bf16 %v3676_v24  ;;  %v952_v61 = vpack.c.bf16 %v936_v46, %v935_v47  ;;  %v3745_v47 = vld [vmem:[%s4780_s2 + $0xf0] sm:$0xff]  }
  0xab   :  { %3324 = vmatprep.mubr.msk.bf16.mxu0 %vm148_vm0, %v3730_v16  ;;  %v1092_v40 = vmul.f32 %v3673_v27, %v4064_v30  ;;  %v1091_v41 = vmul.f32 %v3672_v28, %v4064_v30 }
  0xac   :  { %3323 = vmatpush3.bf16.msra.mxu0 %v3865_v7  ;;  %v3681_v34 = vpop.permute.xlu0 %3680  ;;  %v1242_v13 = vmul.f32 %v3678_v54, %v2916_v50  ;;  %v1241_v14 = vmul.f32 %v3677_v56, %v2916_v50  ;;  %v3750_v54 = vld [vmem:[%s4780_s2 + $0x118] sm:$0xff]  }
  0xad   :  { %3335 = vmatpush3.bf16.msra.mxu1 %v804_v12  ;;  %3348 = vmatprep.subr.bf16.mxu0 %v955_v17  ;;  %v3683_v38 = vunpack.i.h.bf16 %v3681_v34  ;;  %v3682_v39 = vunpack.i.l.bf16 %v3681_v34  ;;  %v3686_v44 = vpop.permute.xlu1 %3685  ;;  %v1105_v49 = vpack.c.bf16 %v1092_v40, %v1091_v41  ;;  %v3742_v40 = vld [vmem:[%s4780_s2 + $0xe0] sm:$0xff]  }
  0xae   :  { %3336 = vmatprep.subr.bf16.mxu1 %v803_v23  ;;  %v3688_v55 = vunpack.i.h.bf16 %v3686_v44  ;;  %v3687_v63 = vunpack.i.l.bf16 %v3686_v44  ;;  %v1255_v24 = vpack.c.bf16 %v1242_v13, %v1241_v14  ;;  %v3743_v44 = vld [vmem:[%s4780_s2 + $0xd8] sm:$0xff]  }
  0xaf   :  { %3325 = vmatmul.mubr.msk.bf16.vlgmr.msra.gmra.mxu0 %vm148_vm0, %v3732_v29  ;;  %v1090_v52 = vmul.f32 %v3683_v38, %v4064_v30  ;;  %v1089_v53 = vmul.f32 %v3682_v39, %v4064_v30  ;;  %v3741_v39 = vld [vmem:[%s4780_s2 + $0xd0] sm:$0xff]  }
  0xb0   :  { %3313 = vmatmul.mubr.msk.bf16.gmra.mxu1 %vm148_vm0, %v3731_v31  ;;  %3349 = vmatpush3.bf16.msra.mxu0 %v955_v17  ;;  %v3691_v51 = vpop.permute.xlu0 %3690  ;;  %v1240_v22 = vmul.f32 %v3688_v55, %v2916_v50 }
  0xb1   :  { %3337 = vmatpush3.bf16.msra.mxu1 %v803_v23  ;;  %3350 = vmatprep.subr.bf16.mxu0 %v954_v37  ;;  %v3693_v57 = vunpack.i.h.bf16 %v3691_v51  ;;  %v3692_v58 = vunpack.i.l.bf16 %v3691_v51  ;;  %v3696_v12 = vpop.permute.xlu1 %3695  ;;  %v1104_v15 = vpack.c.bf16 %v1090_v52, %v1089_v53  ;;  %v1239_v23 = vmul.f32 %v3687_v63, %v2916_v50  ;;  %v3748_v51 = vld [vmem:[%s4780_s2 + $0x108] sm:$0xff]   ;;  %v3747_v52 = vld [vmem:[%s4780_s2 + $0xf8] sm:$0xff]   ;;  %v3749_v53 = vld [vmem:[%s4780_s2 + $0x110] sm:$0xff]  }
  0xb2   :  { %3338 = vmatprep.subr.bf16.mxu1 %v802_v42  ;;  %3328 = vmatprep.mubr.msk.bf16.mxu0 %vm148_vm0, %v3733_v43  ;;  %v3698_v25 = vunpack.i.h.bf16 %v3696_v12  ;;  %v3697_v26 = vunpack.i.l.bf16 %v3696_v12 }
  0xb3   :  { %3340 = vmatprep.mubr.msk.bf16.mxu1 %vm148_vm0, %v3734_v45  ;;  %v1088_v16 = vmul.f32 %v3693_v57, %v4064_v30  ;;  %v1087_v17 = vmul.f32 %v3692_v58, %v4064_v30  ;;  %v1254_v34 = vpack.c.bf16 %v1240_v22, %v1239_v23  ;;  %v3744_v45 = vld [vmem:[%s4780_s2 + $0xe8] sm:$0xff]  }
  0xb4   :  { %3351 = vmatpush3.bf16.msra.mxu0 %v954_v37  ;;  %v3701_v62 = vpop.permute.xlu0 %3700  ;;  %v1238_v35 = vmul.f32 %v3698_v25, %v2916_v50 }
  0xb5   :  { %3339 = vmatpush3.bf16.msra.mxu1 %v802_v42  ;;  %3352 = vmatprep.subr.bf16.mxu0 %v953_v48  ;;  %v3703_v18 = vunpack.i.h.bf16 %v3701_v62  ;;  %v3702_v19 = vunpack.i.l.bf16 %v3701_v62  ;;  %v1103_v29 = vpack.c.bf16 %v1088_v16, %v1087_v17  ;;  %v3706_v31 = vpop.permute.xlu1 %3705 }
  0xb6   :  { %3364 = vmatprep.subr.bf16.mxu1 %v1105_v49  ;;  %v3708_v36 = vunpack.i.h.bf16 %v3706_v31  ;;  %v3707_v37 = vunpack.i.l.bf16 %v3706_v31 }
  0xb7   :  { %3329 = vmatmul.mubr.msk.bf16.gmra.mxu0 %vm148_vm0, %v3735_v59  ;;  %v1086_v27 = vmul.f32 %v3703_v18, %v4064_v30  ;;  %v1085_v28 = vmul.f32 %v3702_v19, %v4064_v30  ;;  %v1237_v30 = vmul.f32 %v3697_v26, %v2916_v50 }
  0xb8   :  { %3341 = vmatmul.mubr.msk.bf16.vlgmr.msra.gmra.mxu1 %vm148_vm0, %v3736_v60  ;;  %3353 = vmatpush3.bf16.msra.mxu0 %v953_v48  ;;  %v1236_v41 = vmul.f32 %v3708_v36, %v2916_v50  ;;  %v1235_v42 = vmul.f32 %v3707_v37, %v2916_v50  ;;  %v3746_v48 = vld [vmem:[%s4780_s2 + $0x100] sm:$0xff]  }
  0xb9   :  { %3365 = vmatpush3.bf16.msra.mxu1 %v1105_v49  ;;  %3354 = vmatprep.subr.bf16.mxu0 %v952_v61  ;;  %v1102_v38 = vpack.c.bf16 %v1086_v27, %v1085_v28  ;;  %v1253_v43 = vpack.c.bf16 %v1238_v35, %v1237_v30 }
  0xba   :  { %3366 = vmatprep.subr.bf16.mxu1 %v1104_v15  ;;  %3344 = vmatprep.mubr.msk.bf16.mxu1 %vm148_vm0, %v3737_v20  ;;  %v1252_v46 = vpack.c.bf16 %v1236_v41, %v1235_v42 }
  0xbb   :  { %3356 = vmatprep.mubr.msk.bf16.mxu0 %vm148_vm0, %v3738_v21 }
  0xbc   :  { %3355 = vmatpush3.bf16.msra.mxu0 %v952_v61 }
  0xbd   :  { %3367 = vmatpush3.bf16.msra.mxu1 %v1104_v15  ;;  %3380 = vmatprep.subr.bf16.mxu0 %v1255_v24 }
  0xbe   :  { %3368 = vmatprep.subr.bf16.mxu1 %v1103_v29 }
  0xbf   :  { %3357 = vmatmul.mubr.msk.bf16.vlgmr.msra.gmra.mxu0 %vm148_vm0, %v3740_v32 }
  0xc0   :  { %3345 = vmatmul.mubr.msk.bf16.gmra.mxu1 %vm148_vm0, %v3739_v33  ;;  %3381 = vmatpush3.bf16.msra.mxu0 %v1255_v24 }
  0xc1   :  { %3369 = vmatpush3.bf16.msra.mxu1 %v1103_v29  ;;  %3382 = vmatprep.subr.bf16.mxu0 %v1254_v34  ;;  %v4213_v6 = vpop.permute.xlu0 %1401 }
  0xc2   :  { %3370 = vmatprep.subr.bf16.mxu1 %v1102_v38  ;;  %3360 = vmatprep.mubr.msk.bf16.mxu0 %vm148_vm0, %v3741_v39 }
  0xc3   :  { %3372 = vmatprep.mubr.msk.bf16.mxu1 %vm148_vm0, %v3742_v40 }
  0xc4   :  { %3383 = vmatpush3.bf16.msra.mxu0 %v1254_v34 }
  0xc5   :  { %3371 = vmatpush3.bf16.msra.mxu1 %v1102_v38  ;;  %3384 = vmatprep.subr.bf16.mxu0 %v1253_v43 }
  0xc7   :  { %3361 = vmatmul.mubr.msk.bf16.gmra.mxu0 %vm148_vm0, %v3743_v44 }
  0xc8   :  { %3373 = vmatmul.mubr.msk.bf16.vlgmr.msra.gmra.mxu1 %vm148_vm0, %v3744_v45  ;;  %3385 = vmatpush3.bf16.msra.mxu0 %v1253_v43 }
  0xc9   :  { %3386 = vmatprep.subr.bf16.mxu0 %v1252_v46  ;;  %3376 = vmatprep.mubr.msk.bf16.mxu1 %vm148_vm0, %v3745_v47 }
  0xca   :  { %3388 = vmatprep.mubr.msk.bf16.mxu0 %vm148_vm0, %v3746_v48 }
  0xcc   :  { %3387 = vmatpush3.bf16.msra.mxu0 %v1252_v46 }
  0xcf   :  { %3389 = vmatmul.mubr.msk.bf16.vlgmr.msra.gmra.mxu0 %vm148_vm0, %v3748_v51 }
  0xd0   :  { %3377 = vmatmul.mubr.msk.bf16.gmra.mxu1 %vm148_vm0, %v3747_v52  ;;  %3392 = vmatprep.mubr.msk.bf16.mxu0 %vm148_vm0, %v3749_v53 }
  0xd7   :  { %3393 = vmatmul.mubr.msk.bf16.gmra.mxu0 %vm148_vm0, %v3750_v54 }
 0x14f   :  { %v3262_v56 = vpop.f32.mrf.mxu0 }
 0x151   :  { %v4159_v49 = vpop.f32.mrf.mxu0 }
 0x153   :  { %v3263_v57 = vpop.f32.mrf.mxu0 }
 0x155   :  { %v4161_v58 = vpop.f32.mrf.mxu0 }
 0x157   :  { %v4163_v50 = vpop.f32.mrf.mxu0  ;;  %v3278_v59 = vpop.f32.mrf.mxu1 }
 0x159   :  { %v211_v60 = vpop.f32.mrf.mxu0  ;;  %v4165_v61 = vpop.f32.mrf.mxu1 }
 0x15b   :  { %v4167_v62 = vpop.f32.mrf.mxu0  ;;  %v3279_v55 = vpop.f32.mrf.mxu1 }
 0x15d   :  { %v214_v63 = vpop.f32.mrf.mxu0  ;;  %v4169_v12 = vpop.f32.mrf.mxu1 }
 0x15f   :  { %v4171_v13 = vpop.f32.mrf.mxu1  ;;  %v3294_v14 = vpop.f32.mrf.mxu0 }
 0x161   :  { %v308_v15 = vpop.f32.mrf.mxu1  ;;  %v4173_v16 = vpop.f32.mrf.mxu0 }
 0x162   :  { %v309_v17 = vadd.f32 %v308_v15, %v211_v60 }
 0x163   :  { %v4175_v18 = vpop.f32.mrf.mxu1  ;;  %v3295_v19 = vpop.f32.mrf.mxu0 }
 0x165   :  { %v311_v20 = vpop.f32.mrf.mxu1  ;;  %v4177_v21 = vpop.f32.mrf.mxu0 }
 0x166   :  { %v312_v22 = vadd.f32 %v311_v20, %v214_v63 }
 0x167   :  { %v4179_v23 = vpop.f32.mrf.mxu0 }
 0x168   :  { %v3310_v24 = vpop.f32.mrf.mxu1 }
 0x169   :  { %v450_v25 = vpop.f32.mrf.mxu0 }
 0x16a   :  { %v469_v26 = vadd.f32 %v450_v25, %v309_v17  ;;  %v4181_v27 = vpop.f32.mrf.mxu1  ;;  %v301_v17 = vadd.f32 %v3278_v59, %v3262_v56 }
 0x16b   :  { %v4183_v28 = vpop.f32.mrf.mxu0 }
 0x16c   :  { %v3311_v29 = vpop.f32.mrf.mxu1  ;;  %v467_v25 = vadd.f32 %v3294_v14, %v301_v17 }
 0x16d   :  { %v453_v31 = vpop.f32.mrf.mxu0 }
 0x16e   :  { %v470_v32 = vadd.f32 %v453_v31, %v312_v22  ;;  %v4185_v33 = vpop.f32.mrf.mxu1 }
 0x16f   :  { %v3326_v34 = vpop.f32.mrf.mxu0 }
 0x170   :  { %v4187_v35 = vpop.f32.mrf.mxu1 }
 0x171   :  { %v722_v30 = vpop.f32.mrf.mxu0 }
 0x172   :  { %v600_v36 = vpop.f32.mrf.mxu1 }
 0x173   :  { %v619_v37 = vadd.f32 %v600_v36, %v469_v26  ;;  %v3327_v38 = vpop.f32.mrf.mxu0  ;;  %v4205_v26 = vpop.permute.xlu1 %1406  ;;  %v304_v36 = vadd.f32 %v3279_v55, %v3263_v57 }
 0x174   :  { %v4189_v39 = vpop.f32.mrf.mxu1 }
 0x175   :  { %v4191_v40 = vpop.f32.mrf.mxu0 }
 0x176   :  { %v603_v41 = vpop.f32.mrf.mxu1 }
 0x177   :  { %v620_v42 = vadd.f32 %v603_v41, %v470_v32  ;;  %v4193_v43 = vpop.f32.mrf.mxu0  ;;  %v4217_v17 = vpop.permute.xlu1 %1391 }
 0x178   :  { %v3342_v44 = vpop.f32.mrf.mxu1 }
 0x179   :  { %v738_v45 = vpop.f32.mrf.mxu0 }
 0x17a   :  { %v4195_v46 = vadd.f32 %v738_v45, %v619_v37  ;;  %v872_v47 = vpop.f32.mrf.mxu1  ;;  %v617_v37 = vadd.f32 %v3310_v24, %v467_v25  ;;  %v468_v45 = vadd.f32 %v3295_v19, %v304_v36  ;;  %v293_v19 = vadd.f32 %v4165_v61, %v4159_v49  ;;  %v4225_v25 = vpop.permute.xlu0 %1396 }
 0x17b   :  { %v4197_v48 = vpop.f32.mrf.mxu0 }
 0x17c   :  { %v3343_v51 = vpop.f32.mrf.mxu1  ;;  %v618_v4 = vadd.f32 %v3311_v29, %v468_v45  ;;  %v465_v29 = vadd.f32 %v4173_v16, %v293_v19 }
 0x17d   :  { %v741_v52 = vpop.f32.mrf.mxu0 }
 0x17e   :  { %v4199_v53 = vadd.f32 %v741_v52, %v620_v42  ;;  %v875_v54 = vpop.f32.mrf.mxu1  ;;  %v755_v52 = vadd.f32 %v3326_v34, %v617_v37  ;;  %v756_v57 = vadd.f32 %v3327_v38, %v618_v4  ;;  %v296_v4 = vadd.f32 %v4169_v12, %v4161_v58 }
 0x17f   :  { %v3358_v60 = vpop.f32.mrf.mxu0  ;;  %v615_v38 = vadd.f32 %v4181_v27, %v465_v29 }
 0x180   :  { %v4201_v63 = vpop.f32.mrf.mxu1  ;;  %v905_v14 = vadd.f32 %v3342_v44, %v755_v52  ;;  %v906_v34 = vadd.f32 %v3343_v51, %v756_v57  ;;  %v1382_v52 = vpop.permute.xlu1 %1381  ;;  %v466_v61 = vadd.f32 %v4177_v21, %v296_v4 }
 0x181   :  { %v1022_v15 = vpop.f32.mrf.mxu0  ;;  %v753_v51 = vadd.f32 %v722_v30, %v615_v38 }
 0x182   :  { %v4203_v20 = vpop.f32.mrf.mxu1  ;;  %v1055_v55 = vadd.f32 %v3358_v60, %v905_v14  ;;  %v616_v16 = vadd.f32 %v4185_v33, %v466_v61 }
 0x183   :  { %v3359_v22 = vpop.f32.mrf.mxu0 }
 0x184   :  { %v4207_v31 = vpop.f32.mrf.mxu1  ;;  %v1056_v44 = vadd.f32 %v3359_v22, %v906_v34  ;;  %v754_v58 = vadd.f32 %v4191_v40, %v616_v16 }
 0x185   :  { %v1025_v32 = vpop.f32.mrf.mxu0 }
 0x186   :  { %v4209_v41 = vpop.f32.mrf.mxu1  ;;  %v904_v19 = vadd.f32 %v875_v54, %v754_v58 }
 0x187   :  { %v4211_v42 = vpop.f32.mrf.mxu0 }
 0x188   :  { %v3374_v56 = vpop.f32.mrf.mxu1  ;;  %v1054_v33 = vadd.f32 %v1025_v32, %v904_v19  ;;  %v320_v32 = vadd.f32 %v4175_v18, %v4167_v62 }
 0x189   :  { %v4215_v59 = vpop.f32.mrf.mxu0  ;;  %v1205_v36 = vadd.f32 %v3374_v56, %v1055_v55  ;;  %v1387_v55 = vpop.permute.xlu0 %1386 }
 0x18a   :  { %v1172_v5 = vpop.f32.mrf.mxu1  ;;  %v472_v29 = vadd.f32 %v4183_v28, %v320_v32  ;;  %v4434_v32 = vld [vmem:[%s4782_s1 + $0x3] ss:$0 sm:$0xff] }
 0x18b   :  { %v4219_v3 = vpop.f32.mrf.mxu0 }
 0x18c   :  { %v3375_v37 = vpop.f32.mrf.mxu1  ;;  %v622_v62 = vadd.f32 %v4189_v39, %v472_v29  ;;  %v2666_v29 = vld [vmem:[%s4784_s5 + $0x20] sm:$0xff] }
 0x18d   :  { %v4221_v24 = vpop.f32.mrf.mxu0  ;;  %v1206_v60 = vadd.f32 %v3375_v37, %v1056_v44 }
 0x18e   :  { %v1175_v21 = vpop.f32.mrf.mxu1  ;;  %v760_v4 = vadd.f32 %v4197_v48, %v622_v62  ;;  %v2668_v62 = vld [vmem:[%s4784_s5 + $0x30] sm:$0xff] }
 0x18f   :  { %v3390_v11 = vpop.f32.mrf.mxu0  ;;  %v1204_v37 = vadd.f32 %v1175_v21, %v1054_v33 }
 0x190   :  { %v1355_v45 = vadd.f32 %v3390_v11, %v1205_v36  ;;  %v903_v11 = vadd.f32 %v872_v47, %v753_v51  ;;  %v317_v36 = vadd.f32 %v4171_v13, %v4163_v50  ;;  %v1377_v50 = vpop.permute.xlu0 %1376  ;;  %v3378_v13 = vpop.f32.mrf.mxu1 }
 0x191   :  { %v1322_v10 = vpop.f32.mrf.mxu0 }
 0x192   :  { %v1411_v14 = vadd.f32 %v1382_v52, %v1355_v45  ;;  %v1053_v12 = vadd.f32 %v1022_v15, %v903_v11  ;;  %v471_v40 = vadd.f32 %v4179_v23, %v317_v36 }
 0x193   :  { %v3391_v49 = vpop.f32.mrf.mxu0 }
 0x194   :  { %v4232_v56 = vmax.f32 %v1411_v14, 0.0  ;;  %v1356_v57 = vadd.f32 %v3391_v49, %v1206_v60  ;;  %v1203_v34 = vadd.f32 %v1172_v5, %v1053_v12  ;;  %v1372_v5 = vpop.permute.xlu1 %1371  ;;  %v910_v60 = vadd.f32 %v4207_v31, %v760_v4 }
 0x195   :  { %v1325_v47 = vpop.f32.mrf.mxu0 }
 0x196   :  { %v1412_v22 = vadd.f32 %v1387_v55, %v1356_v57  ;;  %1465 = vrot.lane.b32.xlu1 %v4232_v56, %s3799_s0  ;;  %v1353_v30 = vadd.f32 %v1322_v10, %v1203_v34  ;;  %v1354_v15 = vadd.f32 %v1325_v47, %v1204_v37  ;;  %v621_v10 = vadd.f32 %v4187_v35, %v471_v40  ;;  %v1188_v35 = vpop.f32.mrf.mxu1  ;;  %v2662_v47 = vld [vmem:[%s4784_s5] sm:$0xff]  ;;  %v2663_v40 = vld [vmem:[%s4784_s5 + $0x8] sm:$0xff] }
 0x197   :  { %v3394_v52 = vpop.f32.mrf.mxu0 }
 0x198   :  { %v4238_v27 = vmax.f32 %v1412_v22, 0.0  ;;  %v1409_v54 = vadd.f32 %v1372_v5, %v1353_v30  ;;  %v759_v44 = vadd.f32 %v4193_v43, %v621_v10  ;;  %v1410_v45 = vadd.f32 %v1377_v50, %v1354_v15  ;;  %v3379_v39 = vpop.f32.mrf.mxu1  ;;  %v2664_v5 = vld [vmem:[%s4784_s5 + $0x10] sm:$0xff] }
 0x199   :  { %v1338_v38 = vpop.f32.mrf.mxu0 }
 0x19a   :  { %1429 = vrot.lane.b32.xlu1 %v4232_v56, %s3800_s7  ;;  %1467 = vrot.lane.b32.xlu0 %v4238_v27, %s3799_s0  ;;  %v4260_v23 = vmax.f32 %v1409_v54, 0.0  ;;  %v909_v18 = vadd.f32 %v4201_v63, %v759_v44  ;;  %v4270_v43 = vmax.f32 %v1410_v45, 0.0  ;;  %v1060_v63 = vadd.f32 %v4219_v3, %v910_v60  ;;  %v1191_v11 = vpop.f32.mrf.mxu1  ;;  %v2665_v44 = vld [vmem:[%s4784_s5 + $0x18] sm:$0xff] }
 0x19b   :  { %v3395_v61 = vpop.f32.mrf.mxu0 }
 0x19c   :  { %v1059_v28 = vadd.f32 %v4211_v42, %v909_v18  ;;  %v1210_v48 = vadd.f32 %v3379_v39, %v1060_v63  ;;  %v2667_v18 = vld [vmem:[%s4784_s5 + $0x28] sm:$0xff] }
 0x19d   :  { %v1341_v22 = vpop.f32.mrf.mxu0 }
 0x19e   :  { %1696 = vrot.lane.b32.xlu1 %v4232_v56, %s3801_s8  ;;  %1431 = vrot.lane.b32.xlu0 %v4238_v27, %s3800_s7  ;;  %v1209_v14 = vadd.f32 %v3378_v13, %v1059_v28  ;;  %v1360_v42 = vadd.f32 %v3395_v61, %v1210_v48  ;;  %v2669_v28 = vld [vmem:[%s4784_s5 + $0x38] sm:$0xff]  ;;  %v3792_v61 = vld [vmem:[%s4782_s1 + $0x1] ss:$0 sm:$0xff] }
 0x1a0   :  { %v1359_v49 = vadd.f32 %v3394_v52, %v1209_v14  ;;  %v1416_v3 = vadd.f32 %v4205_v26, %v1360_v42  ;;  %v908_v26 = vadd.f32 %v4209_v41, %v4199_v53 }
 0x1a2   :  { %1838 = vrot.lane.b32.xlu1 %v4232_v56, %s3802_s11  ;;  %1698 = vrot.lane.b32.xlu0 %v4238_v27, %s3801_s8  ;;  %v1415_v31 = vadd.f32 %v4213_v6, %v1359_v49  ;;  %v4294_v57 = vmax.f32 %v1416_v3, 0.0  ;;  %v907_v6 = vadd.f32 %v4203_v20, %v4195_v46  ;;  %v1058_v46 = vadd.f32 %v4221_v24, %v908_v26 }
 0x1a4   :  { %v4287_v51 = vmax.f32 %v1415_v31, 0.0  ;;  %v1057_v55 = vadd.f32 %v4215_v59, %v907_v6  ;;  %v1208_v58 = vadd.f32 %v1191_v11, %v1058_v46 }
 0x1a6   :  { %1461 = vrot.lane.b32.xlu1 %v4260_v23, %s3799_s0  ;;  %1840 = vrot.lane.b32.xlu0 %v4238_v27, %s3802_s11  ;;  %v1207_v16 = vadd.f32 %v1188_v35, %v1057_v55  ;;  %v1358_v41 = vadd.f32 %v1341_v22, %v1208_v58  ;;  %v3793_v55 = vld [vmem:[%s4782_s1] ss:$0 sm:$0xff] }
 0x1a8   :  { %v1357_v20 = vadd.f32 %v1338_v38, %v1207_v16  ;;  %v1414_v24 = vadd.f32 %v4225_v25, %v1358_v41  ;;  %v3755_v25 = vld [vmem:[%s4783_s4] sm:$0xff]  }
 0x1a9   :  { %3420 = vmatprep.mubr.msk.bf16.mxu0 %vm148_vm0, %v3755_v25 }
 0x1aa   :  { %1425 = vrot.lane.b32.xlu1 %v4260_v23, %s3800_s7  ;;  %1463 = vrot.lane.b32.xlu0 %v4270_v43, %s3799_s0  ;;  %v1413_v53 = vadd.f32 %v4217_v17, %v1357_v20  ;;  %v4326_v12 = vmax.f32 %v1414_v24, 0.0  ;;  %v3751_v17 = vld [vmem:[%s4783_s4 + $0x20] sm:$0xff]  }
 0x1ab   :  { %3404 = vmatprep.mubr.msk.bf16.mxu1 %vm148_vm0, %v3751_v17 }
 0x1ac   :  { %v4319_v59 = vmax.f32 %v1413_v53, 0.0 }
 0x1ae   :  { %1692 = vrot.lane.b32.xlu1 %v4260_v23, %s3801_s8  ;;  %1427 = vrot.lane.b32.xlu0 %v4270_v43, %s3800_s7 }
 0x1b2   :  { %1834 = vrot.lane.b32.xlu1 %v4260_v23, %s3802_s11  ;;  %1694 = vrot.lane.b32.xlu0 %v4270_v43, %s3801_s8 }
 0x1b6   :  { %1836 = vrot.lane.b32.xlu0 %v4270_v43, %s3802_s11  ;;  %1473 = vrot.lane.b32.xlu1 %v4287_v51, %s3799_s0 }
 0x1ba   :  { %1437 = vrot.lane.b32.xlu1 %v4287_v51, %s3800_s7  ;;  %1475 = vrot.lane.b32.xlu0 %v4294_v57, %s3799_s0 }
 0x1be   :  { %1704 = vrot.lane.b32.xlu1 %v4287_v51, %s3801_s8  ;;  %1439 = vrot.lane.b32.xlu0 %v4294_v57, %s3800_s7 }
 0x1c2   :  { %1846 = vrot.lane.b32.xlu1 %v4287_v51, %s3802_s11  ;;  %1706 = vrot.lane.b32.xlu0 %v4294_v57, %s3801_s8 }
 0x1c6   :  { %2106 = vrot.lane.b32.xlu1 %v4287_v51, %s3803_s12  ;;  %1848 = vrot.lane.b32.xlu0 %v4294_v57, %s3802_s11 }
 0x1ca   :  { %1469 = vrot.lane.b32.xlu1 %v4319_v59, %s3799_s0  ;;  %2108 = vrot.lane.b32.xlu0 %v4294_v57, %s3803_s12 }
 0x1ce   :  { %2248 = vrot.lane.b32.xlu1 %v4287_v51, %s3804_s13  ;;  %1471 = vrot.lane.b32.xlu0 %v4326_v12, %s3799_s0 }
 0x1d2   :  { %1433 = vrot.lane.b32.xlu1 %v4319_v59, %s3800_s7  ;;  %2250 = vrot.lane.b32.xlu0 %v4294_v57, %s3804_s13 }
 0x1d6   :  { %1700 = vrot.lane.b32.xlu1 %v4319_v59, %s3801_s8  ;;  %2100 = vrot.lane.b32.xlu0 %v4238_v27, %s3803_s12 }
 0x1da   :  { %1842 = vrot.lane.b32.xlu1 %v4319_v59, %s3802_s11  ;;  %1435 = vrot.lane.b32.xlu0 %v4326_v12, %s3800_s7 }
 0x1de   :  { %2102 = vrot.lane.b32.xlu1 %v4319_v59, %s3803_s12  ;;  %1702 = vrot.lane.b32.xlu0 %v4326_v12, %s3801_s8 }
 0x1e2   :  { %2244 = vrot.lane.b32.xlu1 %v4319_v59, %s3804_s13  ;;  %2242 = vrot.lane.b32.xlu0 %v4238_v27, %s3804_s13 }
 0x1e6   :  { %2098 = vrot.lane.b32.xlu1 %v4232_v56, %s3803_s12  ;;  %2096 = vrot.lane.b32.xlu0 %v4270_v43, %s3803_s12 }
 0x1ea   :  { %2240 = vrot.lane.b32.xlu1 %v4232_v56, %s3804_s13  ;;  %1844 = vrot.lane.b32.xlu0 %v4326_v12, %s3802_s11 }
 0x1ee   :  { %2094 = vrot.lane.b32.xlu1 %v4260_v23, %s3803_s12  ;;  %2238 = vrot.lane.b32.xlu0 %v4270_v43, %s3804_s13 }
 0x1f2   :  { %2236 = vrot.lane.b32.xlu1 %v4260_v23, %s3804_s13  ;;  %2392 = vrot.lane.b32.xlu0 %v4294_v57, %s3805_s14 }
 0x1f6   :  { %2390 = vrot.lane.b32.xlu1 %v4287_v51, %s3805_s14  ;;  %2534 = vrot.lane.b32.xlu0 %v4294_v57, %s3806_s15 }
 0x1fa   :  { %2532 = vrot.lane.b32.xlu1 %v4287_v51, %s3806_s15  ;;  %2104 = vrot.lane.b32.xlu0 %v4326_v12, %s3803_s12 }
 0x1fe   :  { %2386 = vrot.lane.b32.xlu1 %v4319_v59, %s3805_s14  ;;  %2246 = vrot.lane.b32.xlu0 %v4326_v12, %s3804_s13 }
 0x202   :  { %2528 = vrot.lane.b32.xlu1 %v4319_v59, %s3806_s15  ;;  %2384 = vrot.lane.b32.xlu0 %v4238_v27, %s3805_s14 }
 0x206   :  { %2382 = vrot.lane.b32.xlu1 %v4232_v56, %s3805_s14  ;;  %2526 = vrot.lane.b32.xlu0 %v4238_v27, %s3806_s15 }
 0x208   :  { %v4396_v19 = vpop.permute.xlu1 %1465 }
 0x20a   :  { %2524 = vrot.lane.b32.xlu1 %v4232_v56, %s3806_s15  ;;  %2388 = vrot.lane.b32.xlu0 %v4326_v12, %s3805_s14 }
 0x20c   :  { %v4402_v34 = vpop.permute.xlu1 %1429  ;;  %v4404_v21 = vpop.permute.xlu0 %1467 }
 0x20d   :  { %v1480_v25 = vmul.f32 %v3792_v61, %v4404_v21  ;;  %v3794_v21 = vld [vmem:[%s4782_s1 + $0x2] ss:$0 sm:$0xff] }
 0x20e   :  { %2378 = vrot.lane.b32.xlu1 %v4260_v23, %s3805_s14  ;;  %2530 = vrot.lane.b32.xlu0 %v4326_v12, %s3806_s15 }
 0x210   :  { %v4410_v33 = vpop.permute.xlu1 %1696  ;;  %v4412_v30 = vpop.permute.xlu0 %1431 }
 0x212   :  { %2520 = vrot.lane.b32.xlu1 %v4260_v23, %s3806_s15  ;;  %2380 = vrot.lane.b32.xlu0 %v4270_v43, %s3805_s14 }
 0x214   :  { %v1839_v36 = vpop.permute.xlu1 %1838  ;;  %v4421_v37 = vpop.permute.xlu0 %1698 }
 0x215   :  { %v1852_v10 = vmul.f32 %v4434_v32, %v1839_v36 }
 0x216   :  { %2672 = vperm.xlu1 %3710, %v2662_v47   ;;  %2522 = vrot.lane.b32.xlu0 %v4270_v43, %s3806_s15 }
 0x218   :  { %v1462_v54 = vpop.permute.xlu1 %1461  ;;  %v1841_v15 = vpop.permute.xlu0 %1840 }
 0x219   :  { %v1853_v50 = vmul.f32 %v4434_v32, %v1841_v15 }
 0x21a   :  { %2682 = vperm.xlu1 %3710, %v2664_v5   ;;  %2677 = vperm.xlu0 %3709, %v2663_v40   ;;  %v1479_v5 = vmul.f32 %v3792_v61, %v4396_v19 }
 0x21b   :  { %v4438_v13 = vpack.c.bf16 %v1853_v50, %v1852_v10 }
 0x21c   :  { %v4446_v45 = vpop.permute.xlu1 %1425  ;;  %v1464_v52 = vpop.permute.xlu0 %1463  ;;  %v1495_v50 = vpack.c.bf16 %v1480_v25, %v1479_v5 }
 0x21d   :  { %v1441_v25 = vmul.f32 %v3793_v55, %v4446_v45 }
 0x21e   :  { %2692 = vperm.xlu1 %3710, %v2666_v29   ;;  %2687 = vperm.xlu0 %3709, %v2665_v44   ;;  %v1478_v29 = vmul.f32 %v3792_v61, %v1464_v52  ;;  %v1477_v44 = vmul.f32 %v3792_v61, %v1462_v54 }
 0x220   :  { %v4454_v35 = vpop.permute.xlu1 %1692  ;;  %v4456_v4 = vpop.permute.xlu0 %1427 }
 0x221   :  { %v1708_v45 = vmul.f32 %v3794_v21, %v4454_v35  ;;  %v3756_v35 = vld [vmem:[%s4783_s4 + $0x8] sm:$0xff]  }
 0x222   :  { %2702 = vperm.xlu1 %3710, %v2668_v62   ;;  %2697 = vperm.xlu0 %3709, %v2667_v18  }
 0x224   :  { %v4461_v38 = vpop.permute.xlu1 %1834  ;;  %v4463_v60 = vpop.permute.xlu0 %1694 }
 0x226   :  { %2707 = vperm.xlu0 %3709, %v2669_v28   ;;  %v1494_v28 = vpack.c.bf16 %v1478_v29, %v1477_v44 }
 0x228   :  { %v4465_v14 = vpop.permute.xlu0 %1836  ;;  %v1474_v39 = vpop.permute.xlu1 %1473 }
 0x229   :  { %v1483_v48 = vmul.f32 %v3792_v61, %v1474_v39 }
 0x22c   :  { %v1438_v63 = vpop.permute.xlu1 %1437  ;;  %v1476_v49 = vpop.permute.xlu0 %1475 }
 0x22d   :  { %v1484_v31 = vmul.f32 %v3792_v61, %v1476_v49  ;;  %v1447_v26 = vmul.f32 %v3793_v55, %v1438_v63  ;;  %v1444_v63 = vmul.f32 %v3793_v55, %v4412_v30  ;;  %v1711_v30 = vmul.f32 %v3794_v21, %v4421_v37 }
 0x22f   :  { %v1497_v42 = vpack.c.bf16 %v1484_v31, %v1483_v48 }
 0x230   :  { %v1705_v3 = vpop.permute.xlu1 %1704  ;;  %v1440_v6 = vpop.permute.xlu0 %1439 }
 0x231   :  { %v1448_v16 = vmul.f32 %v3793_v55, %v1440_v6  ;;  %3396 = vmatprep.subr.bf16.mxu1 %v1497_v42  ;;  %v1714_v19 = vmul.f32 %v3794_v21, %v1705_v3  ;;  %v3753_v3 = vld [vmem:[%s4783_s4 + $0x30] sm:$0xff]  }
 0x232   :  { %3397 = vmatpush3.bf16.msra.mxu1 %v1497_v42  ;;  %v1443_v42 = vmul.f32 %v3793_v55, %v4402_v34  ;;  %v1710_v34 = vmul.f32 %v3794_v21, %v4410_v33  ;;  %v3754_v33 = vld [vmem:[%s4783_s4 + $0x38] sm:$0xff]  }
 0x233   :  { %v1460_v11 = vpack.c.bf16 %v1448_v16, %v1447_v26 }
 0x234   :  { %v4473_v46 = vpop.permute.xlu1 %1846  ;;  %v1707_v20 = vpop.permute.xlu0 %1706  ;;  %v1458_v26 = vpack.c.bf16 %v1444_v63, %v1443_v42  ;;  %v3758_v63 = vld [vmem:[%s4783_s4 + $0x48] sm:$0xff]  }
 0x235   :  { %3412 = vmatprep.subr.bf16.mxu0 %v1460_v11  ;;  %v1715_v39 = vmul.f32 %v3794_v21, %v1707_v20  ;;  %v1442_v20 = vmul.f32 %v3793_v55, %v4456_v4  ;;  %v1726_v4 = vpack.c.bf16 %v1711_v30, %v1710_v34 }
 0x236   :  { %3413 = vmatpush3.bf16.msra.mxu0 %v1460_v11 }
 0x237   :  { %v1728_v48 = vpack.c.bf16 %v1715_v39, %v1714_v19  ;;  %v1457_v5 = vpack.c.bf16 %v1442_v20, %v1441_v25  ;;  %v1988_v19 = vpack.c.bf16 %v4294_v57, %v4287_v51  ;;  %v1851_v51 = vmul.f32 %v4434_v32, %v4465_v14  ;;  %v3764_v20 = vld [vmem:[%s4783_s4 + $0x68] sm:$0xff]  }
 0x238   :  { %v4475_v22 = vpop.permute.xlu1 %2106  ;;  %v1849_v58 = vpop.permute.xlu0 %1848  ;;  %v1987_v57 = vpack.c.bf16 %v4326_v12, %v4319_v59  ;;  %v3763_v59 = vld [vmem:[%s4783_s4 + $0x60] sm:$0xff]  }
 0x23c   :  { %v1470_v53 = vpop.permute.xlu1 %1469  ;;  %v4477_v41 = vpop.permute.xlu0 %2108 }
 0x23d   :  { %v1481_v47 = vmul.f32 %v3792_v61, %v1470_v53 }
 0x240   :  { %v4479_v24 = vpop.permute.xlu1 %2248  ;;  %v1472_v17 = vpop.permute.xlu0 %1471 }
 0x241   :  { %v1482_v36 = vmul.f32 %v3792_v61, %v1472_v17  ;;  %v3752_v61 = vld [vmem:[%s4783_s4 + $0x28] sm:$0xff]  }
 0x243   :  { %v1496_v40 = vpack.c.bf16 %v1482_v36, %v1481_v47 }
 0x244   :  { %v1434_v15 = vpop.permute.xlu1 %1433  ;;  %v4483_v10 = vpop.permute.xlu0 %2250 }
 0x245   :  { %3398 = vmatprep.subr.bf16.mxu1 %v1496_v40  ;;  %v1445_v31 = vmul.f32 %v3793_v55, %v1434_v15  ;;  %v1857_v15 = vmul.f32 %v4434_v32, %v1849_v58 }
 0x246   :  { %3399 = vmatpush3.bf16.msra.mxu1 %v1496_v40  ;;  %v1709_v40 = vmul.f32 %v3794_v21, %v4463_v60  ;;  %v3757_v60 = vld [vmem:[%s4783_s4 + $0x40] sm:$0xff]  }
 0x247   :  { %3400 = vmatprep.subr.bf16.mxu1 %v1495_v50 }
 0x248   :  { %v1701_v62 = vpop.permute.xlu1 %1700  ;;  %v4485_v18 = vpop.permute.xlu0 %2100  ;;  %v1725_v58 = vpack.c.bf16 %v1709_v40, %v1708_v45 }
 0x249   :  { %v1712_v53 = vmul.f32 %v3794_v21, %v1701_v62 }
 0x24a   :  { %3401 = vmatpush3.bf16.msra.mxu1 %v1495_v50 }
 0x24b   :  { %3402 = vmatprep.subr.bf16.mxu1 %v1494_v28 }
 0x24c   :  { %v1843_v49 = vpop.permute.xlu1 %1842  ;;  %v1436_v52 = vpop.permute.xlu0 %1435 }
 0x24d   :  { %v1446_v54 = vmul.f32 %v3793_v55, %v1436_v52  ;;  %v1856_v55 = vmul.f32 %v4434_v32, %v4473_v46  ;;  %v3759_v46 = vld [vmem:[%s4783_s4 + $0x10] sm:$0xff]  }
 0x24e   :  { %3403 = vmatpush3.bf16.msra.mxu1 %v1494_v28 }
 0x24f   :  { %v1459_v6 = vpack.c.bf16 %v1446_v54, %v1445_v31  ;;  %3428 = vmatprep.subr.bf16.mxu1 %v1728_v48  ;;  %v1870_v44 = vpack.c.bf16 %v1857_v15, %v1856_v55  ;;  %v3761_v31 = vld [vmem:[%s4783_s4 + $0x50] sm:$0xff]   ;;  %v3760_v54 = vld [vmem:[%s4783_s4 + $0x18] sm:$0xff]  }
 0x250   :  { %v4499_v16 = vpop.permute.xlu1 %2102  ;;  %v1703_v11 = vpop.permute.xlu0 %1702 }
 0x251   :  { %v1713_v17 = vmul.f32 %v3794_v21, %v1703_v11  ;;  %3405 = vmatmul.mubr.msk.bf16.vlgmr.msra.gmra.mxu1 %vm148_vm0, %v3752_v61  ;;  %3414 = vmatprep.subr.bf16.mxu0 %v1459_v6  ;;  %v1854_v21 = vmul.f32 %v4434_v32, %v1843_v49  ;;  %v1850_v61 = vmul.f32 %v4434_v32, %v4461_v38 }
 0x252   :  { %3415 = vmatpush3.bf16.msra.mxu0 %v1459_v6  ;;  %3429 = vmatpush3.bf16.msra.mxu1 %v1728_v48  ;;  %v3795_v6 = vld [vmem:[%s4782_s1 + $0x5] ss:$0 sm:$0xff]  ;;  %v1986_v38 = vpack.c.bf16 %v4238_v27, %v4232_v56 }
 0x253   :  { %v1727_v47 = vpack.c.bf16 %v1713_v17, %v1712_v53  ;;  %3416 = vmatprep.subr.bf16.mxu0 %v1458_v26  ;;  %3408 = vmatprep.mubr.msk.bf16.mxu1 %vm148_vm0, %v3753_v3  ;;  %v1867_v12 = vpack.c.bf16 %v1851_v51, %v1850_v61  ;;  %v3762_v3 = vld [vmem:[%s4783_s4 + $0x58] sm:$0xff]   ;;  %v3765_v56 = vld [vmem:[%s4783_s4 + $0x80] sm:$0xff]   ;;  %v3767_v17 = vld [vmem:[%s4783_s4 + $0x70] sm:$0xff]  }
 0x254   :  { %v4506_v37 = vpop.permute.xlu1 %2244  ;;  %v4508_v36 = vpop.permute.xlu0 %2242  ;;  %v3773_v51 = vld [vmem:[%s4783_s4 + $0xc0] sm:$0xff]   ;;  %v3798_v61 = vld [vmem:[%s4782_s1 + $0x8] ss:$0 sm:$0xff] }
 0x255   :  { %3430 = vmatprep.subr.bf16.mxu1 %v1727_v47 }
 0x256   :  { %3417 = vmatpush3.bf16.msra.mxu0 %v1458_v26  ;;  %3431 = vmatpush3.bf16.msra.mxu1 %v1727_v47  ;;  %v2116_v26 = vmul.f32 %v3795_v6, %v4475_v22  ;;  %v1985_v22 = vpack.c.bf16 %v4270_v43, %v4260_v23  ;;  %v2114_v23 = vmul.f32 %v3795_v6, %v4499_v16  ;;  %v3769_v16 = vld [vmem:[%s4783_s4 + $0x90] sm:$0xff]  }
 0x257   :  { %3418 = vmatprep.subr.bf16.mxu0 %v1457_v5  ;;  %3432 = vmatprep.subr.bf16.mxu1 %v1726_v4 }
 0x258   :  { %v4518_v50 = vpop.permute.xlu1 %2098  ;;  %v4520_v29 = vpop.permute.xlu0 %2096 }
 0x259   :  { %3409 = vmatmul.mubr.msk.bf16.gmra.mxu1 %vm148_vm0, %v3754_v33  ;;  %v2112_v43 = vmul.f32 %v3795_v6, %v4518_v50 }
 0x25a   :  { %3419 = vmatpush3.bf16.msra.mxu0 %v1457_v5  ;;  %3433 = vmatpush3.bf16.msra.mxu1 %v1726_v4  ;;  %v2113_v4 = vmul.f32 %v3795_v6, %v4485_v18  ;;  %v3768_v18 = vld [vmem:[%s4783_s4 + $0x78] sm:$0xff]  }
 0x25b   :  { %3434 = vmatprep.subr.bf16.mxu1 %v1725_v58  ;;  %3444 = vmatprep.subr.bf16.mxu0 %v1870_v44 }
 0x25c   :  { %v4532_v62 = vpop.permute.xlu1 %2240  ;;  %v1845_v28 = vpop.permute.xlu0 %1844  ;;  %3436 = vmatprep.mubr.msk.bf16.mxu1 %vm148_vm0, %v3757_v60  ;;  %v2128_v55 = vpack.c.bf16 %v2113_v4, %v2112_v43 }
 0x25d   :  { %v1855_v39 = vmul.f32 %v4434_v32, %v1845_v28  ;;  %3421 = vmatmul.mubr.msk.bf16.vlgmr.msra.gmra.mxu0 %vm148_vm0, %v3756_v35  ;;  %v2117_v32 = vmul.f32 %v3795_v6, %v4477_v41  ;;  %v3796_v41 = vld [vmem:[%s4782_s1 + $0x6] ss:$0 sm:$0xff] }
 0x25e   :  { %3435 = vmatpush3.bf16.msra.mxu1 %v1725_v58  ;;  %3445 = vmatpush3.bf16.msra.mxu0 %v1870_v44  ;;  %v2258_v53 = vmul.f32 %v3796_v41, %v4479_v24  ;;  %v3766_v24 = vld [vmem:[%s4783_s4 + $0x88] sm:$0xff]   ;;  %v2256_v40 = vmul.f32 %v3796_v41, %v4506_v37  ;;  %v2254_v15 = vmul.f32 %v3796_v41, %v4532_v62  ;;  %v3771_v28 = vld [vmem:[%s4783_s4 + $0xa0] sm:$0xff]  }
 0x25f   :  { %v1869_v52 = vpack.c.bf16 %v1855_v39, %v1854_v21  ;;  %3460 = vmatprep.subr.bf16.mxu1 %v1988_v19  ;;  %3424 = vmatprep.mubr.msk.bf16.mxu0 %vm148_vm0, %v3759_v46  ;;  %v2130_v27 = vpack.c.bf16 %v2117_v32, %v2116_v26  ;;  %v2255_v58 = vmul.f32 %v3796_v41, %v4508_v36  ;;  %v3797_v36 = vld [vmem:[%s4782_s1 + $0x7] ss:$0 sm:$0xff] }
 0x260   :  { %v4544_v48 = vpop.permute.xlu1 %2094  ;;  %v4546_v49 = vpop.permute.xlu0 %2238  ;;  %v2111_v37 = vmul.f32 %v3795_v6, %v4520_v29  ;;  %v3770_v29 = vld [vmem:[%s4783_s4 + $0x98] sm:$0xff]  }
 0x261   :  { %3437 = vmatmul.mubr.msk.bf16.vlgmr.msra.gmra.mxu1 %vm148_vm0, %v3758_v63  ;;  %3446 = vmatprep.subr.bf16.mxu0 %v1869_v52  ;;  %v2110_v50 = vmul.f32 %v3795_v6, %v4544_v48  ;;  %v2270_v35 = vpack.c.bf16 %v2255_v58, %v2254_v15  ;;  %v2253_v63 = vmul.f32 %v3796_v41, %v4546_v49  ;;  %v3772_v49 = vld [vmem:[%s4783_s4 + $0xa8] sm:$0xff]   ;;  %v3781_v15 = vld [vmem:[%s4783_s4 + $0x100] sm:$0xff]  }
 0x262   :  { %3447 = vmatpush3.bf16.msra.mxu0 %v1869_v52  ;;  %3461 = vmatpush3.bf16.msra.mxu1 %v1988_v19  ;;  %v3782_v58 = vld [vmem:[%s4783_s4 + $0x108] sm:$0xff]  }
 0x263   :  { %3448 = vmatprep.subr.bf16.mxu0 %v4438_v13  ;;  %3462 = vmatprep.subr.bf16.mxu1 %v1987_v57  ;;  %v2127_v21 = vpack.c.bf16 %v2111_v37, %v2110_v50  ;;  %v3780_v50 = vld [vmem:[%s4783_s4 + $0xe8] sm:$0xff]   ;;  %v3785_v37 = vld [vmem:[%s4783_s4 + $0x110] sm:$0xff]  }
 0x264   :  { %v4562_v42 = vpop.permute.xlu1 %2236  ;;  %v4564_v14 = vpop.permute.xlu0 %2392  ;;  %3440 = vmatprep.mubr.msk.bf16.mxu1 %vm148_vm0, %v3761_v31 }
 0x265   :  { %3425 = vmatmul.mubr.msk.bf16.gmra.mxu0 %vm148_vm0, %v3760_v54  ;;  %v2252_v39 = vmul.f32 %v3796_v41, %v4562_v42  ;;  %v2401_v52 = vmul.f32 %v3797_v36, %v4564_v14 }
 0x266   :  { %3449 = vmatpush3.bf16.msra.mxu0 %v4438_v13  ;;  %3463 = vmatpush3.bf16.msra.mxu1 %v1987_v57  ;;  %v2259_v13 = vmul.f32 %v3796_v41, %v4483_v10 }
 0x267   :  { %3450 = vmatprep.subr.bf16.mxu0 %v1867_v12  ;;  %3464 = vmatprep.subr.bf16.mxu1 %v1986_v38  ;;  %v2269_v57 = vpack.c.bf16 %v2253_v63, %v2252_v39 }
 0x268   :  { %v2391_v30 = vpop.permute.xlu1 %2390  ;;  %v4582_v11 = vpop.permute.xlu0 %2534  ;;  %3452 = vmatprep.mubr.msk.bf16.mxu0 %vm148_vm0, %v3763_v59  ;;  %v2272_v25 = vpack.c.bf16 %v2259_v13, %v2258_v53  ;;  %v3775_v59 = vld [vmem:[%s4783_s4 + $0xb0] sm:$0xff]  }
 0x269   :  { %3441 = vmatmul.mubr.msk.bf16.gmra.mxu1 %vm148_vm0, %v3762_v3  ;;  %v2400_v19 = vmul.f32 %v3797_v36, %v2391_v30  ;;  %v2543_v14 = vmul.f32 %v3798_v61, %v4582_v11  ;;  %v3774_v30 = vld [vmem:[%s4783_s4 + $0xc8] sm:$0xff]  }
 0x26a   :  { %3451 = vmatpush3.bf16.msra.mxu0 %v1867_v12  ;;  %3465 = vmatpush3.bf16.msra.mxu1 %v1986_v38 }
 0x26b   :  { %3466 = vmatprep.subr.bf16.mxu1 %v1985_v22  ;;  %3476 = vmatprep.subr.bf16.mxu0 %v2130_v27  ;;  %v2414_v54 = vpack.c.bf16 %v2401_v52, %v2400_v19 }
 0x26c   :  { %v2533_v10 = vpop.permute.xlu1 %2532  ;;  %v2105_v34 = vpop.permute.xlu0 %2104  ;;  %3468 = vmatprep.mubr.msk.bf16.mxu1 %vm148_vm0, %v3765_v56 }
 0x26d   :  { %v2115_v47 = vmul.f32 %v3795_v6, %v2105_v34  ;;  %3453 = vmatmul.mubr.msk.bf16.vlgmr.msra.gmra.mxu0 %vm148_vm0, %v3764_v20  ;;  %v2542_v42 = vmul.f32 %v3798_v61, %v2533_v10  ;;  %v3776_v10 = vld [vmem:[%s4783_s4 + $0xb8] sm:$0xff]  }
 0x26e   :  { %3467 = vmatpush3.bf16.msra.mxu1 %v1985_v22  ;;  %3477 = vmatpush3.bf16.msra.mxu0 %v2130_v27  ;;  %v3777_v27 = vld [vmem:[%s4783_s4 + $0xd0] sm:$0xff]  }
 0x26f   :  { %v2129_v5 = vpack.c.bf16 %v2115_v47, %v2114_v23  ;;  %3492 = vmatprep.subr.bf16.mxu1 %v2272_v25  ;;  %3456 = vmatprep.mubr.msk.bf16.mxu0 %vm148_vm0, %v3767_v17  ;;  %v2556_v32 = vpack.c.bf16 %v2543_v14, %v2542_v42  ;;  %v3779_v23 = vld [vmem:[%s4783_s4 + $0xe0] sm:$0xff]  }
 0x270   :  { %v2387_v33 = vpop.permute.xlu1 %2386  ;;  %v2247_v45 = vpop.permute.xlu0 %2246 }
 0x271   :  { %v2257_v60 = vmul.f32 %v3796_v41, %v2247_v45  ;;  %3469 = vmatmul.mubr.msk.bf16.vlgmr.msra.gmra.mxu1 %vm148_vm0, %v3766_v24  ;;  %3478 = vmatprep.subr.bf16.mxu0 %v2129_v5  ;;  %v2398_v38 = vmul.f32 %v3797_v36, %v2387_v33 }
 0x272   :  { %3479 = vmatpush3.bf16.msra.mxu0 %v2129_v5  ;;  %3493 = vmatpush3.bf16.msra.mxu1 %v2272_v25  ;;  %v3778_v5 = vld [vmem:[%s4783_s4 + $0xd8] sm:$0xff]  }
 0x273   :  { %v2271_v44 = vpack.c.bf16 %v2257_v60, %v2256_v40  ;;  %3480 = vmatprep.subr.bf16.mxu0 %v2128_v55  ;;  %3472 = vmatprep.mubr.msk.bf16.mxu1 %vm148_vm0, %v3769_v16  ;;  %v3783_v60 = vld [vmem:[%s4783_s4 + $0xf0] sm:$0xff]  }
 0x274   :  { %v2529_v46 = vpop.permute.xlu1 %2528  ;;  %v2385_v62 = vpop.permute.xlu0 %2384 }
 0x275   :  { %3457 = vmatmul.mubr.msk.bf16.gmra.mxu0 %vm148_vm0, %v3768_v18  ;;  %3494 = vmatprep.subr.bf16.mxu1 %v2271_v44  ;;  %v2397_v11 = vmul.f32 %v3797_v36, %v2385_v62  ;;  %v2540_v41 = vmul.f32 %v3798_v61, %v2529_v46 }
 0x276   :  { %3481 = vmatpush3.bf16.msra.mxu0 %v2128_v55  ;;  %3495 = vmatpush3.bf16.msra.mxu1 %v2271_v44  ;;  %v3784_v44 = vld [vmem:[%s4783_s4 + $0xf8] sm:$0xff]  }
 0x277   :  { %3482 = vmatprep.subr.bf16.mxu0 %v2127_v21  ;;  %3496 = vmatprep.subr.bf16.mxu1 %v2270_v35 }
 0x278   :  { %v2383_v48 = vpop.permute.xlu1 %2382  ;;  %v2527_v31 = vpop.permute.xlu0 %2526  ;;  %3484 = vmatprep.mubr.msk.bf16.mxu0 %vm148_vm0, %v3771_v28 }
 0x279   :  { %3473 = vmatmul.mubr.msk.bf16.gmra.mxu1 %vm148_vm0, %v3770_v29  ;;  %v2396_v3 = vmul.f32 %v3797_v36, %v2383_v48  ;;  %v2539_v34 = vmul.f32 %v3798_v61, %v2527_v31 }
 0x27a   :  { %3483 = vmatpush3.bf16.msra.mxu0 %v2127_v21  ;;  %3497 = vmatpush3.bf16.msra.mxu1 %v2270_v35  ;;  %v3786_v35 = vld [vmem:[%s4783_s4 + $0x118] sm:$0xff]  }
 0x27b   :  { %3498 = vmatprep.subr.bf16.mxu1 %v2269_v57  ;;  %3508 = vmatprep.subr.bf16.mxu0 %v2414_v54  ;;  %v2412_v20 = vpack.c.bf16 %v2397_v11, %v2396_v3 }
 0x27c   :  { %v2525_v12 = vpop.permute.xlu1 %2524  ;;  %v2389_v6 = vpop.permute.xlu0 %2388  ;;  %3500 = vmatprep.mubr.msk.bf16.mxu1 %vm148_vm0, %v3773_v51 }
 0x27d   :  { %v2399_v26 = vmul.f32 %v3797_v36, %v2389_v6  ;;  %3485 = vmatmul.mubr.msk.bf16.vlgmr.msra.gmra.mxu0 %vm148_vm0, %v3772_v49  ;;  %v2538_v53 = vmul.f32 %v3798_v61, %v2525_v12 }
 0x27e   :  { %3499 = vmatpush3.bf16.msra.mxu1 %v2269_v57  ;;  %3509 = vmatpush3.bf16.msra.mxu0 %v2414_v54 }
 0x27f   :  { %v2413_v56 = vpack.c.bf16 %v2399_v26, %v2398_v38  ;;  %3524 = vmatprep.subr.bf16.mxu1 %v2556_v32  ;;  %3488 = vmatprep.mubr.msk.bf16.mxu0 %vm148_vm0, %v3775_v59  ;;  %v2554_v47 = vpack.c.bf16 %v2539_v34, %v2538_v53 }
 0x280   :  { %v2379_v13 = vpop.permute.xlu1 %2378  ;;  %v2531_v22 = vpop.permute.xlu0 %2530 }
 0x281   :  { %v2541_v17 = vmul.f32 %v3798_v61, %v2531_v22  ;;  %3501 = vmatmul.mubr.msk.bf16.vlgmr.msra.gmra.mxu1 %vm148_vm0, %v3774_v30  ;;  %3510 = vmatprep.subr.bf16.mxu0 %v2413_v56  ;;  %v2394_v24 = vmul.f32 %v3797_v36, %v2379_v13 }
 0x282   :  { %3511 = vmatpush3.bf16.msra.mxu0 %v2413_v56  ;;  %3525 = vmatpush3.bf16.msra.mxu1 %v2556_v32 }
 0x283   :  { %v2555_v25 = vpack.c.bf16 %v2541_v17, %v2540_v41  ;;  %3512 = vmatprep.subr.bf16.mxu0 %v2412_v20  ;;  %3504 = vmatprep.mubr.msk.bf16.mxu1 %vm148_vm0, %v3777_v27 }
 0x284   :  { %v2381_v43 = vpop.permute.xlu0 %2380  ;;  %v2521_v16 = vpop.permute.xlu1 %2520 }
 0x285   :  { %v2395_v4 = vmul.f32 %v3797_v36, %v2381_v43  ;;  %3489 = vmatmul.mubr.msk.bf16.gmra.mxu0 %vm148_vm0, %v3776_v10  ;;  %3526 = vmatprep.subr.bf16.mxu1 %v2555_v25  ;;  %v2536_v45 = vmul.f32 %v3798_v61, %v2521_v16 }
 0x286   :  { %3513 = vmatpush3.bf16.msra.mxu0 %v2412_v20  ;;  %3527 = vmatpush3.bf16.msra.mxu1 %v2555_v25 }
 0x287   :  { %v2411_v40 = vpack.c.bf16 %v2395_v4, %v2394_v24  ;;  %3528 = vmatprep.subr.bf16.mxu1 %v2554_v47  ;;  %3516 = vmatprep.mubr.msk.bf16.mxu0 %vm148_vm0, %v3779_v23 }
 0x288   :  { %v2523_v33 = vpop.permute.xlu0 %2522 }
 0x289   :  { %v2537_v55 = vmul.f32 %v3798_v61, %v2523_v33  ;;  %3505 = vmatmul.mubr.msk.bf16.gmra.mxu1 %vm148_vm0, %v3778_v5  ;;  %3514 = vmatprep.subr.bf16.mxu0 %v2411_v40 }
 0x28a   :  { %3515 = vmatpush3.bf16.msra.mxu0 %v2411_v40  ;;  %3529 = vmatpush3.bf16.msra.mxu1 %v2554_v47 }
 0x28b   :  { %v2553_v18 = vpack.c.bf16 %v2537_v55, %v2536_v45  ;;  %3532 = vmatprep.mubr.msk.bf16.mxu1 %vm148_vm0, %v3781_v15 }
 0x28d   :  { %3517 = vmatmul.mubr.msk.bf16.vlgmr.msra.gmra.mxu0 %vm148_vm0, %v3780_v50  ;;  %3530 = vmatprep.subr.bf16.mxu1 %v2553_v18 }
 0x28e   :  { %3531 = vmatpush3.bf16.msra.mxu1 %v2553_v18  ;;  %3520 = vmatprep.mubr.msk.bf16.mxu0 %vm148_vm0, %v3783_v60 }
 0x291   :  { %3533 = vmatmul.mubr.msk.bf16.vlgmr.msra.gmra.mxu1 %vm148_vm0, %v3782_v58  ;;  %v4727_v18 = vpop.permute.xlu1 %2672 }
 0x292   :  { %3536 = vmatprep.mubr.msk.bf16.mxu1 %vm148_vm0, %v3785_v37 }
 0x295   :  { %3521 = vmatmul.mubr.msk.bf16.gmra.mxu0 %vm148_vm0, %v3784_v44 }
 0x299   :  { %3537 = vmatmul.mubr.msk.bf16.gmra.mxu1 %vm148_vm0, %v3786_v35 }
 0x311   :  { %v3406_v46 = vpop.f32.mrf.mxu1 }
 0x313   :  { %v1564_v62 = vpop.f32.mrf.mxu1 }
 0x315   :  { %v3407_v28 = vpop.f32.mrf.mxu1 }
 0x317   :  { %v1567_v21 = vpop.f32.mrf.mxu1 }
 0x319   :  { %v3410_v39 = vpop.f32.mrf.mxu1 }
 0x31b   :  { %v4703_v36 = vpop.f32.mrf.mxu1 }
 0x31d   :  { %v4705_v19 = vpop.f32.mrf.mxu1  ;;  %v3422_v29 = vpop.f32.mrf.mxu0 }
 0x31e   :  { %v1670_v40 = vadd.f32 %v3422_v29, %v3406_v46 }
 0x31f   :  { %v4707_v63 = vpop.f32.mrf.mxu1  ;;  %v1661_v52 = vpop.f32.mrf.mxu0 }
 0x320   :  { %v1662_v45 = vadd.f32 %v1661_v52, %v1564_v62  ;;  %v4733_v62 = vpop.permute.xlu0 %2677 }
 0x321   :  { %v3423_v48 = vpop.f32.mrf.mxu0  ;;  %v3438_v31 = vpop.f32.mrf.mxu1 }
 0x322   :  { %v1828_v55 = vadd.f32 %v3438_v31, %v1670_v40  ;;  %v1673_v58 = vadd.f32 %v3423_v48, %v3407_v28 }
 0x323   :  { %v1664_v51 = vpop.f32.mrf.mxu0  ;;  %v1795_v57 = vpop.f32.mrf.mxu1 }
 0x324   :  { %v1826_v37 = vadd.f32 %v1795_v57, %v1662_v45  ;;  %v1665_v7 = vadd.f32 %v1664_v51, %v1567_v21  ;;  %v2683_v45 = vpop.permute.xlu1 %2682 }
 0x325   :  { %v3426_v54 = vpop.f32.mrf.mxu0  ;;  %v3439_v61 = vpop.f32.mrf.mxu1 }
 0x326   :  { %v1829_v8 = vadd.f32 %v3439_v61, %v1673_v58  ;;  %v1686_v52 = vadd.f32 %v3426_v54, %v3410_v39 }
 0x327   :  { %v1677_v42 = vpop.f32.mrf.mxu0  ;;  %v1798_v49 = vpop.f32.mrf.mxu1 }
 0x328   :  { %v1678_v28 = vadd.f32 %v1677_v42, %v4703_v36  ;;  %v1827_v48 = vadd.f32 %v1798_v49, %v1665_v7 }
 0x329   :  { %v3427_v14 = vpop.f32.mrf.mxu0  ;;  %v3442_v59 = vpop.f32.mrf.mxu1 }
 0x32a   :  { %v1689_v21 = vadd.f32 %v3427_v14, %v4705_v19 }
 0x32b   :  { %v4709_v12 = vpop.f32.mrf.mxu0  ;;  %v1811_v6 = vpop.f32.mrf.mxu1 }
 0x32c   :  { %v1830_v51 = vadd.f32 %v1811_v6, %v1678_v28  ;;  %v1681_v7 = vadd.f32 %v4709_v12, %v4707_v63  ;;  %v2693_v12 = vpop.permute.xlu1 %2692 }
 0x32d   :  { %v4711_v32 = vpop.f32.mrf.mxu1  ;;  %v3454_v38 = vpop.f32.mrf.mxu0 }
 0x32e   :  { %v1970_v44 = vadd.f32 %v3454_v38, %v1828_v55  ;;  %v1832_v55 = vadd.f32 %v3442_v59, %v1686_v52  ;;  %v1833_v36 = vadd.f32 %v4711_v32, %v1689_v21 }
 0x32f   :  { %v4713_v3 = vpop.f32.mrf.mxu1  ;;  %v1937_v26 = vpop.f32.mrf.mxu0 }
 0x330   :  { %v1968_v1 = vadd.f32 %v1937_v26, %v1826_v37 }
 0x331   :  { %v3455_v30 = vpop.f32.mrf.mxu0  ;;  %v3470_v11 = vpop.f32.mrf.mxu1 }
 0x332   :  { %v2088_v0 = vadd.f32 %v3470_v11, %v1970_v44  ;;  %v1971_v31 = vadd.f32 %v3455_v30, %v1829_v8 }
 0x333   :  { %v1940_v56 = vpop.f32.mrf.mxu0  ;;  %v2055_v27 = vpop.f32.mrf.mxu1 }
 0x334   :  { %v2086_v40 = vadd.f32 %v2055_v27, %v1968_v1  ;;  %v1969_v58 = vadd.f32 %v1940_v56, %v1827_v48  ;;  %v1831_v56 = vadd.f32 %v4713_v3, %v1681_v7 }
 0x335   :  { %v3458_v41 = vpop.f32.mrf.mxu0  ;;  %v3471_v13 = vpop.f32.mrf.mxu1 }
 0x336   :  { %v2089_v61 = vadd.f32 %v3471_v13, %v1971_v31  ;;  %v1974_v39 = vadd.f32 %v3458_v41, %v1832_v55 }
 0x337   :  { %v1953_v22 = vpop.f32.mrf.mxu0  ;;  %v2058_v20 = vpop.f32.mrf.mxu1 }
 0x338   :  { %v1972_v54 = vadd.f32 %v1953_v22, %v1830_v51  ;;  %v2087_v42 = vadd.f32 %v2058_v20, %v1969_v58 }
 0x339   :  { %v4715_v53 = vpop.f32.mrf.mxu0  ;;  %v3474_v17 = vpop.f32.mrf.mxu1 }
 0x33a   :  { %v2092_v30 = vadd.f32 %v3474_v17, %v1974_v39  ;;  %v1975_v27 = vadd.f32 %v4715_v53, %v1833_v36 }
 0x33b   :  { %v4717_v10 = vpop.f32.mrf.mxu0  ;;  %v4719_v34 = vpop.f32.mrf.mxu1 }
 0x33c   :  { %v2090_v41 = vadd.f32 %v4719_v34, %v1972_v54 }
 0x33d   :  { %v4721_v25 = vpop.f32.mrf.mxu1  ;;  %v3486_v23 = vpop.f32.mrf.mxu0 }
 0x33e   :  { %v2230_v2 = vadd.f32 %v3486_v23, %v2088_v0 }
 0x33f   :  { %v4723_v43 = vpop.f32.mrf.mxu1  ;;  %v2197_v47 = vpop.f32.mrf.mxu0 }
 0x340   :  { %v2228_v26 = vadd.f32 %v2197_v47, %v2086_v40 }
 0x341   :  { %v3487_v24 = vpop.f32.mrf.mxu0  ;;  %v3502_v4 = vpop.f32.mrf.mxu1 }
 0x342   :  { %v2372_v11 = vadd.f32 %v3502_v4, %v2230_v2  ;;  %v2231_v8 = vadd.f32 %v3487_v24, %v2089_v61  ;;  %v2688_v2 = vpop.permute.xlu0 %2687  ;;  %v1973_v24 = vadd.f32 %v4717_v10, %v1831_v56 }
 0x343   :  { %v2200_v5 = vpop.f32.mrf.mxu0  ;;  %v2339_v16 = vpop.f32.mrf.mxu1 }
 0x344   :  { %v2370_v1 = vadd.f32 %v2339_v16, %v2228_v26  ;;  %v2229_v13 = vadd.f32 %v2200_v5, %v2087_v42  ;;  %v2091_v34 = vadd.f32 %v4723_v43, %v1973_v24  ;;  %v4806_v5 = vld [vmem:[#allocation4_spill] sm:$0xff]  ;;  %v2703_v43 = vpop.permute.xlu1 %2702 }
 0x345   :  { %v3490_v15 = vpop.f32.mrf.mxu0  ;;  %v3503_v33 = vpop.f32.mrf.mxu1  ;;  %v4807_v31 = vunpack.c.l.bf16 %v4806_v5  ;;  %v4808_v21 = vunpack.c.h.bf16 %v4806_v5 }
 0x346   :  { %v2373_v19 = vadd.f32 %v3503_v33, %v2231_v8  ;;  %v2234_v32 = vadd.f32 %v3490_v15, %v2092_v30  ;;  %v2093_v33 = vadd.f32 %v4721_v25, %v1975_v27  ;;  %v2698_v10 = vpop.permute.xlu0 %2697  ;;  %v4809_v8 = vld [vmem:[#allocation5_spill] sm:$0xff] }
 0x347   :  { %v4725_v50 = vpop.f32.mrf.mxu0  ;;  %v2342_v60 = vpop.f32.mrf.mxu1 }
 0x348   :  { %v2371_v17 = vadd.f32 %v2342_v60, %v2229_v13  ;;  %v2232_v3 = vadd.f32 %v4725_v50, %v2090_v41 }
 0x349   :  { %v4729_v35 = vpop.f32.mrf.mxu0  ;;  %v3506_v9 = vpop.f32.mrf.mxu1 }
 0x34a   :  { %v2376_v53 = vadd.f32 %v3506_v9, %v2234_v32  ;;  %v2235_v60 = vadd.f32 %v4729_v35, %v2093_v33 }
 0x34b   :  { %v4731_v46 = vpop.f32.mrf.mxu0  ;;  %v2355_v29 = vpop.f32.mrf.mxu1 }
 0x34c   :  { %v2233_v50 = vadd.f32 %v4731_v46, %v2091_v34 }
 0x34d   :  { %v3507_v57 = vpop.f32.mrf.mxu1  ;;  %v3518_v38 = vpop.f32.mrf.mxu0 }
 0x34e   :  { %v2514_v0 = vadd.f32 %v3518_v38, %v2372_v11  ;;  %v2377_v11 = vadd.f32 %v3507_v57, %v2235_v60  ;;  %v4811_v57 = vunpack.c.h.bf16 %v4809_v8 }
 0x34f   :  { %v2358_v37 = vpop.f32.mrf.mxu1  ;;  %v2481_v44 = vpop.f32.mrf.mxu0 }
 0x350   :  { %v2512_v14 = vadd.f32 %v2481_v44, %v2370_v1  ;;  %v2375_v44 = vadd.f32 %v2358_v37, %v2233_v50  ;;  %v4810_v1 = vunpack.c.l.bf16 %v4809_v8 }
 0x351   :  { %v3519_v49 = vpop.f32.mrf.mxu0  ;;  %v3534_v59 = vpop.f32.mrf.mxu1 }
 0x352   :  { %v2656_v6 = vadd.f32 %v3534_v59, %v2514_v0  ;;  %v2515_v22 = vadd.f32 %v3519_v49, %v2373_v19 }
 0x353   :  { %v2484_v23 = vpop.f32.mrf.mxu0  ;;  %v2623_v63 = vpop.f32.mrf.mxu1 }
 0x354   :  { %v2712_v20 = vadd.f32 %v2683_v45, %v2656_v6  ;;  %v2654_v47 = vadd.f32 %v2623_v63, %v2512_v14  ;;  %v2513_v15 = vadd.f32 %v2484_v23, %v2371_v17  ;;  %v2374_v45 = vadd.f32 %v2355_v29, %v2232_v3  ;;  %v2708_v14 = vpop.permute.xlu0 %2707 }
 0x355   :  { %v3522_v4 = vpop.f32.mrf.mxu0  ;;  %v3535_v16 = vpop.f32.mrf.mxu1 }
 0x356   :  { %v2657_v52 = vadd.f32 %v3535_v16, %v2515_v22  ;;  %v2720_v40 = vadd.f32 %v2712_v20, %v4807_v31  ;;  %v2710_v28 = vadd.f32 %v4727_v18, %v2654_v47  ;;  %v2518_v55 = vadd.f32 %v3522_v4, %v2376_v53  ;;  %v4814_v22 = vld [vmem:[#allocation3_spill] sm:$0xff] }
 0x357   :  { %v2497_v48 = vpop.f32.mrf.mxu0  ;;  %v2626_v38 = vpop.f32.mrf.mxu1  ;;  %v4815_v20 = vunpack.c.l.bf16 %v4814_v22  ;;  %v4817_v33 = vunpack.c.h.bf16 %v4814_v22 }
 0x358   :  { %v2713_v25 = vadd.f32 %v2688_v2, %v2657_v52  ;;  %v2655_v9 = vadd.f32 %v2626_v38, %v2513_v15  ;;  %v2516_v58 = vadd.f32 %v2497_v48, %v2374_v45  ;;  %v2728_v39 = vmax.f32 %v2720_v40, 0.0 }
 0x359   :  { %v3523_v61 = vpop.f32.mrf.mxu0  ;;  %v3538_v26 = vpop.f32.mrf.mxu1  ;;  %v2718_v35 = vadd.f32 %v2710_v28, %v4810_v1 }
 0x35a   :  { %v2721_v51 = vadd.f32 %v2713_v25, %v4808_v21  ;;  %v2660_v18 = vadd.f32 %v3538_v26, %v2518_v55  ;;  %v2711_v29 = vadd.f32 %v4733_v62, %v2655_v9  ;;  %v2519_v36 = vadd.f32 %v3523_v61, %v2377_v11  ;;  %v4812_v62 = vld [vmem:[#allocation2_spill] sm:$0xff] }
 0x35b   :  { %v2500_v0 = vpop.f32.mrf.mxu0  ;;  %v2639_v7 = vpop.f32.mrf.mxu1  ;;  %v2726_v6 = vmax.f32 %v2718_v35, 0.0  ;;  %v4813_v41 = vunpack.c.l.bf16 %v4812_v62 }
 0x35c   :  { %v2729_v46 = vmax.f32 %v2721_v51, 0.0  ;;  %v2716_v54 = vadd.f32 %v2703_v43, %v2660_v18  ;;  %v2658_v42 = vadd.f32 %v2639_v7, %v2516_v58  ;;  %v2719_v49 = vadd.f32 %v2711_v29, %v4811_v57 }
 0x35d   :  { %v3539_v59 = vpop.f32.mrf.mxu1  ;;  %v2517_v30 = vadd.f32 %v2500_v0, %v2375_v44 }
 0x35e   :  { %v3093_v2 = vpack.c.bf16 %v2729_v46, %v2728_v39  ;;  %v2714_v19 = vadd.f32 %v2693_v12, %v2658_v42  ;;  %v2661_v37 = vadd.f32 %v3539_v59, %v2519_v36  ;;  %v2727_v56 = vmax.f32 %v2719_v49, 0.0 }
 0x35f   :  { %v2642_v27 = vpop.f32.mrf.mxu1  ;;  %v2724_v13 = vadd.f32 %v2716_v54, %v4813_v41  ;;  %v4816_v12 = vunpack.c.h.bf16 %v4812_v62 }
 0x360   :  { %3105 = vst [vmem:[%s4785_s6 + $0x8] sm:$0xff] %v3093_v2   ;;  %v2717_v23 = vadd.f32 %v2708_v14, %v2661_v37  ;;  %v2659_v63 = vadd.f32 %v2642_v27, %v2517_v30  ;;  %v3088_v32 = vpack.c.bf16 %v2727_v56, %v2726_v6  ;;  %v2722_v47 = vadd.f32 %v2714_v19, %v4815_v20 }
 0x361   :  { %v2732_v4 = vmax.f32 %v2724_v13, 0.0 }
 0x362   :  { %v2725_v24 = vadd.f32 %v2717_v23, %v4816_v12  ;;  %v2715_v17 = vadd.f32 %v2698_v10, %v2659_v63  ;;  %3089 = vst [vmem:[%s4785_s6] sm:$0xff] %v3088_v32   ;;  %v2730_v53 = vmax.f32 %v2722_v47, 0.0 }
 0x364   :  { %v2733_v16 = vmax.f32 %v2725_v24, 0.0  ;;  %v2723_v3 = vadd.f32 %v2715_v17, %v4817_v33 }
 0x366   :  { %v3103_v52 = vpack.c.bf16 %v2733_v16, %v2732_v4  ;;  %v2731_v34 = vmax.f32 %v2723_v3, 0.0 }
 0x368   :  { %3107 = vst [vmem:[%s4785_s6 + $0x18] sm:$0xff] %v3103_v52   ;;  %v3098_v5 = vpack.c.bf16 %v2731_v34, %v2730_v53 }
 0x36a   :  { %3106 = vst [vmem:[%s4785_s6 + $0x10] sm:$0xff] %v3098_v5  }

// kernel: resnet_exit1_part1l_forward.4
= control target key start
LH: loop header
LB: loop body
LE: loop exit
PB: predicated region body
PF: predicated region fallthrough
CT: control target
= control target key end

     0   :  { %s3991_s15 = smov 8   ;;  %s3992_s21 = smov 9   ;;  %vm284_vm0 = vcmask 523264   ;;  %s5246_s0 = inlined_call_operand.vmem [shape: bf16[9,64,128], index: 0, kind: input, shape index: {}]   ;;  %s5247_s2 = inlined_call_operand.vmem [shape: bf16[9,64,64], index: 2, kind: input, shape index: {}]   ;;  %s5248_s3 = inlined_call_operand.vmem [shape: f32[64,1], index: 3, kind: input, shape index: {}]   ;;  %s5249_s1 = inlined_call_operand.vmem [shape: f32[9,1,128], index: 1, kind: input, shape index: {}]   ;;  %s5250_s4 = inlined_call_operand.vmem [shape: bf16[9,64,64], index: 4, kind: input, shape index: {}]   ;;  %s5251_s5 = inlined_call_operand.vmem [shape: f32[64,1], index: 5, kind: input, shape index: {}]   ;;  %s5252_s6 = inlined_call_operand.vmem [shape: bf16[64,128], index: 6, kind: output, shape index: {}]  }
   0x1   :  { %v30_v0 = vld [vmem:[%s5246_s0 + $0x18] sm:$0xf]  ;;  %v31_v1 = vld [vmem:[%s5246_s0 + $0x1c] sm:$0xf]  ;;  %v28_v18 = vld [vmem:[%s5246_s0 + $0x10] sm:$0xf] }
   0x2   :  { %v2920_v2 = vld [vmem:[%s5246_s0 + $0x38] sm:$0xf]  ;;  %v2921_v3 = vld [vmem:[%s5246_s0 + $0x3c] sm:$0xf]  ;;  %v29_v19 = vld [vmem:[%s5246_s0 + $0x14] sm:$0xf] }
   0x3   :  { %v47_v4 = vmax.bf16 %v2920_v2, %v30_v0  ;;  %v2928_v5 = vld [vmem:[%s5246_s0 + $0x58] sm:$0xf]  ;;  %v2929_v6 = vld [vmem:[%s5246_s0 + $0x5c] sm:$0xf]  ;;  %v48_v7 = vmax.bf16 %v2921_v3, %v31_v1  ;;  %v2918_v20 = vld [vmem:[%s5246_s0 + $0x30] sm:$0xf] }
   0x4   :  { %v2936_v8 = vld [vmem:[%s5246_s0 + $0x78] sm:$0xf]  ;;  %v2937_v10 = vld [vmem:[%s5246_s0 + $0x7c] sm:$0xf]  ;;  %v2919_v22 = vld [vmem:[%s5246_s0 + $0x34] sm:$0xf]  ;;  %v45_v23 = vmax.bf16 %v2918_v20, %v28_v18 }
   0x5   :  { %v64_v9 = vmax.bf16 %v2928_v5, %v47_v4  ;;  %v65_v11 = vmax.bf16 %v2929_v6, %v48_v7  ;;  %v2944_v12 = vld [vmem:[%s5246_s0 + $0x98] sm:$0xf]  ;;  %v2945_v14 = vld [vmem:[%s5246_s0 + $0x9c] sm:$0xf]  ;;  %v2926_v24 = vld [vmem:[%s5246_s0 + $0x50] sm:$0xf]  ;;  %v46_v28 = vmax.bf16 %v2919_v22, %v29_v19 }
   0x6   :  { %v2952_v15 = vld [vmem:[%s5246_s0 + $0xb8] sm:$0xf]  ;;  %v2953_v16 = vld [vmem:[%s5246_s0 + $0xbc] sm:$0xf]  ;;  %v2927_v25 = vld [vmem:[%s5246_s0 + $0x54] sm:$0xf]  ;;  %v62_v33 = vmax.bf16 %v2926_v24, %v45_v23 }
   0x7   :  { %v81_v13 = vmax.bf16 %v2936_v8, %v64_v9  ;;  %v82_v17 = vmax.bf16 %v2937_v10, %v65_v11  ;;  %v2960_v27 = vld [vmem:[%s5246_s0 + $0xd8] sm:$0xf]  ;;  %v2934_v29 = vld [vmem:[%s5246_s0 + $0x70] sm:$0xf]  ;;  %v2961_v31 = vld [vmem:[%s5246_s0 + $0xdc] sm:$0xf]  ;;  %v63_v38 = vmax.bf16 %v2927_v25, %v46_v28 }
   0x8   :  { %v2968_v32 = vld [vmem:[%s5246_s0 + $0xf8] sm:$0xf]  ;;  %v2935_v34 = vld [vmem:[%s5246_s0 + $0x74] sm:$0xf]  ;;  %v2969_v36 = vld [vmem:[%s5246_s0 + $0xfc] sm:$0xf]  ;;  %v79_v42 = vmax.bf16 %v2934_v29, %v62_v33 }
   0x9   :  { %v98_v21 = vmax.bf16 %v2944_v12, %v81_v13  ;;  %v99_v26 = vmax.bf16 %v2945_v14, %v82_v17  ;;  %v2976_v37 = vld [vmem:[%s5246_s0 + $0x118] sm:$0xf]  ;;  %v2942_v39 = vld [vmem:[%s5246_s0 + $0x90] sm:$0xf]  ;;  %v2977_v41 = vld [vmem:[%s5246_s0 + $0x11c] sm:$0xf]  ;;  %v80_v47 = vmax.bf16 %v2935_v34, %v63_v38 }
   0xa   :  { %v2943_v43 = vld [vmem:[%s5246_s0 + $0x94] sm:$0xf]  ;;  %v2950_v44 = vld [vmem:[%s5246_s0 + $0xb0] sm:$0xf]  ;;  %v26_v48 = vld [vmem:[%s5246_s0 + $0x8] sm:$0xf]  ;;  %v96_v52 = vmax.bf16 %v2942_v39, %v79_v42 }
   0xb   :  { %v115_v30 = vmax.bf16 %v2952_v15, %v98_v21  ;;  %v116_v35 = vmax.bf16 %v2953_v16, %v99_v26  ;;  %v2951_v45 = vld [vmem:[%s5246_s0 + $0xb4] sm:$0xf]  ;;  %v27_v49 = vld [vmem:[%s5246_s0 + $0xc] sm:$0xf]  ;;  %v2916_v50 = vld [vmem:[%s5246_s0 + $0x28] sm:$0xf]  ;;  %v97_v58 = vmax.bf16 %v2943_v43, %v80_v47 }
   0xc   :  { %v2917_v53 = vld [vmem:[%s5246_s0 + $0x2c] sm:$0xf]  ;;  %v43_v54 = vmax.bf16 %v2916_v50, %v26_v48  ;;  %v2924_v55 = vld [vmem:[%s5246_s0 + $0x48] sm:$0xf]  ;;  %v2958_v59 = vld [vmem:[%s5246_s0 + $0xd0] sm:$0xf]  ;;  %v113_v63 = vmax.bf16 %v2950_v44, %v96_v52 }
   0xd   :  { %v132_v40 = vmax.bf16 %v2960_v27, %v115_v30  ;;  %v133_v46 = vmax.bf16 %v2961_v31, %v116_v35  ;;  %v2925_v56 = vld [vmem:[%s5246_s0 + $0x4c] sm:$0xf]  ;;  %v44_v60 = vmax.bf16 %v2917_v53, %v27_v49  ;;  %v2932_v61 = vld [vmem:[%s5246_s0 + $0x68] sm:$0xf]  ;;  %v2959_v0 = vld [vmem:[%s5246_s0 + $0xd4] sm:$0xf]  ;;  %v114_v5 = vmax.bf16 %v2951_v45, %v97_v58 }
   0xe   :  { %v2966_v1 = vld [vmem:[%s5246_s0 + $0xf0] sm:$0xf]  ;;  %v60_v2 = vmax.bf16 %v2924_v55, %v43_v54  ;;  %v2933_v3 = vld [vmem:[%s5246_s0 + $0x6c] sm:$0xf]  ;;  %v2967_v6 = vld [vmem:[%s5246_s0 + $0xf4] sm:$0xf]  ;;  %v130_v11 = vmax.bf16 %v2958_v59, %v113_v63 }
   0xf   :  { %v149_v51 = vmax.bf16 %v2968_v32, %v132_v40  ;;  %v150_v57 = vmax.bf16 %v2969_v36, %v133_v46  ;;  %v2974_v7 = vld [vmem:[%s5246_s0 + $0x110] sm:$0xf]  ;;  %v61_v8 = vmax.bf16 %v2925_v56, %v44_v60  ;;  %v2940_v9 = vld [vmem:[%s5246_s0 + $0x88] sm:$0xf]  ;;  %v2975_v12 = vld [vmem:[%s5246_s0 + $0x114] sm:$0xf]  ;;  %v131_v17 = vmax.bf16 %v2959_v0, %v114_v5 }
  0x10   :  { %v77_v13 = vmax.bf16 %v2932_v61, %v60_v2  ;;  %v2941_v14 = vld [vmem:[%s5246_s0 + $0x8c] sm:$0xf]  ;;  %v2948_v15 = vld [vmem:[%s5246_s0 + $0xa8] sm:$0xf]  ;;  %v24_v19 = vld [vmem:[%s5246_s0] sm:$0xf]  ;;  %v147_v22 = vmax.bf16 %v2966_v1, %v130_v11 }
  0x11   :  { %v4149_v62 = vmax.bf16 %v2976_v37, %v149_v51  ;;  %v4160_v4 = vmax.bf16 %v2977_v41, %v150_v57  ;;  %v78_v18 = vmax.bf16 %v2933_v3, %v61_v8  ;;  %v25_v20 = vld [vmem:[%s5246_s0 + $0x4] sm:$0xf]  ;;  %v2914_v21 = vld [vmem:[%s5246_s0 + $0x20] sm:$0xf]  ;;  %v2949_v24 = vld [vmem:[%s5246_s0 + $0xac] sm:$0xf]  ;;  %v148_v29 = vmax.bf16 %v2967_v6, %v131_v17 }
  0x12   :  { %v94_v23 = vmax.bf16 %v2940_v9, %v77_v13  ;;  %v2915_v25 = vld [vmem:[%s5246_s0 + $0x24] sm:$0xf]  ;;  %v41_v26 = vmax.bf16 %v2914_v21, %v24_v19  ;;  %v2922_v27 = vld [vmem:[%s5246_s0 + $0x40] sm:$0xf]  ;;  %v2956_v31 = vld [vmem:[%s5246_s0 + $0xc8] sm:$0xf]  ;;  %v4215_v34 = vmax.bf16 %v2974_v7, %v147_v22 }
  0x13   :  { %5269 = vst [vmem:[#allocation2_spill] sm:$0xff] %v4149_v62  ;;  %5270 = vst [vmem:[#allocation3_spill] sm:$0xff] %v4160_v4  ;;  %v5256_v10 = vunpack.c.l.bf16 %v4149_v62  ;;  %v5254_v16 = vunpack.c.l.bf16 %v4160_v4  ;;  %v95_v30 = vmax.bf16 %v2941_v14, %v78_v18  ;;  %v2923_v32 = vld [vmem:[%s5246_s0 + $0x44] sm:$0xf]  ;;  %v2930_v33 = vld [vmem:[%s5246_s0 + $0x60] sm:$0xf]  ;;  %v42_v37 = vmax.bf16 %v2915_v25, %v25_v20 }
  0x14   :  { %5271 = vst [vmem:[#allocation4_spill] sm:$0xff] %v4215_v34  ;;  %v111_v35 = vmax.bf16 %v2948_v15, %v94_v23  ;;  %v2957_v36 = vld [vmem:[%s5246_s0 + $0xcc] sm:$0xf]  ;;  %v58_v38 = vmax.bf16 %v2922_v27, %v41_v26  ;;  %v4222_v39 = vmax.bf16 %v2975_v12, %v148_v29  ;;  %v2964_v41 = vld [vmem:[%s5246_s0 + $0xe8] sm:$0xf]  ;;  %v5255_v44 = vunpack.c.l.bf16 %v4215_v34  ;;  %s3993_s25 = smov 7  }
  0x15   :  { %v4204_v28 = vpack.i.bf16 %v5254_v16, %v5256_v10  ;;  %v112_v40 = vmax.bf16 %v2949_v24, %v95_v30  ;;  %v2931_v42 = vld [vmem:[%s5246_s0 + $0x64] sm:$0xf]  ;;  %v2938_v43 = vld [vmem:[%s5246_s0 + $0x80] sm:$0xf]  ;;  %v2965_v46 = vld [vmem:[%s5246_s0 + $0xec] sm:$0xf]  ;;  %v59_v47 = vmax.bf16 %v2923_v32, %v42_v37  ;;  %v4327_v26 = vcombine.low %v4149_v62, %v4160_v4 }
  0x16   :  { %5272 = vst [vmem:[#allocation5_spill] sm:$0xff] %v4222_v39  ;;  %v128_v45 = vmax.bf16 %v2956_v31, %v111_v35  ;;  %v75_v48 = vmax.bf16 %v2930_v33, %v58_v38  ;;  %v5253_v49 = vunpack.c.l.bf16 %v4222_v39  ;;  %v2972_v51 = vld [vmem:[%s5246_s0 + $0x108] sm:$0xf]  ;;  %v2939_v52 = vld [vmem:[%s5246_s0 + $0x84] sm:$0xf]  ;;  %s3994_s28 = smov 1   ;;  %v4334_v27 = vcombine.low %v4215_v34, %v4222_v39 }
  0x17   :  { %3750 = vrot.lane.b32.xlu0 %v4204_v28, %s3991_s15  ;;  %v129_v50 = vmax.bf16 %v2957_v36, %v112_v40  ;;  %v2946_v53 = vld [vmem:[%s5246_s0 + $0xa0] sm:$0xf]  ;;  %v2973_v55 = vld [vmem:[%s5246_s0 + $0x10c] sm:$0xf]  ;;  %v76_v56 = vmax.bf16 %v2931_v42, %v59_v47  ;;  %v2947_v60 = vld [vmem:[%s5246_s0 + $0xa4] sm:$0xf] }
  0x18   :  { %v145_v54 = vmax.bf16 %v2964_v41, %v128_v45  ;;  %v92_v57 = vmax.bf16 %v2938_v43, %v75_v48  ;;  %v4254_v58 = vpack.i.bf16 %v5253_v49, %v5255_v44  ;;  %v2954_v61 = vld [vmem:[%s5246_s0 + $0xc0] sm:$0xf]  ;;  %v2955_v3 = vld [vmem:[%s5246_s0 + $0xc4] sm:$0xf]  ;;  %s3995_s29 = smov 127   ;;  %s3996_s30 = smov 121  }
  0x19   :  { %v146_v59 = vmax.bf16 %v2965_v46, %v129_v50  ;;  %v93_v0 = vmax.bf16 %v2939_v52, %v76_v56  ;;  %v2962_v5 = vld [vmem:[%s5246_s0 + $0xe0] sm:$0xf]  ;;  %v2963_v11 = vld [vmem:[%s5246_s0 + $0xe4] sm:$0xf]  ;;  %s3997_s7 = smov 120   ;;  %s3998_s8 = smov 119  }
  0x1a   :  { %v4262_v63 = vmax.bf16 %v2972_v51, %v145_v54  ;;  %v109_v1 = vmax.bf16 %v2946_v53, %v92_v57  ;;  %v2970_v12 = vld [vmem:[%s5246_s0 + $0x100] sm:$0xf]  ;;  %v2971_v17 = vld [vmem:[%s5246_s0 + $0x104] sm:$0xf]  ;;  %v3999_v31 = vmov 0   ;;  %v1503_v32 = vld [vmem:[%s5248_s3 + $0x30] sm:$0xff] }
  0x1b   :  { %3755 = vrot.lane.b32.xlu0 %v4254_v58, %s3991_s15  ;;  %v4266_v2 = vmax.bf16 %v2973_v55, %v146_v59  ;;  %v110_v7 = vmax.bf16 %v2947_v60, %v93_v0  ;;  %v3911_v24 = vld [vmem:[%s5247_s2 + $0x20] sm:$0xff]   ;;  %3910 = vset.pattern.permute.xlu1 %v3999_v31  ;;  %v1504_v33 = vld [vmem:[%s5248_s3 + $0x38] sm:$0xff]  ;;  %v1499_v37 = vld [vmem:[%s5248_s3 + $0x10] sm:$0xff] }
  0x1c   :  { %5273 = vst [vmem:[#allocation6_spill] sm:$0xff] %v4262_v63  ;;  %v5260_v6 = vunpack.c.l.bf16 %v4262_v63  ;;  %v126_v8 = vmax.bf16 %v2954_v61, %v109_v1  ;;  %3460 = vmatprep.mubr.msk.bf16.mxu0 %vm284_vm0, %v3911_v24  ;;  %v3914_v25 = vld [vmem:[%s5247_s2] sm:$0xff]   ;;  %3909 = vset.pattern.permute.xlu0 %v3999_v31  ;;  %v1500_v36 = vld [vmem:[%s5248_s3 + $0x18] sm:$0xff]  ;;  %v1498_v38 = vld [vmem:[%s5248_s3 + $0x8] sm:$0xff] }
  0x1d   :  { %5274 = vst [vmem:[#allocation7_spill] sm:$0xff] %v4266_v2  ;;  %v5259_v9 = vunpack.c.l.bf16 %v4266_v2  ;;  %v127_v13 = vmax.bf16 %v2955_v3, %v110_v7  ;;  %3476 = vmatprep.mubr.msk.bf16.mxu1 %vm284_vm0, %v3914_v25  ;;  %v4341_v29 = vcombine.low %v4262_v63, %v4266_v2  ;;  %v1501_v35 = vld [vmem:[%s5248_s3 + $0x20] sm:$0xff] }
  0x1e   :  { %v143_v14 = vmax.bf16 %v2962_v5, %v126_v8  ;;  %v1497_v40 = vld [vmem:[%s5248_s3] sm:$0xff] }
  0x1f   :  { %v3759_v15 = vpack.i.bf16 %v5259_v9, %v5260_v6  ;;  %3770 = vrot.lane.b32.xlu0 %v4204_v28, %s3992_s21  ;;  %v144_v18 = vmax.bf16 %v2963_v11, %v127_v13  ;;  %v2980_v42 = vld [vmem:[%s5249_s1 + $0x1] ss:$0 sm:$0xff]  ;;  %v2978_v56 = vld [vmem:[%s5249_s1] ss:$0 sm:$0xff] }
  0x20   :  { %v4291_v19 = vmax.bf16 %v2970_v12, %v143_v14 }
  0x21   :  { %3760 = vrot.lane.b32.xlu1 %v3759_v15, %s3991_s15  ;;  %v4294_v20 = vmax.bf16 %v2971_v17, %v144_v18 }
  0x22   :  { %5275 = vst [vmem:[#allocation8_spill] sm:$0xff] %v4291_v19  ;;  %v5258_v21 = vunpack.c.l.bf16 %v4291_v19 }
  0x23   :  { %5276 = vst [vmem:[#allocation9_spill] sm:$0xff] %v4294_v20  ;;  %3780 = vrot.lane.b32.xlu0 %v4254_v58, %s3992_s21  ;;  %v5257_v22 = vunpack.c.l.bf16 %v4294_v20  ;;  %v4346_v30 = vcombine.low %v4291_v19, %v4294_v20 }
  0x25   :  { %v3764_v23 = vpack.i.bf16 %v5257_v22, %v5258_v21 }
  0x27   :  { %3790 = vrot.lane.b32.xlu0 %v3759_v15, %s3992_s21  ;;  %3765 = vrot.lane.b32.xlu1 %v3764_v23, %s3991_s15 }
  0x2b   :  { %3800 = vrot.lane.b32.xlu0 %v3764_v23, %s3992_s21  ;;  %3775 = vrot.lane.b32.xlu1 %v4204_v28, %s3993_s25 }
  0x2f   :  { %3810 = vrot.lane.b32.xlu0 %v4204_v28, %s3994_s28  ;;  %3785 = vrot.lane.b32.xlu1 %v4254_v58, %s3993_s25 }
  0x33   :  { %3820 = vrot.lane.b32.xlu0 %v3759_v15, %s3994_s28  ;;  %3795 = vrot.lane.b32.xlu1 %v3759_v15, %s3993_s25 }
  0x37   :  { %3830 = vrot.lane.b32.xlu0 %v4204_v28, %s3995_s29  ;;  %3805 = vrot.lane.b32.xlu1 %v3764_v23, %s3993_s25 }
  0x3b   :  { %3840 = vrot.lane.b32.xlu0 %v4254_v58, %s3995_s29  ;;  %3815 = vrot.lane.b32.xlu1 %v4254_v58, %s3994_s28 }
  0x3f   :  { %3850 = vrot.lane.b32.xlu0 %v3759_v15, %s3995_s29  ;;  %3825 = vrot.lane.b32.xlu1 %v3764_v23, %s3994_s28 }
  0x43   :  { %3860 = vrot.lane.b32.xlu0 %v3764_v23, %s3995_s29  ;;  %3835 = vrot.lane.b32.xlu1 %v4204_v28, %s3996_s30 }
  0x47   :  { %3870 = vrot.lane.b32.xlu0 %v4204_v28, %s3997_s7  ;;  %3845 = vrot.lane.b32.xlu1 %v4254_v58, %s3996_s30 }
  0x4b   :  { %3880 = vrot.lane.b32.xlu0 %v4254_v58, %s3997_s7  ;;  %3855 = vrot.lane.b32.xlu1 %v3759_v15, %s3996_s30 }
  0x4f   :  { %3890 = vrot.lane.b32.xlu0 %v3759_v15, %s3997_s7  ;;  %3865 = vrot.lane.b32.xlu1 %v3764_v23, %s3996_s30 }
  0x53   :  { %3900 = vrot.lane.b32.xlu0 %v3764_v23, %s3997_s7  ;;  %3875 = vrot.lane.b32.xlu1 %v4204_v28, %s3998_s8  ;;  %v1502_v28 = vld [vmem:[%s5248_s3 + $0x28] sm:$0xff] }
  0x57   :  { %3885 = vrot.lane.b32.xlu1 %v4254_v58, %s3998_s8  ;;  %1537 = vperm.xlu0 %3909, %v1503_v32  }
  0x5b   :  { %3895 = vrot.lane.b32.xlu1 %v3759_v15, %s3998_s8  ;;  %1532 = vperm.xlu0 %3909, %v1502_v28  }
  0x5f   :  { %3905 = vrot.lane.b32.xlu1 %v3764_v23, %s3998_s8  ;;  %1522 = vperm.xlu0 %3909, %v1500_v36  }
  0x63   :  { %1542 = vperm.xlu1 %3910, %v1504_v33   ;;  %1512 = vperm.xlu0 %3909, %v1498_v38  }
  0x67   :  { %1527 = vperm.xlu1 %3910, %v1501_v35  }
  0x6b   :  { %1517 = vperm.xlu1 %3910, %v1499_v37  }
  0x6f   :  { %1507 = vperm.xlu1 %3910, %v1497_v40   ;;  %v4400_v40 = vld [vmem:[%s5249_s1 + $0x2] ss:$0 sm:$0xff] }
  0x89   :  { %v3751_v41 = vpop.permute.xlu0 %3750 }
  0x8a   :  { %v3753_v43 = vunpack.i.h.bf16 %v3751_v41  ;;  %v3752_v45 = vunpack.i.l.bf16 %v3751_v41 }
  0x8c   :  { %v249_v46 = vmul.f32 %v3752_v45, %v2980_v42  ;;  %v250_v47 = vmul.f32 %v3753_v43, %v2980_v42 }
  0x8d   :  { %v3756_v50 = vpop.permute.xlu0 %3755 }
  0x8e   :  { %v263_v48 = vpack.c.bf16 %v250_v47, %v249_v46  ;;  %v3758_v51 = vunpack.i.h.bf16 %v3756_v50  ;;  %v3757_v52 = vunpack.i.l.bf16 %v3756_v50 }
  0x90   :  { %3452 = vmatprep.subr.bf16.mxu0 %v263_v48  ;;  %v248_v53 = vmul.f32 %v3758_v51, %v2980_v42  ;;  %v247_v54 = vmul.f32 %v3757_v52, %v2980_v42 }
  0x91   :  { %3453 = vmatpush3.bf16.msra.mxu0 %v263_v48  ;;  %v3771_v55 = vpop.permute.xlu0 %3770 }
  0x92   :  { %v3773_v57 = vunpack.i.h.bf16 %v3771_v55  ;;  %v3772_v58 = vunpack.i.l.bf16 %v3771_v55  ;;  %v262_v59 = vpack.c.bf16 %v248_v53, %v247_v54  ;;  %v3912_v54 = vld [vmem:[%s5247_s2 + $0x28] sm:$0xff]   ;;  %v4410_v55 = vld [vmem:[%s5249_s1 + $0x3] ss:$0 sm:$0xff] }
  0x93   :  { %v3761_v60 = vpop.permute.xlu1 %3760 }
  0x94   :  { %v3763_v61 = vunpack.i.h.bf16 %v3761_v60  ;;  %v3762_v0 = vunpack.i.l.bf16 %v3761_v60  ;;  %3454 = vmatprep.subr.bf16.mxu0 %v262_v59  ;;  %v205_v1 = vmul.f32 %v3772_v58, %v2978_v56  ;;  %v206_v3 = vmul.f32 %v3773_v57, %v2978_v56 }
  0x95   :  { %v3781_v5 = vpop.permute.xlu0 %3780  ;;  %3455 = vmatpush3.bf16.msra.mxu0 %v262_v59 }
  0x96   :  { %v246_v7 = vmul.f32 %v3763_v61, %v2980_v42  ;;  %v245_v8 = vmul.f32 %v3762_v0, %v2980_v42  ;;  %v3783_v11 = vunpack.i.h.bf16 %v3781_v5  ;;  %v3782_v12 = vunpack.i.l.bf16 %v3781_v5 }
  0x97   :  { %v218_v13 = vpack.c.bf16 %v206_v3, %v205_v1  ;;  %v3913_v3 = vld [vmem:[%s5247_s2 + $0x30] sm:$0xff]  }
  0x98   :  { %v204_v14 = vmul.f32 %v3783_v11, %v2978_v56  ;;  %v203_v15 = vmul.f32 %v3782_v12, %v2978_v56  ;;  %v261_v17 = vpack.c.bf16 %v246_v7, %v245_v8  ;;  %v3916_v12 = vld [vmem:[%s5247_s2 + $0x8] sm:$0xff]  }
  0x99   :  { %3468 = vmatprep.subr.bf16.mxu1 %v218_v13  ;;  %v3791_v18 = vpop.permute.xlu0 %3790  ;;  %v3766_v23 = vpop.permute.xlu1 %3765 }
  0x9a   :  { %3456 = vmatprep.subr.bf16.mxu0 %v261_v17  ;;  %3469 = vmatpush3.bf16.msra.mxu1 %v218_v13  ;;  %v3793_v24 = vunpack.i.h.bf16 %v3791_v18  ;;  %v3792_v25 = vunpack.i.l.bf16 %v3791_v18  ;;  %v217_v31 = vpack.c.bf16 %v204_v14, %v203_v15  ;;  %v3768_v32 = vunpack.i.h.bf16 %v3766_v23 }
  0x9b   :  { %v3767_v33 = vunpack.i.l.bf16 %v3766_v23  ;;  %3457 = vmatpush3.bf16.msra.mxu0 %v261_v17 }
  0x9c   :  { %v202_v28 = vmul.f32 %v3793_v24, %v2978_v56  ;;  %v201_v35 = vmul.f32 %v3792_v25, %v2978_v56  ;;  %3470 = vmatprep.subr.bf16.mxu1 %v217_v31  ;;  %v244_v36 = vmul.f32 %v3768_v32, %v2980_v42  ;;  %v3917_v24 = vld [vmem:[%s5247_s2 + $0x10] sm:$0xff]   ;;  %v3915_v32 = vld [vmem:[%s5247_s2 + $0x38] sm:$0xff]  }
  0x9d   :  { %v243_v37 = vmul.f32 %v3767_v33, %v2980_v42  ;;  %v3801_v38 = vpop.permute.xlu0 %3800  ;;  %v3776_v41 = vpop.permute.xlu1 %3775 }
  0x9e   :  { %3471 = vmatpush3.bf16.msra.mxu1 %v217_v31  ;;  %v3803_v43 = vunpack.i.h.bf16 %v3801_v38  ;;  %v3802_v45 = vunpack.i.l.bf16 %v3801_v38  ;;  %v216_v46 = vpack.c.bf16 %v202_v28, %v201_v35  ;;  %v3778_v47 = vunpack.i.h.bf16 %v3776_v41 }
  0x9f   :  { %v3777_v48 = vunpack.i.l.bf16 %v3776_v41  ;;  %v260_v50 = vpack.c.bf16 %v244_v36, %v243_v37  ;;  %v3918_v36 = vld [vmem:[%s5247_s2 + $0x40] sm:$0xff]  }
  0xa0   :  { %v200_v51 = vmul.f32 %v3803_v43, %v2978_v56  ;;  %v199_v52 = vmul.f32 %v3802_v45, %v2978_v56  ;;  %3472 = vmatprep.subr.bf16.mxu1 %v216_v46  ;;  %v490_v53 = vmul.f32 %v3778_v47, %v4400_v40  ;;  %v3919_v47 = vld [vmem:[%s5247_s2 + $0x18] sm:$0xff]  }
  0xa1   :  { %v489_v42 = vmul.f32 %v3777_v48, %v4400_v40  ;;  %3458 = vmatprep.subr.bf16.mxu0 %v260_v50  ;;  %v3811_v57 = vpop.permute.xlu0 %3810  ;;  %v3786_v58 = vpop.permute.xlu1 %3785 }
  0xa2   :  { %3459 = vmatpush3.bf16.msra.mxu0 %v260_v50  ;;  %3473 = vmatpush3.bf16.msra.mxu1 %v216_v46  ;;  %v3813_v56 = vunpack.i.h.bf16 %v3811_v57  ;;  %v3812_v59 = vunpack.i.l.bf16 %v3811_v57  ;;  %v215_v60 = vpack.c.bf16 %v200_v51, %v199_v52  ;;  %v3788_v61 = vunpack.i.h.bf16 %v3786_v58  ;;  %v3922_v52 = vld [vmem:[%s5247_s2 + $0x60] sm:$0xff]  }
  0xa3   :  { %v3787_v0 = vunpack.i.l.bf16 %v3786_v58  ;;  %v503_v1 = vpack.c.bf16 %v490_v53, %v489_v42 }
  0xa4   :  { %v640_v5 = vmul.f32 %v3813_v56, %v4410_v55  ;;  %v639_v7 = vmul.f32 %v3812_v59, %v4410_v55  ;;  %3474 = vmatprep.subr.bf16.mxu1 %v215_v60  ;;  %v488_v8 = vmul.f32 %v3788_v61, %v4400_v40  ;;  %v3920_v56 = vld [vmem:[%s5247_s2 + $0x48] sm:$0xff]  }
  0xa5   :  { %v487_v11 = vmul.f32 %v3787_v0, %v4400_v40  ;;  %3461 = vmatmul.mubr.msk.bf16.vlgmr.msra.gmra.mxu0 %vm284_vm0, %v3912_v54  ;;  %3484 = vmatprep.subr.bf16.mxu0 %v503_v1  ;;  %v3821_v13 = vpop.permute.xlu0 %3820  ;;  %v3796_v14 = vpop.permute.xlu1 %3795 }
  0xa6   :  { %3485 = vmatpush3.bf16.msra.mxu0 %v503_v1  ;;  %3475 = vmatpush3.bf16.msra.mxu1 %v215_v60  ;;  %v653_v15 = vpack.c.bf16 %v640_v5, %v639_v7  ;;  %v3798_v17 = vunpack.i.h.bf16 %v3796_v14  ;;  %v3797_v18 = vunpack.i.l.bf16 %v3796_v14  ;;  %v3823_v35 = vunpack.i.h.bf16 %v3821_v13 }
  0xa7   :  { %v502_v23 = vpack.c.bf16 %v488_v8, %v487_v11  ;;  %3464 = vmatprep.mubr.msk.bf16.mxu0 %vm284_vm0, %v3913_v3  ;;  %v3822_v43 = vunpack.i.l.bf16 %v3821_v13  ;;  %v4460_v8 = vld [vmem:[%s5249_s1 + $0x5] ss:$0 sm:$0xff]  ;;  %v3921_v11 = vld [vmem:[%s5247_s2 + $0x50] sm:$0xff]  }
  0xa8   :  { %3500 = vmatprep.subr.bf16.mxu1 %v653_v15  ;;  %v486_v25 = vmul.f32 %v3798_v17, %v4400_v40  ;;  %v485_v31 = vmul.f32 %v3797_v18, %v4400_v40  ;;  %v636_v51 = vmul.f32 %v3823_v35, %v4410_v55 }
  0xa9   :  { %3486 = vmatprep.subr.bf16.mxu0 %v502_v23  ;;  %3477 = vmatmul.mubr.msk.bf16.vlgmr.msra.gmra.mxu1 %vm284_vm0, %v3916_v12  ;;  %v3831_v33 = vpop.permute.xlu0 %3830  ;;  %v3806_v28 = vpop.permute.xlu1 %3805  ;;  %v635_v42 = vmul.f32 %v3822_v43, %v4410_v55 }
  0xaa   :  { %3487 = vmatpush3.bf16.msra.mxu0 %v502_v23  ;;  %3501 = vmatpush3.bf16.msra.mxu1 %v653_v15  ;;  %v3808_v37 = vunpack.i.h.bf16 %v3806_v28  ;;  %v3807_v38 = vunpack.i.l.bf16 %v3806_v28  ;;  %v501_v41 = vpack.c.bf16 %v486_v25, %v485_v31  ;;  %v3833_v61 = vunpack.i.h.bf16 %v3831_v33 }
  0xab   :  { %3480 = vmatprep.mubr.msk.bf16.mxu1 %vm284_vm0, %v3917_v24  ;;  %v3832_v0 = vunpack.i.l.bf16 %v3831_v33  ;;  %v651_v7 = vpack.c.bf16 %v636_v51, %v635_v42  ;;  %v4481_v33 = vld [vmem:[%s5249_s1 + $0x6] ss:$0 sm:$0xff] }
  0xac   :  { %v484_v45 = vmul.f32 %v3808_v37, %v4400_v40  ;;  %v483_v46 = vmul.f32 %v3807_v38, %v4400_v40  ;;  %3488 = vmatprep.subr.bf16.mxu0 %v501_v41  ;;  %v928_v15 = vmul.f32 %v3833_v61, %v4460_v8  ;;  %v3928_v61 = vld [vmem:[%s5247_s2 + $0x88] sm:$0xff]  }
  0xad   :  { %3465 = vmatmul.mubr.msk.bf16.gmra.mxu0 %vm284_vm0, %v3915_v32  ;;  %v3841_v48 = vpop.permute.xlu0 %3840  ;;  %v3816_v50 = vpop.permute.xlu1 %3815  ;;  %v927_v17 = vmul.f32 %v3832_v0, %v4460_v8  ;;  %v3923_v32 = vld [vmem:[%s5247_s2 + $0x58] sm:$0xff]  }
  0xae   :  { %3489 = vmatpush3.bf16.msra.mxu0 %v501_v41  ;;  %3492 = vmatprep.mubr.msk.bf16.mxu0 %vm284_vm0, %v3918_v36  ;;  %v3818_v53 = vunpack.i.h.bf16 %v3816_v50  ;;  %v3817_v40 = vunpack.i.l.bf16 %v3816_v50  ;;  %v500_v54 = vpack.c.bf16 %v484_v45, %v483_v46  ;;  %v3843_v24 = vunpack.i.h.bf16 %v3841_v48 }
  0xaf   :  { %v3842_v25 = vunpack.i.l.bf16 %v3841_v48  ;;  %v941_v28 = vpack.c.bf16 %v928_v15, %v927_v17  ;;  %v3924_v48 = vld [vmem:[%s5247_s2 + $0x68] sm:$0xff]  }
  0xb0   :  { %v638_v57 = vmul.f32 %v3818_v53, %v4410_v55  ;;  %v637_v58 = vmul.f32 %v3817_v40, %v4410_v55  ;;  %3490 = vmatprep.subr.bf16.mxu0 %v500_v54  ;;  %v926_v38 = vmul.f32 %v3843_v24, %v4460_v8 }
  0xb1   :  { %3481 = vmatmul.mubr.msk.bf16.gmra.mxu1 %vm284_vm0, %v3919_v47  ;;  %v3851_v59 = vpop.permute.xlu0 %3850  ;;  %v3826_v60 = vpop.permute.xlu1 %3825  ;;  %v925_v41 = vmul.f32 %v3842_v25, %v4460_v8 }
  0xb2   :  { %3491 = vmatpush3.bf16.msra.mxu0 %v500_v54  ;;  %3508 = vmatprep.mubr.msk.bf16.mxu1 %vm284_vm0, %v3922_v52  ;;  %v652_v1 = vpack.c.bf16 %v638_v57, %v637_v58  ;;  %v3828_v3 = vunpack.i.h.bf16 %v3826_v60  ;;  %v3827_v5 = vunpack.i.l.bf16 %v3826_v60  ;;  %v3853_v35 = vunpack.i.h.bf16 %v3851_v59  ;;  %v3925_v58 = vld [vmem:[%s5247_s2 + $0x70] sm:$0xff]  }
  0xb3   :  { %3516 = vmatprep.subr.bf16.mxu0 %v4327_v26  ;;  %v3852_v36 = vunpack.i.l.bf16 %v3851_v59  ;;  %v940_v40 = vpack.c.bf16 %v926_v38, %v925_v41 }
  0xb4   :  { %3502 = vmatprep.subr.bf16.mxu1 %v652_v1  ;;  %v634_v12 = vmul.f32 %v3828_v3, %v4410_v55  ;;  %v633_v13 = vmul.f32 %v3827_v5, %v4410_v55  ;;  %v924_v50 = vmul.f32 %v3853_v35, %v4460_v8 }
  0xb5   :  { %3493 = vmatmul.mubr.msk.bf16.vlgmr.msra.gmra.mxu0 %vm284_vm0, %v3920_v56  ;;  %v4468_v14 = vpop.permute.xlu0 %3860  ;;  %3503 = vmatpush3.bf16.msra.mxu1 %v652_v1  ;;  %v3836_v18 = vpop.permute.xlu1 %3835  ;;  %v923_v51 = vmul.f32 %v3852_v36, %v4460_v8  ;;  %v3930_v36 = vld [vmem:[%s5247_s2 + $0xa0] sm:$0xff]  }
  0xb6   :  { %3517 = vmatpush3.bf16.msra.mxu0 %v4327_v26  ;;  %3504 = vmatprep.subr.bf16.mxu1 %v651_v7  ;;  %v650_v23 = vpack.c.bf16 %v634_v12, %v633_v13  ;;  %v3838_v55 = vunpack.i.h.bf16 %v3836_v18  ;;  %v3837_v31 = vunpack.i.l.bf16 %v3836_v18  ;;  %v3863_v52 = vunpack.i.h.bf16 %v4468_v14  ;;  %v4519_v12 = vld [vmem:[%s5249_s1 + $0x7] ss:$0 sm:$0xff]  ;;  %v3929_v18 = vld [vmem:[%s5247_s2 + $0x90] sm:$0xff]  }
  0xb7   :  { %3518 = vmatprep.subr.bf16.mxu0 %v4334_v27  ;;  %3496 = vmatprep.mubr.msk.bf16.mxu0 %vm284_vm0, %v3921_v11  ;;  %v3862_v42 = vunpack.i.l.bf16 %v4468_v14  ;;  %v939_v1 = vpack.c.bf16 %v924_v50, %v923_v51 }
  0xb8   :  { %v1078_v46 = vmul.f32 %v3838_v55, %v4481_v33  ;;  %v1077_v47 = vmul.f32 %v3837_v31, %v4481_v33  ;;  %v922_v0 = vmul.f32 %v3863_v52, %v4460_v8 }
  0xb9   :  { %v3871_v26 = vpop.permute.xlu0 %3870  ;;  %3505 = vmatpush3.bf16.msra.mxu1 %v651_v7  ;;  %v3846_v37 = vpop.permute.xlu1 %3845  ;;  %v921_v11 = vmul.f32 %v3862_v42, %v4460_v8  ;;  %v3927_v8 = vld [vmem:[%s5247_s2 + $0x78] sm:$0xff]  }
  0xba   :  { %3519 = vmatpush3.bf16.msra.mxu0 %v4334_v27  ;;  %3506 = vmatprep.subr.bf16.mxu1 %v650_v23  ;;  %v3848_v43 = vunpack.i.h.bf16 %v3846_v37  ;;  %v3847_v45 = vunpack.i.l.bf16 %v3846_v37  ;;  %v3926_v27 = vld [vmem:[%s5247_s2 + $0x80] sm:$0xff]   ;;  %v3873_v3 = vunpack.i.h.bf16 %v3871_v26  ;;  %v3872_v5 = vunpack.i.l.bf16 %v3871_v26 }
  0xbb   :  { %3520 = vmatprep.subr.bf16.mxu0 %v4341_v29 }
  0xbc   :  { %v1076_v54 = vmul.f32 %v3848_v43, %v4481_v33  ;;  %v1075_v57 = vmul.f32 %v3847_v45, %v4481_v33  ;;  %v1228_v24 = vmul.f32 %v3873_v3, %v4519_v12  ;;  %v1227_v25 = vmul.f32 %v3872_v5, %v4519_v12  ;;  %v3931_v43 = vld [vmem:[%s5247_s2 + $0x98] sm:$0xff]   ;;  %v4545_v45 = vld [vmem:[%s5249_s1 + $0x8] ss:$0 sm:$0xff]  ;;  %v3933_v5 = vld [vmem:[%s5247_s2 + $0xb0] sm:$0xff]  }
  0xbd   :  { %3497 = vmatmul.mubr.msk.bf16.gmra.mxu0 %vm284_vm0, %v3923_v32  ;;  %3507 = vmatpush3.bf16.msra.mxu1 %v650_v23  ;;  %v3856_v53 = vpop.permute.xlu1 %3855  ;;  %v3881_v56 = vpop.permute.xlu0 %3880  ;;  %v938_v32 = vpack.c.bf16 %v922_v0, %v921_v11 }
  0xbe   :  { %3521 = vmatpush3.bf16.msra.mxu0 %v4341_v29  ;;  %3532 = vmatprep.subr.bf16.mxu1 %v941_v28  ;;  %v1091_v29 = vpack.c.bf16 %v1078_v46, %v1077_v47  ;;  %v3858_v59 = vunpack.i.h.bf16 %v3856_v53  ;;  %v3857_v60 = vunpack.i.l.bf16 %v3856_v53  ;;  %v1090_v13 = vpack.c.bf16 %v1076_v54, %v1075_v57  ;;  %v3934_v57 = vld [vmem:[%s5247_s2 + $0xc0] sm:$0xff]  }
  0xbf   :  { %3522 = vmatprep.subr.bf16.mxu0 %v4346_v30  ;;  %3524 = vmatprep.mubr.msk.bf16.mxu0 %vm284_vm0, %v3926_v27  ;;  %v3883_v55 = vunpack.i.h.bf16 %v3881_v56  ;;  %v3882_v26 = vunpack.i.l.bf16 %v3881_v56  ;;  %v1241_v46 = vpack.c.bf16 %v1228_v24, %v1227_v25 }
  0xc0   :  { %3509 = vmatmul.mubr.msk.bf16.vlgmr.msra.gmra.mxu1 %vm284_vm0, %v3924_v48  ;;  %v1073_v17 = vmul.f32 %v3857_v60, %v4481_v33 }
  0xc1   :  { %3533 = vmatpush3.bf16.msra.mxu1 %v941_v28  ;;  %v3866_v7 = vpop.permute.xlu1 %3865  ;;  %3512 = vmatprep.mubr.msk.bf16.mxu1 %vm284_vm0, %v3925_v58  ;;  %v3891_v23 = vpop.permute.xlu0 %3890  ;;  %v1225_v50 = vmul.f32 %v3882_v26, %v4519_v12  ;;  %v3932_v58 = vld [vmem:[%s5247_s2 + $0xa8] sm:$0xff]  }
  0xc2   :  { %3523 = vmatpush3.bf16.msra.mxu0 %v4346_v30  ;;  %3534 = vmatprep.subr.bf16.mxu1 %v940_v40  ;;  %v3868_v14 = vunpack.i.h.bf16 %v3866_v7  ;;  %v3867_v15 = vunpack.i.l.bf16 %v3866_v7  ;;  %v1074_v30 = vmul.f32 %v3858_v59, %v4481_v33  ;;  %v3893_v47 = vunpack.i.h.bf16 %v3891_v23 }
  0xc3   :  { %3548 = vmatprep.subr.bf16.mxu0 %v1091_v29  ;;  %v3892_v27 = vunpack.i.l.bf16 %v3891_v23 }
  0xc4   :  { %v1072_v28 = vmul.f32 %v3868_v14, %v4481_v33  ;;  %v1071_v35 = vmul.f32 %v3867_v15, %v4481_v33  ;;  %v1089_v37 = vpack.c.bf16 %v1074_v30, %v1073_v17  ;;  %v1226_v33 = vmul.f32 %v3883_v55, %v4519_v12  ;;  %v3936_v14 = vld [vmem:[%s5247_s2 + $0xc8] sm:$0xff]  }
  0xc5   :  { %3525 = vmatmul.mubr.msk.bf16.vlgmr.msra.gmra.mxu0 %vm284_vm0, %v3928_v61  ;;  %3535 = vmatpush3.bf16.msra.mxu1 %v940_v40  ;;  %v3876_v31 = vpop.permute.xlu1 %3875  ;;  %v3901_v52 = vpop.permute.xlu0 %3900  ;;  %v1224_v56 = vmul.f32 %v3893_v47, %v4519_v12  ;;  %v3943_v47 = vld [vmem:[%s5247_s2 + $0xf8] sm:$0xff]  }
  0xc6   :  { %3549 = vmatpush3.bf16.msra.mxu0 %v1091_v29  ;;  %3536 = vmatprep.subr.bf16.mxu1 %v939_v1  ;;  %v3878_v38 = vunpack.i.h.bf16 %v3876_v31  ;;  %v3877_v41 = vunpack.i.l.bf16 %v3876_v31  ;;  %v1088_v51 = vpack.c.bf16 %v1072_v28, %v1071_v35  ;;  %v1223_v29 = vmul.f32 %v3892_v27, %v4519_v12  ;;  %v3937_v31 = vld [vmem:[%s5247_s2 + $0xd0] sm:$0xff]   ;;  %v3938_v35 = vld [vmem:[%s5247_s2 + $0xe0] sm:$0xff]   ;;  %v3946_v27 = vld [vmem:[%s5247_s2 + $0x118] sm:$0xff]  }
  0xc7   :  { %3550 = vmatprep.subr.bf16.mxu0 %v1090_v13  ;;  %3528 = vmatprep.mubr.msk.bf16.mxu0 %vm284_vm0, %v3929_v18  ;;  %v3903_v59 = vunpack.i.h.bf16 %v3901_v52  ;;  %v1240_v61 = vpack.c.bf16 %v1226_v33, %v1225_v50  ;;  %v3902_v0 = vunpack.i.l.bf16 %v3901_v52  ;;  %v3944_v33 = vld [vmem:[%s5247_s2 + $0x108] sm:$0xff]  }
  0xc8   :  { %3513 = vmatmul.mubr.msk.bf16.gmra.mxu1 %vm284_vm0, %v3927_v8  ;;  %v1378_v42 = vmul.f32 %v3878_v38, %v4545_v45  ;;  %v1377_v54 = vmul.f32 %v3877_v41, %v4545_v45  ;;  %v1239_v30 = vpack.c.bf16 %v1224_v56, %v1223_v29  ;;  %v3942_v41 = vld [vmem:[%s5247_s2 + $0x100] sm:$0xff]  }
  0xc9   :  { %3537 = vmatpush3.bf16.msra.mxu1 %v939_v1  ;;  %v3886_v48 = vpop.permute.xlu1 %3885  ;;  %3540 = vmatprep.mubr.msk.bf16.mxu1 %vm284_vm0, %v3930_v36  ;;  %v1222_v15 = vmul.f32 %v3903_v59, %v4519_v12  ;;  %v1221_v18 = vmul.f32 %v3902_v0, %v4519_v12 }
  0xca   :  { %3551 = vmatpush3.bf16.msra.mxu0 %v1090_v13  ;;  %3538 = vmatprep.subr.bf16.mxu1 %v938_v32  ;;  %v3888_v53 = vunpack.i.h.bf16 %v3886_v48  ;;  %v3887_v40 = vunpack.i.l.bf16 %v3886_v48  ;;  %v1391_v7 = vpack.c.bf16 %v1378_v42, %v1377_v54 }
  0xcb   :  { %3552 = vmatprep.subr.bf16.mxu0 %v1089_v37  ;;  %v1238_v12 = vpack.c.bf16 %v1222_v15, %v1221_v18 }
  0xcc   :  { %v1376_v1 = vmul.f32 %v3888_v53, %v4545_v45  ;;  %v1375_v3 = vmul.f32 %v3887_v40, %v4545_v45 }
  0xcd   :  { %3529 = vmatmul.mubr.msk.bf16.gmra.mxu0 %vm284_vm0, %v3931_v43  ;;  %3539 = vmatpush3.bf16.msra.mxu1 %v938_v32  ;;  %v3896_v60 = vpop.permute.xlu1 %3895  ;;  %v3935_v32 = vld [vmem:[%s5247_s2 + $0xb8] sm:$0xff]   ;;  %v3940_v43 = vld [vmem:[%s5247_s2 + $0xe8] sm:$0xff]  }
  0xce   :  { %3553 = vmatpush3.bf16.msra.mxu0 %v1089_v37  ;;  %3564 = vmatprep.subr.bf16.mxu1 %v1241_v46  ;;  %v3898_v11 = vunpack.i.h.bf16 %v3896_v60  ;;  %v3897_v13 = vunpack.i.l.bf16 %v3896_v60  ;;  %v1390_v8 = vpack.c.bf16 %v1376_v1, %v1375_v3  ;;  %v3939_v37 = vld [vmem:[%s5247_s2 + $0xd8] sm:$0xff]  }
  0xcf   :  { %3554 = vmatprep.subr.bf16.mxu0 %v1088_v51  ;;  %3556 = vmatprep.mubr.msk.bf16.mxu0 %vm284_vm0, %v3934_v57 }
  0xd0   :  { %3541 = vmatmul.mubr.msk.bf16.vlgmr.msra.gmra.mxu1 %vm284_vm0, %v3932_v58  ;;  %v1374_v25 = vmul.f32 %v3898_v11, %v4545_v45  ;;  %v1373_v55 = vmul.f32 %v3897_v13, %v4545_v45 }
  0xd1   :  { %3565 = vmatpush3.bf16.msra.mxu1 %v1241_v46  ;;  %v3906_v17 = vpop.permute.xlu1 %3905  ;;  %3544 = vmatprep.mubr.msk.bf16.mxu1 %vm284_vm0, %v3933_v5  ;;  %v3945_v46 = vld [vmem:[%s5247_s2 + $0x110] sm:$0xff]  }
  0xd2   :  { %3555 = vmatpush3.bf16.msra.mxu0 %v1088_v51  ;;  %3566 = vmatprep.subr.bf16.mxu1 %v1240_v61  ;;  %v3908_v23 = vunpack.i.h.bf16 %v3906_v17  ;;  %v3907_v24 = vunpack.i.l.bf16 %v3906_v17  ;;  %v1389_v36 = vpack.c.bf16 %v1374_v25, %v1373_v55  ;;  %v4677_v10 = vpop.permute.xlu0 %1537 }
  0xd3   :  { %3580 = vmatprep.subr.bf16.mxu0 %v1391_v7 }
  0xd4   :  { %v1372_v26 = vmul.f32 %v3908_v23, %v4545_v45  ;;  %v1371_v28 = vmul.f32 %v3907_v24, %v4545_v45  ;;  %v3941_v45 = vld [vmem:[%s5247_s2 + $0xf0] sm:$0xff]  }
  0xd5   :  { %3557 = vmatmul.mubr.msk.bf16.vlgmr.msra.gmra.mxu0 %vm284_vm0, %v3936_v14  ;;  %3567 = vmatpush3.bf16.msra.mxu1 %v1240_v61 }
  0xd6   :  { %3581 = vmatpush3.bf16.msra.mxu0 %v1391_v7  ;;  %3568 = vmatprep.subr.bf16.mxu1 %v1239_v30  ;;  %v1388_v38 = vpack.c.bf16 %v1372_v26, %v1371_v28 }
  0xd7   :  { %3582 = vmatprep.subr.bf16.mxu0 %v1390_v8  ;;  %3560 = vmatprep.mubr.msk.bf16.mxu0 %vm284_vm0, %v3937_v31 }
  0xd8   :  { %3545 = vmatmul.mubr.msk.bf16.gmra.mxu1 %vm284_vm0, %v3935_v32 }
  0xd9   :  { %3569 = vmatpush3.bf16.msra.mxu1 %v1239_v30  ;;  %3572 = vmatprep.mubr.msk.bf16.mxu1 %vm284_vm0, %v3938_v35 }
  0xda   :  { %3583 = vmatpush3.bf16.msra.mxu0 %v1390_v8  ;;  %3570 = vmatprep.subr.bf16.mxu1 %v1238_v12 }
  0xdb   :  { %3584 = vmatprep.subr.bf16.mxu0 %v1389_v36 }
  0xdd   :  { %3561 = vmatmul.mubr.msk.bf16.gmra.mxu0 %vm284_vm0, %v3939_v37  ;;  %3571 = vmatpush3.bf16.msra.mxu1 %v1238_v12 }
  0xde   :  { %3585 = vmatpush3.bf16.msra.mxu0 %v1389_v36  ;;  %3588 = vmatprep.mubr.msk.bf16.mxu0 %vm284_vm0, %v3942_v41  ;;  %v4669_v49 = vpop.permute.xlu1 %1542 }
  0xdf   :  { %3586 = vmatprep.subr.bf16.mxu0 %v1388_v38 }
  0xe0   :  { %3573 = vmatmul.mubr.msk.bf16.vlgmr.msra.gmra.mxu1 %vm284_vm0, %v3940_v43 }
  0xe1   :  { %3576 = vmatprep.mubr.msk.bf16.mxu1 %vm284_vm0, %v3941_v45 }
  0xe2   :  { %3587 = vmatpush3.bf16.msra.mxu0 %v1388_v38  ;;  %v4683_v22 = vpop.permute.xlu1 %1527 }
  0xe5   :  { %3589 = vmatmul.mubr.msk.bf16.vlgmr.msra.gmra.mxu0 %vm284_vm0, %v3944_v33 }
  0xe6   :  { %3592 = vmatprep.mubr.msk.bf16.mxu0 %vm284_vm0, %v3945_v46  ;;  %v1518_v39 = vpop.permute.xlu1 %1517 }
  0xe8   :  { %3577 = vmatmul.mubr.msk.bf16.gmra.mxu1 %vm284_vm0, %v3943_v47 }
  0xed   :  { %3593 = vmatmul.mubr.msk.bf16.gmra.mxu0 %vm284_vm0, %v3946_v27 }
 0x165   :  { %v3462_v48 = vpop.f32.mrf.mxu0 }
 0x167   :  { %v4623_v50 = vpop.f32.mrf.mxu0 }
 0x169   :  { %v3463_v51 = vpop.f32.mrf.mxu0  ;;  %v3478_v52 = vpop.f32.mrf.mxu1 }
 0x16b   :  { %v4625_v53 = vpop.f32.mrf.mxu0  ;;  %v4627_v40 = vpop.f32.mrf.mxu1 }
 0x16d   :  { %v4629_v42 = vpop.f32.mrf.mxu0  ;;  %v3479_v54 = vpop.f32.mrf.mxu1 }
 0x16f   :  { %v347_v57 = vpop.f32.mrf.mxu0  ;;  %v4631_v58 = vpop.f32.mrf.mxu1 }
 0x171   :  { %v4633_v56 = vpop.f32.mrf.mxu0  ;;  %v4635_v29 = vpop.f32.mrf.mxu1 }
 0x173   :  { %v350_v59 = vpop.f32.mrf.mxu0  ;;  %v444_v60 = vpop.f32.mrf.mxu1 }
 0x174   :  { %v445_v61 = vadd.f32 %v444_v60, %v347_v57 }
 0x175   :  { %v3494_v0 = vpop.f32.mrf.mxu0  ;;  %v4637_v1 = vpop.f32.mrf.mxu1 }
 0x177   :  { %v4639_v3 = vpop.f32.mrf.mxu0  ;;  %v447_v5 = vpop.f32.mrf.mxu1 }
 0x178   :  { %v448_v7 = vadd.f32 %v447_v5, %v350_v59 }
 0x179   :  { %v3495_v11 = vpop.f32.mrf.mxu0 }
 0x17b   :  { %v4641_v13 = vpop.f32.mrf.mxu0 }
 0x17d   :  { %v4643_v14 = vpop.f32.mrf.mxu0 }
 0x17f   :  { %v586_v15 = vpop.f32.mrf.mxu0 }
 0x180   :  { %v605_v30 = vadd.f32 %v586_v15, %v445_v61  ;;  %v3510_v17 = vpop.f32.mrf.mxu1  ;;  %v437_v15 = vadd.f32 %v3478_v52, %v3462_v48 }
 0x181   :  { %v4645_v18 = vpop.f32.mrf.mxu0 }
 0x182   :  { %v4647_v8 = vpop.f32.mrf.mxu1 }
 0x183   :  { %v589_v23 = vpop.f32.mrf.mxu0 }
 0x184   :  { %v606_v24 = vadd.f32 %v589_v23, %v448_v7  ;;  %v3511_v25 = vpop.f32.mrf.mxu1 }
 0x185   :  { %v3526_v55 = vpop.f32.mrf.mxu0 }
 0x186   :  { %v4649_v31 = vpop.f32.mrf.mxu1 }
 0x187   :  { %v4651_v32 = vpop.f32.mrf.mxu0 }
 0x188   :  { %v4653_v12 = vpop.f32.mrf.mxu1 }
 0x189   :  { %v3527_v26 = vpop.f32.mrf.mxu0 }
 0x18a   :  { %v736_v28 = vpop.f32.mrf.mxu1 }
 0x18b   :  { %v4655_v35 = vpop.f32.mrf.mxu0  ;;  %v755_v36 = vadd.f32 %v736_v28, %v605_v30  ;;  %v603_v28 = vadd.f32 %v3494_v0, %v437_v15 }
 0x18c   :  { %v4657_v37 = vpop.f32.mrf.mxu1 }
 0x18d   :  { %v4659_v38 = vpop.f32.mrf.mxu0 }
 0x18e   :  { %v739_v41 = vpop.f32.mrf.mxu1 }
 0x18f   :  { %v874_v43 = vpop.f32.mrf.mxu0  ;;  %v756_v45 = vadd.f32 %v739_v41, %v606_v24  ;;  %v440_v41 = vadd.f32 %v3479_v54, %v3463_v51 }
 0x190   :  { %v4661_v33 = vadd.f32 %v874_v43, %v755_v36  ;;  %v3542_v46 = vpop.f32.mrf.mxu1  ;;  %v753_v43 = vadd.f32 %v3510_v17, %v603_v28 }
 0x191   :  { %v4663_v47 = vpop.f32.mrf.mxu0 }
 0x192   :  { %v1008_v27 = vpop.f32.mrf.mxu1  ;;  %v891_v44 = vadd.f32 %v3526_v55, %v753_v43 }
 0x193   :  { %v877_v57 = vpop.f32.mrf.mxu0 }
 0x194   :  { %v4665_v59 = vadd.f32 %v877_v57, %v756_v45  ;;  %v3543_v60 = vpop.f32.mrf.mxu1  ;;  %v604_v57 = vadd.f32 %v3495_v11, %v440_v41  ;;  %v1041_v15 = vadd.f32 %v3542_v46, %v891_v44  ;;  %v429_v11 = vadd.f32 %v4627_v40, %v4623_v50  ;;  %v4691_v41 = vpop.permute.xlu0 %1532 }
 0x195   :  { %v3558_v61 = vpop.f32.mrf.mxu0 }
 0x196   :  { %v1011_v5 = vpop.f32.mrf.mxu1  ;;  %v754_v0 = vadd.f32 %v3511_v25, %v604_v57  ;;  %v1191_v54 = vadd.f32 %v3558_v61, %v1041_v15  ;;  %v601_v44 = vadd.f32 %v4639_v3, %v429_v11 }
 0x197   :  { %v1158_v7 = vpop.f32.mrf.mxu0 }
 0x198   :  { %v4667_v30 = vpop.f32.mrf.mxu1  ;;  %v892_v51 = vadd.f32 %v3527_v26, %v754_v0  ;;  %v432_v26 = vadd.f32 %v4631_v58, %v4625_v53  ;;  %v751_v61 = vadd.f32 %v4647_v8, %v601_v44  ;;  %v1523_v3 = vpop.permute.xlu0 %1522 }
 0x199   :  { %v3559_v23 = vpop.f32.mrf.mxu0 }
 0x19a   :  { %v4671_v24 = vpop.f32.mrf.mxu1  ;;  %v1042_v55 = vadd.f32 %v3543_v60, %v892_v51  ;;  %v602_v40 = vadd.f32 %v4641_v13, %v432_v26 }
 0x19b   :  { %v1161_v36 = vpop.f32.mrf.mxu0 }
 0x19c   :  { %v4673_v16 = vpop.f32.mrf.mxu1  ;;  %v1192_v46 = vadd.f32 %v3559_v23, %v1042_v55  ;;  %v752_v23 = vadd.f32 %v4649_v31, %v602_v40  ;;  %v453_v55 = vadd.f32 %v4635_v29, %v4629_v42  ;;  %v1513_v42 = vpop.permute.xlu0 %1512 }
 0x19d   :  { %v4675_v45 = vpop.f32.mrf.mxu0 }
 0x19e   :  { %v4679_v48 = vpop.f32.mrf.mxu1  ;;  %v890_v53 = vadd.f32 %v4655_v35, %v752_v23  ;;  %v1508_v35 = vpop.permute.xlu1 %1507 }
 0x19f   :  { %v4681_v52 = vpop.f32.mrf.mxu0 }
 0x1a0   :  { %v3574_v21 = vpop.f32.mrf.mxu1  ;;  %v1040_v58 = vadd.f32 %v1011_v5, %v890_v53  ;;  %v607_v5 = vadd.f32 %v4643_v14, %v453_v55 }
 0x1a1   :  { %v4685_v9 = vpop.f32.mrf.mxu0  ;;  %v1341_v43 = vadd.f32 %v3574_v21, %v1191_v54  ;;  %v889_v21 = vadd.f32 %v4651_v32, %v751_v61 }
 0x1a2   :  { %v1308_v17 = vpop.f32.mrf.mxu1  ;;  %v1190_v31 = vadd.f32 %v1161_v36, %v1040_v58  ;;  %v456_v36 = vadd.f32 %v4637_v1, %v4633_v56 }
 0x1a3   :  { %v4687_v28 = vpop.f32.mrf.mxu0  ;;  %v1039_v54 = vadd.f32 %v1008_v27, %v889_v21 }
 0x1a4   :  { %v3575_v6 = vpop.f32.mrf.mxu1 }
 0x1a5   :  { %v3590_v25 = vpop.f32.mrf.mxu0  ;;  %v1342_v0 = vadd.f32 %v3575_v6, %v1192_v46  ;;  %v1189_v6 = vadd.f32 %v1158_v7, %v1039_v54 }
 0x1a6   :  { %v1491_v57 = vadd.f32 %v3590_v25, %v1341_v43  ;;  %v1311_v8 = vpop.f32.mrf.mxu1  ;;  %v608_v25 = vadd.f32 %v4645_v18, %v456_v36  ;;  %v4901_v36 = vld [vmem:[%s5249_s1 + $0x3] ss:$0 sm:$0xff] }
 0x1a7   :  { %v1458_v4 = vpop.f32.mrf.mxu0  ;;  %v1339_v13 = vadd.f32 %v1308_v17, %v1189_v6  ;;  %v1340_v43 = vadd.f32 %v1311_v8, %v1190_v31 }
 0x1a8   :  { %v1547_v15 = vadd.f32 %v1518_v39, %v1491_v57  ;;  %v3578_v29 = vpop.f32.mrf.mxu1  ;;  %v758_v56 = vadd.f32 %v4657_v37, %v608_v25  ;;  %v2802_v25 = vld [vmem:[%s5251_s5 + $0x20] sm:$0xff] }
 0x1a9   :  { %v3591_v50 = vpop.f32.mrf.mxu0  ;;  %v1489_v32 = vadd.f32 %v1458_v4, %v1339_v13  ;;  %v757_v4 = vadd.f32 %v4653_v12, %v607_v5  ;;  %v2799_v5 = vld [vmem:[%s5251_s5 + $0x8] sm:$0xff] }
 0x1aa   :  { %v4699_v60 = vmax.f32 %v1547_v15, 0.0  ;;  %v1492_v51 = vadd.f32 %v3591_v50, %v1342_v0  ;;  %v1324_v12 = vpop.f32.mrf.mxu1  ;;  %v896_v26 = vadd.f32 %v4663_v47, %v758_v56  ;;  %v2804_v56 = vld [vmem:[%s5251_s5 + $0x30] sm:$0xff] }
 0x1ab   :  { %v1461_v27 = vpop.f32.mrf.mxu0  ;;  %v1545_v7 = vadd.f32 %v1508_v35, %v1489_v32  ;;  %v895_v44 = vadd.f32 %v4659_v38, %v757_v4  ;;  %v2800_v35 = vld [vmem:[%s5251_s5 + $0x10] sm:$0xff] }
 0x1ac   :  { %v1548_v11 = vadd.f32 %v1523_v3, %v1492_v51  ;;  %1601 = vrot.lane.b32.xlu1 %v4699_v60, %s3991_s15  ;;  %v1490_v17 = vadd.f32 %v1461_v27, %v1340_v43  ;;  %v1046_v0 = vadd.f32 %v4673_v16, %v896_v26  ;;  %v3579_v37 = vpop.f32.mrf.mxu1  ;;  %v2798_v27 = vld [vmem:[%s5251_s5] sm:$0xff] }
 0x1ad   :  { %v4727_v14 = vmax.f32 %v1545_v7, 0.0  ;;  %v3594_v57 = vpop.f32.mrf.mxu0  ;;  %v1045_v1 = vadd.f32 %v4667_v30, %v895_v44  ;;  %v2801_v44 = vld [vmem:[%s5251_s5 + $0x18] sm:$0xff] }
 0x1ae   :  { %v4705_v39 = vmax.f32 %v1548_v11, 0.0  ;;  %v1546_v46 = vadd.f32 %v1513_v42, %v1490_v17  ;;  %v1196_v30 = vadd.f32 %v4685_v9, %v1046_v0  ;;  %v1327_v54 = vpop.f32.mrf.mxu1 }
 0x1af   :  { %v1195_v18 = vadd.f32 %v4675_v45, %v1045_v1  ;;  %v1474_v61 = vpop.f32.mrf.mxu0  ;;  %v2803_v1 = vld [vmem:[%s5251_s5 + $0x28] sm:$0xff] }
 0x1b0   :  { %1565 = vrot.lane.b32.xlu1 %v4699_v60, %s3992_s21  ;;  %1603 = vrot.lane.b32.xlu0 %v4705_v39, %s3991_s15  ;;  %v4737_v38 = vmax.f32 %v1546_v46, 0.0  ;;  %v1346_v47 = vadd.f32 %v3579_v37, %v1196_v30 }
 0x1b1   :  { %v1345_v15 = vadd.f32 %v3578_v29, %v1195_v18  ;;  %v3595_v40 = vpop.f32.mrf.mxu0  ;;  %v2805_v18 = vld [vmem:[%s5251_s5 + $0x38] sm:$0xff] }
 0x1b2   :  { %v1496_v45 = vadd.f32 %v3595_v40, %v1346_v47  ;;  %v3984_v40 = vld [vmem:[%s5249_s1 + $0x1] ss:$0 sm:$0xff] }
 0x1b3   :  { %v1495_v50 = vadd.f32 %v3594_v57, %v1345_v15  ;;  %v1477_v11 = vpop.f32.mrf.mxu0 }
 0x1b4   :  { %1832 = vrot.lane.b32.xlu1 %v4699_v60, %s3993_s25  ;;  %1567 = vrot.lane.b32.xlu0 %v4705_v39, %s3992_s21  ;;  %v1552_v9 = vadd.f32 %v4669_v49, %v1496_v45  ;;  %v1044_v49 = vadd.f32 %v4679_v48, %v4665_v59 }
 0x1b5   :  { %v1551_v16 = vadd.f32 %v4677_v10, %v1495_v50  ;;  %v1043_v10 = vadd.f32 %v4671_v24, %v4661_v33 }
 0x1b6   :  { %v4761_v51 = vmax.f32 %v1552_v9, 0.0  ;;  %v1194_v33 = vadd.f32 %v4687_v28, %v1044_v49 }
 0x1b7   :  { %v4754_v21 = vmax.f32 %v1551_v16, 0.0  ;;  %v1193_v3 = vadd.f32 %v4681_v52, %v1043_v10 }
 0x1b8   :  { %1974 = vrot.lane.b32.xlu1 %v4699_v60, %s3994_s28  ;;  %1834 = vrot.lane.b32.xlu0 %v4705_v39, %s3993_s25  ;;  %v1344_v53 = vadd.f32 %v1327_v54, %v1194_v33 }
 0x1b9   :  { %v1343_v23 = vadd.f32 %v1324_v12, %v1193_v3  ;;  %v3985_v3 = vld [vmem:[%s5249_s1] ss:$0 sm:$0xff] }
 0x1ba   :  { %v1494_v48 = vadd.f32 %v1477_v11, %v1344_v53 }
 0x1bb   :  { %v1493_v24 = vadd.f32 %v1474_v61, %v1343_v23 }
 0x1bc   :  { %1597 = vrot.lane.b32.xlu1 %v4727_v14, %s3991_s15  ;;  %1976 = vrot.lane.b32.xlu0 %v4705_v39, %s3994_s28  ;;  %v1550_v28 = vadd.f32 %v4691_v41, %v1494_v48  ;;  %v3951_v41 = vld [vmem:[%s5250_s4] sm:$0xff]  }
 0x1bd   :  { %v1549_v59 = vadd.f32 %v4683_v22, %v1493_v24  ;;  %v3947_v22 = vld [vmem:[%s5250_s4 + $0x20] sm:$0xff]   ;;  %3620 = vmatprep.mubr.msk.bf16.mxu0 %vm284_vm0, %v3951_v41 }
 0x1be   :  { %v4793_v6 = vmax.f32 %v1550_v28, 0.0  ;;  %3604 = vmatprep.mubr.msk.bf16.mxu1 %vm284_vm0, %v3947_v22 }
 0x1bf   :  { %v4786_v52 = vmax.f32 %v1549_v59, 0.0 }
 0x1c0   :  { %1561 = vrot.lane.b32.xlu1 %v4727_v14, %s3992_s21  ;;  %1599 = vrot.lane.b32.xlu0 %v4737_v38, %s3991_s15 }
 0x1c4   :  { %1828 = vrot.lane.b32.xlu1 %v4727_v14, %s3993_s25  ;;  %1563 = vrot.lane.b32.xlu0 %v4737_v38, %s3992_s21 }
 0x1c8   :  { %1970 = vrot.lane.b32.xlu1 %v4727_v14, %s3994_s28  ;;  %1830 = vrot.lane.b32.xlu0 %v4737_v38, %s3993_s25 }
 0x1cc   :  { %1972 = vrot.lane.b32.xlu0 %v4737_v38, %s3994_s28  ;;  %1609 = vrot.lane.b32.xlu1 %v4754_v21, %s3991_s15 }
 0x1d0   :  { %1573 = vrot.lane.b32.xlu1 %v4754_v21, %s3992_s21  ;;  %1611 = vrot.lane.b32.xlu0 %v4761_v51, %s3991_s15 }
 0x1d4   :  { %1840 = vrot.lane.b32.xlu1 %v4754_v21, %s3993_s25  ;;  %1575 = vrot.lane.b32.xlu0 %v4761_v51, %s3992_s21 }
 0x1d8   :  { %1982 = vrot.lane.b32.xlu1 %v4754_v21, %s3994_s28  ;;  %1842 = vrot.lane.b32.xlu0 %v4761_v51, %s3993_s25 }
 0x1dc   :  { %2242 = vrot.lane.b32.xlu1 %v4754_v21, %s3995_s29  ;;  %1984 = vrot.lane.b32.xlu0 %v4761_v51, %s3994_s28 }
 0x1e0   :  { %1605 = vrot.lane.b32.xlu1 %v4786_v52, %s3991_s15  ;;  %2244 = vrot.lane.b32.xlu0 %v4761_v51, %s3995_s29 }
 0x1e4   :  { %2384 = vrot.lane.b32.xlu1 %v4754_v21, %s3996_s30  ;;  %1607 = vrot.lane.b32.xlu0 %v4793_v6, %s3991_s15 }
 0x1e8   :  { %1569 = vrot.lane.b32.xlu1 %v4786_v52, %s3992_s21  ;;  %2386 = vrot.lane.b32.xlu0 %v4761_v51, %s3996_s30 }
 0x1ec   :  { %1836 = vrot.lane.b32.xlu1 %v4786_v52, %s3993_s25  ;;  %2236 = vrot.lane.b32.xlu0 %v4705_v39, %s3995_s29 }
 0x1f0   :  { %1978 = vrot.lane.b32.xlu1 %v4786_v52, %s3994_s28  ;;  %1571 = vrot.lane.b32.xlu0 %v4793_v6, %s3992_s21 }
 0x1f4   :  { %2238 = vrot.lane.b32.xlu1 %v4786_v52, %s3995_s29  ;;  %1838 = vrot.lane.b32.xlu0 %v4793_v6, %s3993_s25 }
 0x1f8   :  { %2380 = vrot.lane.b32.xlu1 %v4786_v52, %s3996_s30  ;;  %2378 = vrot.lane.b32.xlu0 %v4705_v39, %s3996_s30 }
 0x1fc   :  { %2234 = vrot.lane.b32.xlu1 %v4699_v60, %s3995_s29  ;;  %2232 = vrot.lane.b32.xlu0 %v4737_v38, %s3995_s29 }
 0x200   :  { %2376 = vrot.lane.b32.xlu1 %v4699_v60, %s3996_s30  ;;  %1980 = vrot.lane.b32.xlu0 %v4793_v6, %s3994_s28 }
 0x204   :  { %2230 = vrot.lane.b32.xlu1 %v4727_v14, %s3995_s29  ;;  %2374 = vrot.lane.b32.xlu0 %v4737_v38, %s3996_s30 }
 0x208   :  { %2372 = vrot.lane.b32.xlu1 %v4727_v14, %s3996_s30  ;;  %2528 = vrot.lane.b32.xlu0 %v4761_v51, %s3997_s7 }
 0x20c   :  { %2526 = vrot.lane.b32.xlu1 %v4754_v21, %s3997_s7  ;;  %2670 = vrot.lane.b32.xlu0 %v4761_v51, %s3998_s8 }
 0x210   :  { %2668 = vrot.lane.b32.xlu1 %v4754_v21, %s3998_s8  ;;  %2240 = vrot.lane.b32.xlu0 %v4793_v6, %s3995_s29 }
 0x214   :  { %2522 = vrot.lane.b32.xlu1 %v4786_v52, %s3997_s7  ;;  %2382 = vrot.lane.b32.xlu0 %v4793_v6, %s3996_s30 }
 0x218   :  { %2664 = vrot.lane.b32.xlu1 %v4786_v52, %s3998_s8  ;;  %2520 = vrot.lane.b32.xlu0 %v4705_v39, %s3997_s7 }
 0x21c   :  { %2518 = vrot.lane.b32.xlu1 %v4699_v60, %s3997_s7  ;;  %2662 = vrot.lane.b32.xlu0 %v4705_v39, %s3998_s8 }
 0x21e   :  { %v4863_v58 = vpop.permute.xlu1 %1601 }
 0x220   :  { %2660 = vrot.lane.b32.xlu1 %v4699_v60, %s3998_s8  ;;  %2524 = vrot.lane.b32.xlu0 %v4793_v6, %s3997_s7 }
 0x222   :  { %v4869_v13 = vpop.permute.xlu1 %1565  ;;  %v4871_v8 = vpop.permute.xlu0 %1603 }
 0x223   :  { %v1616_v41 = vmul.f32 %v3984_v40, %v4871_v8  ;;  %v3986_v8 = vld [vmem:[%s5249_s1 + $0x2] ss:$0 sm:$0xff] }
 0x224   :  { %2514 = vrot.lane.b32.xlu1 %v4727_v14, %s3997_s7  ;;  %2666 = vrot.lane.b32.xlu0 %v4793_v6, %s3998_s8 }
 0x226   :  { %v4877_v31 = vpop.permute.xlu1 %1832  ;;  %v4879_v32 = vpop.permute.xlu0 %1567 }
 0x228   :  { %2656 = vrot.lane.b32.xlu1 %v4727_v14, %s3998_s8  ;;  %2516 = vrot.lane.b32.xlu0 %v4737_v38, %s3997_s7 }
 0x22a   :  { %v1975_v55 = vpop.permute.xlu1 %1974  ;;  %v4888_v43 = vpop.permute.xlu0 %1834 }
 0x22b   :  { %v1988_v4 = vmul.f32 %v4901_v36, %v1975_v55 }
 0x22c   :  { %2808 = vperm.xlu1 %3910, %v2798_v27   ;;  %2658 = vrot.lane.b32.xlu0 %v4737_v38, %s3998_s8 }
 0x22e   :  { %v1598_v7 = vpop.permute.xlu1 %1597  ;;  %v1977_v17 = vpop.permute.xlu0 %1976 }
 0x22f   :  { %v1989_v42 = vmul.f32 %v4901_v36, %v1977_v17 }
 0x230   :  { %2818 = vperm.xlu1 %3910, %v2800_v35   ;;  %2813 = vperm.xlu0 %3909, %v2799_v5   ;;  %v1615_v35 = vmul.f32 %v3984_v40, %v4863_v58 }
 0x231   :  { %v4905_v29 = vpack.c.bf16 %v1989_v42, %v1988_v4 }
 0x232   :  { %v4913_v46 = vpop.permute.xlu1 %1561  ;;  %v1600_v57 = vpop.permute.xlu0 %1599  ;;  %v1631_v42 = vpack.c.bf16 %v1616_v41, %v1615_v35 }
 0x233   :  { %v1577_v41 = vmul.f32 %v3985_v3, %v4913_v46 }
 0x234   :  { %2828 = vperm.xlu1 %3910, %v2802_v25   ;;  %2823 = vperm.xlu0 %3909, %v2801_v44   ;;  %v1614_v25 = vmul.f32 %v3984_v40, %v1600_v57  ;;  %v1613_v44 = vmul.f32 %v3984_v40, %v1598_v7 }
 0x236   :  { %v4921_v12 = vpop.permute.xlu1 %1828  ;;  %v4923_v26 = vpop.permute.xlu0 %1563 }
 0x237   :  { %v1844_v46 = vmul.f32 %v3986_v8, %v4921_v12  ;;  %v3952_v12 = vld [vmem:[%s5250_s4 + $0x8] sm:$0xff]  }
 0x238   :  { %2838 = vperm.xlu1 %3910, %v2804_v56   ;;  %2833 = vperm.xlu0 %3909, %v2803_v1  }
 0x23a   :  { %v4928_v61 = vpop.permute.xlu1 %1970  ;;  %v4930_v0 = vpop.permute.xlu0 %1830 }
 0x23c   :  { %2843 = vperm.xlu0 %3909, %v2805_v18   ;;  %v1630_v18 = vpack.c.bf16 %v1614_v25, %v1613_v44 }
 0x23e   :  { %v4932_v15 = vpop.permute.xlu0 %1972  ;;  %v1610_v37 = vpop.permute.xlu1 %1609 }
 0x23f   :  { %v1619_v47 = vmul.f32 %v3984_v40, %v1610_v37 }
 0x242   :  { %v1574_v30 = vpop.permute.xlu1 %1573  ;;  %v1612_v50 = vpop.permute.xlu0 %1611 }
 0x243   :  { %v1620_v16 = vmul.f32 %v3984_v40, %v1612_v50  ;;  %v1583_v49 = vmul.f32 %v3985_v3, %v1574_v30  ;;  %v1580_v30 = vmul.f32 %v3985_v3, %v4879_v32  ;;  %v1847_v32 = vmul.f32 %v3986_v8, %v4888_v43 }
 0x245   :  { %v1633_v45 = vpack.c.bf16 %v1620_v16, %v1619_v47 }
 0x246   :  { %v1841_v9 = vpop.permute.xlu1 %1840  ;;  %v1576_v10 = vpop.permute.xlu0 %1575 }
 0x247   :  { %v1584_v23 = vmul.f32 %v3985_v3, %v1576_v10  ;;  %3596 = vmatprep.subr.bf16.mxu1 %v1633_v45  ;;  %v1850_v58 = vmul.f32 %v3986_v8, %v1841_v9  ;;  %v3949_v9 = vld [vmem:[%s5250_s4 + $0x30] sm:$0xff]  }
 0x248   :  { %3597 = vmatpush3.bf16.msra.mxu1 %v1633_v45  ;;  %v1579_v45 = vmul.f32 %v3985_v3, %v4869_v13  ;;  %v1846_v13 = vmul.f32 %v3986_v8, %v4877_v31  ;;  %v3950_v31 = vld [vmem:[%s5250_s4 + $0x38] sm:$0xff]  }
 0x249   :  { %v1596_v54 = vpack.c.bf16 %v1584_v23, %v1583_v49 }
 0x24a   :  { %v4940_v33 = vpop.permute.xlu1 %1982  ;;  %v1843_v24 = vpop.permute.xlu0 %1842  ;;  %v1594_v49 = vpack.c.bf16 %v1580_v30, %v1579_v45  ;;  %v3954_v30 = vld [vmem:[%s5250_s4 + $0x48] sm:$0xff]  }
 0x24b   :  { %3612 = vmatprep.subr.bf16.mxu0 %v1596_v54  ;;  %v1851_v37 = vmul.f32 %v3986_v8, %v1843_v24  ;;  %v1578_v24 = vmul.f32 %v3985_v3, %v4923_v26  ;;  %v1862_v26 = vpack.c.bf16 %v1847_v32, %v1846_v13 }
 0x24c   :  { %3613 = vmatpush3.bf16.msra.mxu0 %v1596_v54 }
 0x24d   :  { %v1864_v47 = vpack.c.bf16 %v1851_v37, %v1850_v58  ;;  %v1593_v35 = vpack.c.bf16 %v1578_v24, %v1577_v41  ;;  %v2124_v58 = vpack.c.bf16 %v4761_v51, %v4754_v21  ;;  %v1987_v21 = vmul.f32 %v4901_v36, %v4932_v15  ;;  %v3960_v24 = vld [vmem:[%s5250_s4 + $0x68] sm:$0xff]  }
 0x24e   :  { %v4942_v11 = vpop.permute.xlu1 %2242  ;;  %v1985_v53 = vpop.permute.xlu0 %1984  ;;  %v2123_v51 = vpack.c.bf16 %v4793_v6, %v4786_v52  ;;  %v3959_v52 = vld [vmem:[%s5250_s4 + $0x60] sm:$0xff]  }
 0x252   :  { %v1606_v59 = vpop.permute.xlu1 %1605  ;;  %v4944_v48 = vpop.permute.xlu0 %2244 }
 0x253   :  { %v1617_v27 = vmul.f32 %v3984_v40, %v1606_v59 }
 0x256   :  { %v4946_v28 = vpop.permute.xlu1 %2384  ;;  %v1608_v22 = vpop.permute.xlu0 %1607 }
 0x257   :  { %v1618_v55 = vmul.f32 %v3984_v40, %v1608_v22  ;;  %v3948_v40 = vld [vmem:[%s5250_s4 + $0x28] sm:$0xff]  }
 0x259   :  { %v1632_v5 = vpack.c.bf16 %v1618_v55, %v1617_v27 }
 0x25a   :  { %v1570_v17 = vpop.permute.xlu1 %1569  ;;  %v4950_v4 = vpop.permute.xlu0 %2386 }
 0x25b   :  { %3598 = vmatprep.subr.bf16.mxu1 %v1632_v5  ;;  %v1581_v16 = vmul.f32 %v3985_v3, %v1570_v17  ;;  %v1993_v17 = vmul.f32 %v4901_v36, %v1985_v53 }
 0x25c   :  { %3599 = vmatpush3.bf16.msra.mxu1 %v1632_v5  ;;  %v1845_v5 = vmul.f32 %v3986_v8, %v4930_v0  ;;  %v3953_v0 = vld [vmem:[%s5250_s4 + $0x40] sm:$0xff]  }
 0x25d   :  { %3600 = vmatprep.subr.bf16.mxu1 %v1631_v42 }
 0x25e   :  { %v1837_v56 = vpop.permute.xlu1 %1836  ;;  %v4952_v1 = vpop.permute.xlu0 %2236  ;;  %v1861_v53 = vpack.c.bf16 %v1845_v5, %v1844_v46 }
 0x25f   :  { %v1848_v59 = vmul.f32 %v3986_v8, %v1837_v56 }
 0x260   :  { %3601 = vmatpush3.bf16.msra.mxu1 %v1631_v42 }
 0x261   :  { %3602 = vmatprep.subr.bf16.mxu1 %v1630_v18 }
 0x262   :  { %v1979_v50 = vpop.permute.xlu1 %1978  ;;  %v1572_v57 = vpop.permute.xlu0 %1571 }
 0x263   :  { %v1582_v7 = vmul.f32 %v3985_v3, %v1572_v57  ;;  %v1992_v3 = vmul.f32 %v4901_v36, %v4940_v33  ;;  %v3955_v33 = vld [vmem:[%s5250_s4 + $0x10] sm:$0xff]  }
 0x264   :  { %3603 = vmatpush3.bf16.msra.mxu1 %v1630_v18 }
 0x265   :  { %v1595_v10 = vpack.c.bf16 %v1582_v7, %v1581_v16  ;;  %3628 = vmatprep.subr.bf16.mxu1 %v1864_v47  ;;  %v2006_v44 = vpack.c.bf16 %v1993_v17, %v1992_v3  ;;  %v3957_v16 = vld [vmem:[%s5250_s4 + $0x50] sm:$0xff]   ;;  %v3956_v7 = vld [vmem:[%s5250_s4 + $0x18] sm:$0xff]  }
 0x266   :  { %v4966_v23 = vpop.permute.xlu1 %2238  ;;  %v1839_v54 = vpop.permute.xlu0 %1838 }
 0x267   :  { %v1849_v22 = vmul.f32 %v3986_v8, %v1839_v54  ;;  %3605 = vmatmul.mubr.msk.bf16.vlgmr.msra.gmra.mxu1 %vm284_vm0, %v3948_v40  ;;  %3614 = vmatprep.subr.bf16.mxu0 %v1595_v10  ;;  %v1990_v8 = vmul.f32 %v4901_v36, %v1979_v50  ;;  %v1986_v40 = vmul.f32 %v4901_v36, %v4928_v61 }
 0x268   :  { %3615 = vmatpush3.bf16.msra.mxu0 %v1595_v10  ;;  %3629 = vmatpush3.bf16.msra.mxu1 %v1864_v47  ;;  %v3987_v10 = vld [vmem:[%s5249_s1 + $0x5] ss:$0 sm:$0xff]  ;;  %v2122_v61 = vpack.c.bf16 %v4705_v39, %v4699_v60 }
 0x269   :  { %v1863_v27 = vpack.c.bf16 %v1849_v22, %v1848_v59  ;;  %3616 = vmatprep.subr.bf16.mxu0 %v1594_v49  ;;  %3608 = vmatprep.mubr.msk.bf16.mxu1 %vm284_vm0, %v3949_v9  ;;  %v2003_v6 = vpack.c.bf16 %v1987_v21, %v1986_v40  ;;  %v3958_v9 = vld [vmem:[%s5250_s4 + $0x58] sm:$0xff]   ;;  %v3961_v60 = vld [vmem:[%s5250_s4 + $0x80] sm:$0xff]   ;;  %v3963_v22 = vld [vmem:[%s5250_s4 + $0x70] sm:$0xff]  }
 0x26a   :  { %v4973_v43 = vpop.permute.xlu1 %2380  ;;  %v4975_v55 = vpop.permute.xlu0 %2378  ;;  %v3969_v21 = vld [vmem:[%s5250_s4 + $0xc0] sm:$0xff]   ;;  %v3990_v40 = vld [vmem:[%s5249_s1 + $0x8] ss:$0 sm:$0xff] }
 0x26b   :  { %3630 = vmatprep.subr.bf16.mxu1 %v1863_v27 }
 0x26c   :  { %3617 = vmatpush3.bf16.msra.mxu0 %v1594_v49  ;;  %3631 = vmatpush3.bf16.msra.mxu1 %v1863_v27  ;;  %v2252_v49 = vmul.f32 %v3987_v10, %v4942_v11  ;;  %v2121_v11 = vpack.c.bf16 %v4737_v38, %v4727_v14  ;;  %v2250_v14 = vmul.f32 %v3987_v10, %v4966_v23  ;;  %v3965_v23 = vld [vmem:[%s5250_s4 + $0x90] sm:$0xff]  }
 0x26d   :  { %3618 = vmatprep.subr.bf16.mxu0 %v1593_v35  ;;  %3632 = vmatprep.subr.bf16.mxu1 %v1862_v26 }
 0x26e   :  { %v4985_v42 = vpop.permute.xlu1 %2234  ;;  %v4987_v25 = vpop.permute.xlu0 %2232 }
 0x26f   :  { %3609 = vmatmul.mubr.msk.bf16.gmra.mxu1 %vm284_vm0, %v3950_v31  ;;  %v2248_v38 = vmul.f32 %v3987_v10, %v4985_v42 }
 0x270   :  { %3619 = vmatpush3.bf16.msra.mxu0 %v1593_v35  ;;  %3633 = vmatpush3.bf16.msra.mxu1 %v1862_v26  ;;  %v2249_v26 = vmul.f32 %v3987_v10, %v4952_v1  ;;  %v3964_v1 = vld [vmem:[%s5250_s4 + $0x78] sm:$0xff]  }
 0x271   :  { %3634 = vmatprep.subr.bf16.mxu1 %v1861_v53  ;;  %3644 = vmatprep.subr.bf16.mxu0 %v2006_v44 }
 0x272   :  { %v4999_v56 = vpop.permute.xlu1 %2376  ;;  %v1981_v18 = vpop.permute.xlu0 %1980  ;;  %3636 = vmatprep.mubr.msk.bf16.mxu1 %vm284_vm0, %v3953_v0  ;;  %v2264_v3 = vpack.c.bf16 %v2249_v26, %v2248_v38 }
 0x273   :  { %v1991_v37 = vmul.f32 %v4901_v36, %v1981_v18  ;;  %3621 = vmatmul.mubr.msk.bf16.vlgmr.msra.gmra.mxu0 %vm284_vm0, %v3952_v12  ;;  %v2253_v36 = vmul.f32 %v3987_v10, %v4944_v48  ;;  %v3988_v48 = vld [vmem:[%s5249_s1 + $0x6] ss:$0 sm:$0xff] }
 0x274   :  { %3635 = vmatpush3.bf16.msra.mxu1 %v1861_v53  ;;  %3645 = vmatpush3.bf16.msra.mxu0 %v2006_v44  ;;  %v2394_v59 = vmul.f32 %v3988_v48, %v4946_v28  ;;  %v3962_v28 = vld [vmem:[%s5250_s4 + $0x88] sm:$0xff]   ;;  %v2392_v5 = vmul.f32 %v3988_v48, %v4973_v43  ;;  %v2390_v17 = vmul.f32 %v3988_v48, %v4999_v56  ;;  %v3967_v18 = vld [vmem:[%s5250_s4 + $0xa0] sm:$0xff]  }
 0x275   :  { %v2005_v57 = vpack.c.bf16 %v1991_v37, %v1990_v8  ;;  %3660 = vmatprep.subr.bf16.mxu1 %v2124_v58  ;;  %3624 = vmatprep.mubr.msk.bf16.mxu0 %vm284_vm0, %v3955_v33  ;;  %v2266_v39 = vpack.c.bf16 %v2253_v36, %v2252_v49  ;;  %v2391_v53 = vmul.f32 %v3988_v48, %v4975_v55  ;;  %v3989_v55 = vld [vmem:[%s5249_s1 + $0x7] ss:$0 sm:$0xff] }
 0x276   :  { %v5011_v47 = vpop.permute.xlu1 %2230  ;;  %v5013_v50 = vpop.permute.xlu0 %2374  ;;  %v2247_v43 = vmul.f32 %v3987_v10, %v4987_v25  ;;  %v3966_v25 = vld [vmem:[%s5250_s4 + $0x98] sm:$0xff]  }
 0x277   :  { %3637 = vmatmul.mubr.msk.bf16.vlgmr.msra.gmra.mxu1 %vm284_vm0, %v3954_v30  ;;  %3646 = vmatprep.subr.bf16.mxu0 %v2005_v57  ;;  %v2246_v42 = vmul.f32 %v3987_v10, %v5011_v47  ;;  %v2406_v12 = vpack.c.bf16 %v2391_v53, %v2390_v17  ;;  %v2389_v30 = vmul.f32 %v3988_v48, %v5013_v50  ;;  %v3968_v50 = vld [vmem:[%s5250_s4 + $0xa8] sm:$0xff]   ;;  %v3977_v17 = vld [vmem:[%s5250_s4 + $0x100] sm:$0xff]  }
 0x278   :  { %3647 = vmatpush3.bf16.msra.mxu0 %v2005_v57  ;;  %3661 = vmatpush3.bf16.msra.mxu1 %v2124_v58  ;;  %v3978_v53 = vld [vmem:[%s5250_s4 + $0x108] sm:$0xff]  }
 0x279   :  { %3648 = vmatprep.subr.bf16.mxu0 %v4905_v29  ;;  %3662 = vmatprep.subr.bf16.mxu1 %v2123_v51  ;;  %v2263_v8 = vpack.c.bf16 %v2247_v43, %v2246_v42  ;;  %v3976_v42 = vld [vmem:[%s5250_s4 + $0xe8] sm:$0xff]   ;;  %v3981_v43 = vld [vmem:[%s5250_s4 + $0x110] sm:$0xff]  }
 0x27a   :  { %v5029_v45 = vpop.permute.xlu1 %2372  ;;  %v5031_v15 = vpop.permute.xlu0 %2528  ;;  %3640 = vmatprep.mubr.msk.bf16.mxu1 %vm284_vm0, %v3957_v16 }
 0x27b   :  { %3625 = vmatmul.mubr.msk.bf16.gmra.mxu0 %vm284_vm0, %v3956_v7  ;;  %v2388_v37 = vmul.f32 %v3988_v48, %v5029_v45  ;;  %v2537_v57 = vmul.f32 %v3989_v55, %v5031_v15 }
 0x27c   :  { %3649 = vmatpush3.bf16.msra.mxu0 %v4905_v29  ;;  %3663 = vmatpush3.bf16.msra.mxu1 %v2123_v51  ;;  %v2395_v29 = vmul.f32 %v3988_v48, %v4950_v4 }
 0x27d   :  { %3650 = vmatprep.subr.bf16.mxu0 %v2003_v6  ;;  %3664 = vmatprep.subr.bf16.mxu1 %v2122_v61  ;;  %v2405_v51 = vpack.c.bf16 %v2389_v30, %v2388_v37 }
 0x27e   :  { %v2527_v32 = vpop.permute.xlu1 %2526  ;;  %v5049_v54 = vpop.permute.xlu0 %2670  ;;  %3652 = vmatprep.mubr.msk.bf16.mxu0 %vm284_vm0, %v3959_v52  ;;  %v2408_v41 = vpack.c.bf16 %v2395_v29, %v2394_v59  ;;  %v3971_v52 = vld [vmem:[%s5250_s4 + $0xb0] sm:$0xff]  }
 0x27f   :  { %3641 = vmatmul.mubr.msk.bf16.gmra.mxu1 %vm284_vm0, %v3958_v9  ;;  %v2536_v58 = vmul.f32 %v3989_v55, %v2527_v32  ;;  %v2679_v15 = vmul.f32 %v3990_v40, %v5049_v54  ;;  %v3970_v32 = vld [vmem:[%s5250_s4 + $0xc8] sm:$0xff]  }
 0x280   :  { %3651 = vmatpush3.bf16.msra.mxu0 %v2003_v6  ;;  %3665 = vmatpush3.bf16.msra.mxu1 %v2122_v61 }
 0x281   :  { %3666 = vmatprep.subr.bf16.mxu1 %v2121_v11  ;;  %3676 = vmatprep.subr.bf16.mxu0 %v2266_v39  ;;  %v2550_v7 = vpack.c.bf16 %v2537_v57, %v2536_v58 }
 0x282   :  { %v2669_v4 = vpop.permute.xlu1 %2668  ;;  %v2241_v13 = vpop.permute.xlu0 %2240  ;;  %3668 = vmatprep.mubr.msk.bf16.mxu1 %vm284_vm0, %v3961_v60 }
 0x283   :  { %v2251_v27 = vmul.f32 %v3987_v10, %v2241_v13  ;;  %3653 = vmatmul.mubr.msk.bf16.vlgmr.msra.gmra.mxu0 %vm284_vm0, %v3960_v24  ;;  %v2678_v45 = vmul.f32 %v3990_v40, %v2669_v4  ;;  %v3972_v4 = vld [vmem:[%s5250_s4 + $0xb8] sm:$0xff]  }
 0x284   :  { %3667 = vmatpush3.bf16.msra.mxu1 %v2121_v11  ;;  %3677 = vmatpush3.bf16.msra.mxu0 %v2266_v39  ;;  %v3973_v39 = vld [vmem:[%s5250_s4 + $0xd0] sm:$0xff]  }
 0x285   :  { %v2265_v35 = vpack.c.bf16 %v2251_v27, %v2250_v14  ;;  %3692 = vmatprep.subr.bf16.mxu1 %v2408_v41  ;;  %3656 = vmatprep.mubr.msk.bf16.mxu0 %vm284_vm0, %v3963_v22  ;;  %v2692_v36 = vpack.c.bf16 %v2679_v15, %v2678_v45  ;;  %v3975_v14 = vld [vmem:[%s5250_s4 + $0xe0] sm:$0xff]  }
 0x286   :  { %v2523_v31 = vpop.permute.xlu1 %2522  ;;  %v2383_v46 = vpop.permute.xlu0 %2382 }
 0x287   :  { %v2393_v0 = vmul.f32 %v3988_v48, %v2383_v46  ;;  %3669 = vmatmul.mubr.msk.bf16.vlgmr.msra.gmra.mxu1 %vm284_vm0, %v3962_v28  ;;  %3678 = vmatprep.subr.bf16.mxu0 %v2265_v35  ;;  %v2534_v61 = vmul.f32 %v3989_v55, %v2523_v31 }
 0x288   :  { %3679 = vmatpush3.bf16.msra.mxu0 %v2265_v35  ;;  %3693 = vmatpush3.bf16.msra.mxu1 %v2408_v41  ;;  %v3974_v35 = vld [vmem:[%s5250_s4 + $0xd8] sm:$0xff]  }
 0x289   :  { %v2407_v44 = vpack.c.bf16 %v2393_v0, %v2392_v5  ;;  %3680 = vmatprep.subr.bf16.mxu0 %v2264_v3  ;;  %3672 = vmatprep.mubr.msk.bf16.mxu1 %vm284_vm0, %v3965_v23  ;;  %v3979_v0 = vld [vmem:[%s5250_s4 + $0xf0] sm:$0xff]  }
 0x28a   :  { %v2665_v33 = vpop.permute.xlu1 %2664  ;;  %v2521_v56 = vpop.permute.xlu0 %2520 }
 0x28b   :  { %3657 = vmatmul.mubr.msk.bf16.gmra.mxu0 %vm284_vm0, %v3964_v1  ;;  %3694 = vmatprep.subr.bf16.mxu1 %v2407_v44  ;;  %v2533_v54 = vmul.f32 %v3989_v55, %v2521_v56  ;;  %v2676_v48 = vmul.f32 %v3990_v40, %v2665_v33 }
 0x28c   :  { %3681 = vmatpush3.bf16.msra.mxu0 %v2264_v3  ;;  %3695 = vmatpush3.bf16.msra.mxu1 %v2407_v44  ;;  %v3980_v44 = vld [vmem:[%s5250_s4 + $0xf8] sm:$0xff]  }
 0x28d   :  { %3682 = vmatprep.subr.bf16.mxu0 %v2263_v8  ;;  %3696 = vmatprep.subr.bf16.mxu1 %v2406_v12 }
 0x28e   :  { %v2519_v47 = vpop.permute.xlu1 %2518  ;;  %v2663_v16 = vpop.permute.xlu0 %2662  ;;  %3684 = vmatprep.mubr.msk.bf16.mxu0 %vm284_vm0, %v3967_v18 }
 0x28f   :  { %3673 = vmatmul.mubr.msk.bf16.gmra.mxu1 %vm284_vm0, %v3966_v25  ;;  %v2532_v9 = vmul.f32 %v3989_v55, %v2519_v47  ;;  %v2675_v13 = vmul.f32 %v3990_v40, %v2663_v16 }
 0x290   :  { %3683 = vmatpush3.bf16.msra.mxu0 %v2263_v8  ;;  %3697 = vmatpush3.bf16.msra.mxu1 %v2406_v12  ;;  %v3982_v12 = vld [vmem:[%s5250_s4 + $0x118] sm:$0xff]  }
 0x291   :  { %3698 = vmatprep.subr.bf16.mxu1 %v2405_v51  ;;  %3708 = vmatprep.subr.bf16.mxu0 %v2550_v7  ;;  %v2548_v24 = vpack.c.bf16 %v2533_v54, %v2532_v9 }
 0x292   :  { %v2661_v6 = vpop.permute.xlu1 %2660  ;;  %v2525_v10 = vpop.permute.xlu0 %2524  ;;  %3700 = vmatprep.mubr.msk.bf16.mxu1 %vm284_vm0, %v3969_v21 }
 0x293   :  { %v2535_v49 = vmul.f32 %v3989_v55, %v2525_v10  ;;  %3685 = vmatmul.mubr.msk.bf16.vlgmr.msra.gmra.mxu0 %vm284_vm0, %v3968_v50  ;;  %v2674_v59 = vmul.f32 %v3990_v40, %v2661_v6 }
 0x294   :  { %3699 = vmatpush3.bf16.msra.mxu1 %v2405_v51  ;;  %3709 = vmatpush3.bf16.msra.mxu0 %v2550_v7 }
 0x295   :  { %v2549_v60 = vpack.c.bf16 %v2535_v49, %v2534_v61  ;;  %3724 = vmatprep.subr.bf16.mxu1 %v2692_v36  ;;  %3688 = vmatprep.mubr.msk.bf16.mxu0 %vm284_vm0, %v3971_v52  ;;  %v2690_v27 = vpack.c.bf16 %v2675_v13, %v2674_v59 }
 0x296   :  { %v2515_v29 = vpop.permute.xlu1 %2514  ;;  %v2667_v11 = vpop.permute.xlu0 %2666 }
 0x297   :  { %v2677_v22 = vmul.f32 %v3990_v40, %v2667_v11  ;;  %3701 = vmatmul.mubr.msk.bf16.vlgmr.msra.gmra.mxu1 %vm284_vm0, %v3970_v32  ;;  %3710 = vmatprep.subr.bf16.mxu0 %v2549_v60  ;;  %v2530_v28 = vmul.f32 %v3989_v55, %v2515_v29 }
 0x298   :  { %3711 = vmatpush3.bf16.msra.mxu0 %v2549_v60  ;;  %3725 = vmatpush3.bf16.msra.mxu1 %v2692_v36 }
 0x299   :  { %v2691_v41 = vpack.c.bf16 %v2677_v22, %v2676_v48  ;;  %3712 = vmatprep.subr.bf16.mxu0 %v2548_v24  ;;  %3704 = vmatprep.mubr.msk.bf16.mxu1 %vm284_vm0, %v3973_v39 }
 0x29a   :  { %v2517_v38 = vpop.permute.xlu0 %2516  ;;  %v2657_v23 = vpop.permute.xlu1 %2656 }
 0x29b   :  { %v2531_v26 = vmul.f32 %v3989_v55, %v2517_v38  ;;  %3689 = vmatmul.mubr.msk.bf16.gmra.mxu0 %vm284_vm0, %v3972_v4  ;;  %3726 = vmatprep.subr.bf16.mxu1 %v2691_v41  ;;  %v2672_v46 = vmul.f32 %v3990_v40, %v2657_v23 }
 0x29c   :  { %3713 = vmatpush3.bf16.msra.mxu0 %v2548_v24  ;;  %3727 = vmatpush3.bf16.msra.mxu1 %v2691_v41 }
 0x29d   :  { %v2547_v5 = vpack.c.bf16 %v2531_v26, %v2530_v28  ;;  %3728 = vmatprep.subr.bf16.mxu1 %v2690_v27  ;;  %3716 = vmatprep.mubr.msk.bf16.mxu0 %vm284_vm0, %v3975_v14 }
 0x29e   :  { %v2659_v31 = vpop.permute.xlu0 %2658 }
 0x29f   :  { %v2673_v3 = vmul.f32 %v3990_v40, %v2659_v31  ;;  %3705 = vmatmul.mubr.msk.bf16.gmra.mxu1 %vm284_vm0, %v3974_v35  ;;  %3714 = vmatprep.subr.bf16.mxu0 %v2547_v5 }
 0x2a0   :  { %3715 = vmatpush3.bf16.msra.mxu0 %v2547_v5  ;;  %3729 = vmatpush3.bf16.msra.mxu1 %v2690_v27 }
 0x2a1   :  { %v2689_v1 = vpack.c.bf16 %v2673_v3, %v2672_v46  ;;  %3732 = vmatprep.mubr.msk.bf16.mxu1 %vm284_vm0, %v3977_v17 }
 0x2a3   :  { %3717 = vmatmul.mubr.msk.bf16.vlgmr.msra.gmra.mxu0 %vm284_vm0, %v3976_v42  ;;  %3730 = vmatprep.subr.bf16.mxu1 %v2689_v1 }
 0x2a4   :  { %3731 = vmatpush3.bf16.msra.mxu1 %v2689_v1  ;;  %3720 = vmatprep.mubr.msk.bf16.mxu0 %vm284_vm0, %v3979_v0 }
 0x2a7   :  { %3733 = vmatmul.mubr.msk.bf16.vlgmr.msra.gmra.mxu1 %vm284_vm0, %v3978_v53  ;;  %v5194_v1 = vpop.permute.xlu1 %2808 }
 0x2a8   :  { %3736 = vmatprep.mubr.msk.bf16.mxu1 %vm284_vm0, %v3981_v43 }
 0x2ab   :  { %3721 = vmatmul.mubr.msk.bf16.gmra.mxu0 %vm284_vm0, %v3980_v44 }
 0x2af   :  { %3737 = vmatmul.mubr.msk.bf16.gmra.mxu1 %vm284_vm0, %v3982_v12 }
 0x327   :  { %v3606_v33 = vpop.f32.mrf.mxu1 }
 0x329   :  { %v1700_v56 = vpop.f32.mrf.mxu1 }
 0x32b   :  { %v3607_v18 = vpop.f32.mrf.mxu1 }
 0x32d   :  { %v1703_v8 = vpop.f32.mrf.mxu1 }
 0x32f   :  { %v3610_v37 = vpop.f32.mrf.mxu1 }
 0x331   :  { %v5170_v55 = vpop.f32.mrf.mxu1 }
 0x333   :  { %v5172_v58 = vpop.f32.mrf.mxu1  ;;  %v3622_v25 = vpop.f32.mrf.mxu0 }
 0x334   :  { %v1806_v5 = vadd.f32 %v3622_v25, %v3606_v33 }
 0x335   :  { %v5174_v30 = vpop.f32.mrf.mxu1  ;;  %v1797_v57 = vpop.f32.mrf.mxu0 }
 0x336   :  { %v1798_v46 = vadd.f32 %v1797_v57, %v1700_v56  ;;  %v5200_v56 = vpop.permute.xlu0 %2813 }
 0x337   :  { %v3623_v47 = vpop.f32.mrf.mxu0  ;;  %v3638_v16 = vpop.f32.mrf.mxu1 }
 0x338   :  { %v1964_v3 = vadd.f32 %v3638_v16, %v1806_v5  ;;  %v1809_v53 = vadd.f32 %v3623_v47, %v3607_v18 }
 0x339   :  { %v1800_v21 = vpop.f32.mrf.mxu0  ;;  %v1931_v51 = vpop.f32.mrf.mxu1 }
 0x33a   :  { %v1962_v43 = vadd.f32 %v1931_v51, %v1798_v46  ;;  %v1801_v2 = vadd.f32 %v1800_v21, %v1703_v8  ;;  %v2819_v46 = vpop.permute.xlu1 %2818 }
 0x33b   :  { %v3626_v7 = vpop.f32.mrf.mxu0  ;;  %v3639_v40 = vpop.f32.mrf.mxu1 }
 0x33c   :  { %v1965_v62 = vadd.f32 %v3639_v40, %v1809_v53  ;;  %v1822_v57 = vadd.f32 %v3626_v7, %v3610_v37 }
 0x33d   :  { %v1813_v45 = vpop.f32.mrf.mxu0  ;;  %v1934_v50 = vpop.f32.mrf.mxu1 }
 0x33e   :  { %v1814_v18 = vadd.f32 %v1813_v45, %v5170_v55  ;;  %v1963_v47 = vadd.f32 %v1934_v50, %v1801_v2 }
 0x33f   :  { %v3627_v15 = vpop.f32.mrf.mxu0  ;;  %v3642_v52 = vpop.f32.mrf.mxu1 }
 0x340   :  { %v1825_v8 = vadd.f32 %v3627_v15, %v5172_v58 }
 0x341   :  { %v5176_v6 = vpop.f32.mrf.mxu0  ;;  %v1947_v10 = vpop.f32.mrf.mxu1 }
 0x342   :  { %v1966_v21 = vadd.f32 %v1947_v10, %v1814_v18  ;;  %v1817_v2 = vadd.f32 %v5176_v6, %v5174_v30  ;;  %v2829_v6 = vpop.permute.xlu1 %2828 }
 0x343   :  { %v5178_v36 = vpop.f32.mrf.mxu1  ;;  %v3654_v61 = vpop.f32.mrf.mxu0 }
 0x344   :  { %v2106_v44 = vadd.f32 %v3654_v61, %v1964_v3  ;;  %v1968_v3 = vadd.f32 %v3642_v52, %v1822_v57  ;;  %v1969_v55 = vadd.f32 %v5178_v36, %v1825_v8  ;;  %v5279_v8 = vld [vmem:[#allocation7_spill] sm:$0xff] }
 0x345   :  { %v5180_v9 = vpop.f32.mrf.mxu1  ;;  %v2073_v49 = vpop.f32.mrf.mxu0 }
 0x346   :  { %v2104_v20 = vadd.f32 %v2073_v49, %v1962_v43 }
 0x347   :  { %v3655_v32 = vpop.f32.mrf.mxu0  ;;  %v3670_v54 = vpop.f32.mrf.mxu1 }
 0x348   :  { %v2224_v19 = vadd.f32 %v3670_v54, %v2106_v44  ;;  %v2107_v16 = vadd.f32 %v3655_v32, %v1965_v62 }
 0x349   :  { %v2076_v60 = vpop.f32.mrf.mxu0  ;;  %v2191_v39 = vpop.f32.mrf.mxu1 }
 0x34a   :  { %v2222_v5 = vadd.f32 %v2191_v39, %v2104_v20  ;;  %v2105_v53 = vadd.f32 %v2076_v60, %v1963_v47  ;;  %v1967_v60 = vadd.f32 %v5180_v9, %v1817_v2 }
 0x34b   :  { %v3658_v48 = vpop.f32.mrf.mxu0  ;;  %v3671_v29 = vpop.f32.mrf.mxu1 }
 0x34c   :  { %v2225_v40 = vadd.f32 %v3671_v29, %v2107_v16  ;;  %v2110_v37 = vadd.f32 %v3658_v48, %v1968_v3 }
 0x34d   :  { %v2089_v11 = vpop.f32.mrf.mxu0  ;;  %v2194_v24 = vpop.f32.mrf.mxu1 }
 0x34e   :  { %v2108_v7 = vadd.f32 %v2089_v11, %v1966_v21  ;;  %v2223_v45 = vadd.f32 %v2194_v24, %v2105_v53  ;;  %v5280_v21 = vunpack.c.l.bf16 %v5279_v8 }
 0x34f   :  { %v5182_v59 = vpop.f32.mrf.mxu0  ;;  %v3674_v22 = vpop.f32.mrf.mxu1 }
 0x350   :  { %v2228_v32 = vadd.f32 %v3674_v22, %v2110_v37  ;;  %v2111_v39 = vadd.f32 %v5182_v59, %v1969_v55 }
 0x351   :  { %v5184_v4 = vpop.f32.mrf.mxu0  ;;  %v5186_v13 = vpop.f32.mrf.mxu1 }
 0x352   :  { %v2226_v48 = vadd.f32 %v5186_v13, %v2108_v7 }
 0x353   :  { %v5188_v41 = vpop.f32.mrf.mxu1  ;;  %v3686_v14 = vpop.f32.mrf.mxu0 }
 0x354   :  { %v2366_v63 = vadd.f32 %v3686_v14, %v2224_v19 }
 0x355   :  { %v5190_v38 = vpop.f32.mrf.mxu1  ;;  %v2333_v27 = vpop.f32.mrf.mxu0 }
 0x356   :  { %v2364_v49 = vadd.f32 %v2333_v27, %v2222_v5 }
 0x357   :  { %v3687_v28 = vpop.f32.mrf.mxu0  ;;  %v3702_v26 = vpop.f32.mrf.mxu1 }
 0x358   :  { %v2508_v54 = vadd.f32 %v3702_v26, %v2366_v63  ;;  %v2367_v62 = vadd.f32 %v3687_v28, %v2225_v40  ;;  %v2824_v63 = vpop.permute.xlu0 %2823  ;;  %v2109_v28 = vadd.f32 %v5184_v4, %v1967_v60 }
 0x359   :  { %v2336_v35 = vpop.f32.mrf.mxu0  ;;  %v2475_v23 = vpop.f32.mrf.mxu1 }
 0x35a   :  { %v2506_v20 = vadd.f32 %v2475_v23, %v2364_v49  ;;  %v2365_v29 = vadd.f32 %v2336_v35, %v2223_v45  ;;  %v2227_v13 = vadd.f32 %v5190_v38, %v2109_v28  ;;  %v5277_v35 = vld [vmem:[#allocation6_spill] sm:$0xff]  ;;  %v2839_v38 = vpop.permute.xlu1 %2838 }
 0x35b   :  { %v3690_v17 = vpop.f32.mrf.mxu0  ;;  %v3703_v31 = vpop.f32.mrf.mxu1  ;;  %v5278_v16 = vunpack.c.l.bf16 %v5277_v35 }
 0x35c   :  { %v2509_v58 = vadd.f32 %v3703_v31, %v2367_v62  ;;  %v2370_v36 = vadd.f32 %v3690_v17, %v2228_v32  ;;  %v2229_v31 = vadd.f32 %v5188_v41, %v2111_v39  ;;  %v2834_v4 = vpop.permute.xlu0 %2833 }
 0x35d   :  { %v5192_v42 = vpop.f32.mrf.mxu0  ;;  %v2478_v0 = vpop.f32.mrf.mxu1 }
 0x35e   :  { %v2507_v22 = vadd.f32 %v2478_v0, %v2365_v29  ;;  %v2368_v9 = vadd.f32 %v5192_v42, %v2226_v48 }
 0x35f   :  { %v5196_v12 = vpop.f32.mrf.mxu0  ;;  %v3706_v34 = vpop.f32.mrf.mxu1 }
 0x360   :  { %v2512_v59 = vadd.f32 %v3706_v34, %v2370_v36  ;;  %v2371_v0 = vadd.f32 %v5196_v12, %v2229_v31  ;;  %v2844_v60 = vpop.permute.xlu0 %2843 }
 0x361   :  { %v5198_v33 = vpop.f32.mrf.mxu0  ;;  %v2491_v25 = vpop.f32.mrf.mxu1 }
 0x362   :  { %v2369_v42 = vadd.f32 %v5198_v33, %v2227_v13 }
 0x363   :  { %v3707_v51 = vpop.f32.mrf.mxu1  ;;  %v3718_v61 = vpop.f32.mrf.mxu0 }
 0x364   :  { %v2650_v19 = vadd.f32 %v3718_v61, %v2508_v54  ;;  %v2513_v54 = vadd.f32 %v3707_v51, %v2371_v0 }
 0x365   :  { %v2494_v43 = vpop.f32.mrf.mxu1  ;;  %v2617_v44 = vpop.f32.mrf.mxu0 }
 0x366   :  { %v2648_v15 = vadd.f32 %v2617_v44, %v2506_v20  ;;  %v2511_v37 = vadd.f32 %v2494_v43, %v2369_v42  ;;  %v5281_v20 = vld [vmem:[#allocation8_spill] sm:$0xff] }
 0x367   :  { %v3719_v50 = vpop.f32.mrf.mxu0  ;;  %v3734_v52 = vpop.f32.mrf.mxu1 }
 0x368   :  { %v2792_v10 = vadd.f32 %v3734_v52, %v2650_v19  ;;  %v2651_v11 = vadd.f32 %v3719_v50, %v2509_v58  ;;  %v5282_v19 = vunpack.c.l.bf16 %v5281_v20  ;;  %v5283_v52 = vld [vmem:[#allocation9_spill] sm:$0xff] }
 0x369   :  { %v2620_v14 = vpop.f32.mrf.mxu0  ;;  %v2759_v30 = vpop.f32.mrf.mxu1  ;;  %v5284_v51 = vunpack.c.l.bf16 %v5283_v52 }
 0x36a   :  { %v2848_v24 = vadd.f32 %v2819_v46, %v2792_v10  ;;  %v2790_v27 = vadd.f32 %v2759_v30, %v2648_v15  ;;  %v2649_v17 = vadd.f32 %v2620_v14, %v2507_v22  ;;  %v2510_v46 = vadd.f32 %v2491_v25, %v2368_v9 }
 0x36b   :  { %v3722_v26 = vpop.f32.mrf.mxu0  ;;  %v3735_v23 = vpop.f32.mrf.mxu1 }
 0x36c   :  { %v2793_v57 = vadd.f32 %v3735_v23, %v2651_v11  ;;  %v2856_v5 = vadd.f32 %v2848_v24, %v5278_v16  ;;  %v2846_v18 = vadd.f32 %v5194_v1, %v2790_v27  ;;  %v2654_v3 = vadd.f32 %v3722_v26, %v2512_v59  ;;  %v5287_v27 = vld [vmem:[#allocation4_spill] sm:$0xff]  ;;  %v5289_v26 = vld [vmem:[#allocation3_spill] sm:$0xff] }
 0x36d   :  { %v2633_v47 = vpop.f32.mrf.mxu0  ;;  %v2762_v61 = vpop.f32.mrf.mxu1  ;;  %v5288_v28 = vunpack.c.l.bf16 %v5287_v27 }
 0x36e   :  { %v2849_v41 = vadd.f32 %v2824_v63, %v2793_v57  ;;  %v2791_v34 = vadd.f32 %v2762_v61, %v2649_v17  ;;  %v2652_v44 = vadd.f32 %v2633_v47, %v2510_v46  ;;  %v2864_v62 = vmax.f32 %v2856_v5, 0.0  ;;  %v5291_v57 = vld [vmem:[#allocation5_spill] sm:$0xff] }
 0x36f   :  { %v3723_v40 = vpop.f32.mrf.mxu0  ;;  %v3738_v49 = vpop.f32.mrf.mxu1  ;;  %v2854_v12 = vadd.f32 %v2846_v18, %v5282_v19  ;;  %v5292_v13 = vunpack.c.l.bf16 %v5291_v57 }
 0x370   :  { %v2857_v53 = vadd.f32 %v2849_v41, %v5280_v21  ;;  %v2796_v1 = vadd.f32 %v3738_v49, %v2654_v3  ;;  %v2847_v25 = vadd.f32 %v5200_v56, %v2791_v34  ;;  %v2655_v7 = vadd.f32 %v3723_v40, %v2513_v54  ;;  %v5285_v56 = vld [vmem:[#allocation2_spill] sm:$0xff] }
 0x371   :  { %v2636_v2 = vpop.f32.mrf.mxu0  ;;  %v2775_v55 = vpop.f32.mrf.mxu1  ;;  %v2862_v39 = vmax.f32 %v2854_v12, 0.0  ;;  %v5286_v14 = vunpack.c.l.bf16 %v5285_v56 }
 0x372   :  { %v2865_v33 = vmax.f32 %v2857_v53, 0.0  ;;  %v2852_v45 = vadd.f32 %v2839_v38, %v2796_v1  ;;  %v2794_v50 = vadd.f32 %v2775_v55, %v2652_v44  ;;  %v2855_v63 = vadd.f32 %v2847_v25, %v5284_v51 }
 0x373   :  { %v3739_v32 = vpop.f32.mrf.mxu1  ;;  %v2653_v15 = vadd.f32 %v2636_v2, %v2511_v37 }
 0x374   :  { %v3293_v58 = vpack.c.bf16 %v2865_v33, %v2864_v62  ;;  %v2850_v10 = vadd.f32 %v2829_v6, %v2794_v50  ;;  %v2797_v43 = vadd.f32 %v3739_v32, %v2655_v7  ;;  %v2863_v48 = vmax.f32 %v2855_v63, 0.0 }
 0x375   :  { %v2778_v29 = vpop.f32.mrf.mxu1  ;;  %v2860_v30 = vadd.f32 %v2852_v45, %v5286_v14  ;;  %v5290_v6 = vunpack.c.l.bf16 %v5289_v26 }
 0x376   :  { %3305 = vst [vmem:[%s5252_s6 + $0x8] sm:$0xff] %v3293_v58   ;;  %v2853_v36 = vadd.f32 %v2844_v60, %v2797_v43  ;;  %v2795_v11 = vadd.f32 %v2778_v29, %v2653_v15  ;;  %v3288_v24 = vpack.c.bf16 %v2863_v48, %v2862_v39  ;;  %v2858_v22 = vadd.f32 %v2850_v10, %v5288_v28 }
 0x377   :  { %v2868_v9 = vmax.f32 %v2860_v30, 0.0 }
 0x378   :  { %v2861_v23 = vadd.f32 %v2853_v36, %v5290_v6  ;;  %v2851_v31 = vadd.f32 %v2834_v4, %v2795_v11  ;;  %3289 = vst [vmem:[%s5252_s6] sm:$0xff] %v3288_v24   ;;  %v2866_v16 = vmax.f32 %v2858_v22, 0.0 }
 0x37a   :  { %v2869_v59 = vmax.f32 %v2861_v23, 0.0  ;;  %v2859_v35 = vadd.f32 %v2851_v31, %v5292_v13 }
 0x37c   :  { %v3303_v5 = vpack.c.bf16 %v2869_v59, %v2868_v9  ;;  %v2867_v17 = vmax.f32 %v2859_v35, 0.0 }
 0x37e   :  { %3307 = vst [vmem:[%s5252_s6 + $0x18] sm:$0xff] %v3303_v5   ;;  %v3298_v18 = vpack.c.bf16 %v2867_v17, %v2866_v16 }
 0x380   :  { %3306 = vst [vmem:[%s5252_s6 + $0x10] sm:$0xff] %v3298_v18  }

</bundles_post_ra>
